<compile_context>
chip_gen: v5e
topology: v5e:2x2
jax: 0.10.0
libtpu: 0.0.40
codegen_flags: <defaults>
</compile_context>

<pallas_src>
import functools
import math

import numpy as np
import jax
import jax.numpy as jnp
from jax.experimental import pallas as pl
from jax.experimental.pallas import tpu as pltpu

LN_EPS = 1e-5
FUSED_SEQ_LIMIT = 1024    # padded seq length up to which one fused kernel / FFT block is used
ROW_TILE = 512            # row tile for token-wise kernels (feedback: bigger tiles -> HBM roofline)
ATTN_Q_TILE = 256         # query-row tile for the long-sequence fallback attention


def _pick_vmem_limit():
    """Per-generation scoped-VMEM cap (v7x: 64 MiB physical, v4/v5e/v6e: 128 MiB)."""
    kind = ""
    try:
        kind = jax.devices()[0].device_kind.lower()
    except Exception:
        pass
    if "v7" in kind:
        return 52 * 1024 * 1024
    if any(t in kind for t in ("v4", "v5", "v6")):
        return 100 * 1024 * 1024
    return 48 * 1024 * 1024


VMEM_LIMIT_BYTES = _pick_vmem_limit()


# ----------------------------------------------------------------------------
# Helpers
# ----------------------------------------------------------------------------
def _layernorm(x, g, b):
    mu = jnp.mean(x, axis=-1, keepdims=True)
    var = jnp.mean(jnp.square(x - mu), axis=-1, keepdims=True)
    return (x - mu) * jax.lax.rsqrt(var + LN_EPS) * g + b


def _pad_to(n, m):
    return ((n + m - 1) // m) * m


def _row_tile(rows, max_tile):
    """Largest multiple-of-8 tile <= max_tile that divides `rows` (rows % 8 == 0)."""
    t = min(rows, max_tile)
    t -= t % 8
    t = max(t, 8)
    while rows % t:
        t -= 8
    return t


def _full_spec(a):
    nd = a.ndim
    # TODO(synk): constant-weight inputs could use pipeline_mode=pl.Buffered(1) to
    # reclaim double-buffer VMEM on v7x; default pipelining kept for portability.
    return pl.BlockSpec(a.shape, lambda *_, nd=nd: (0,) * nd)


def _cparams(sem):
    return pltpu.CompilerParams(dimension_semantics=sem,
                                vmem_limit_bytes=VMEM_LIMIT_BYTES)


# ----------------------------------------------------------------------------
# Shared in-kernel math
# ----------------------------------------------------------------------------
def _head_attention(q, k, v, wo_h, seq_len, kv_len, scale):
    """One attention head + its out-projection contribution.

    q: (M, dh) bf16, k/v: (N, dh) bf16, wo_h: (dh, D) bf16 -> (M, D) f32.
    Full-row softmax (K/V are VMEM-resident for the whole sequence).
    """
    s = jax.lax.dot_general(q, k, (((1,), (1,)), ((), ())),
                            preferred_element_type=jnp.float32) * scale
    if seq_len < kv_len:                                   # mask padded key positions
        kpos = jax.lax.broadcasted_iota(jnp.int32, s.shape, 1)
        s = jnp.where(kpos < seq_len, s, -1e30)
    m = jnp.max(s, axis=-1, keepdims=True)
    p = jnp.exp(s - m)
    l = jnp.sum(p, axis=-1, keepdims=True)
    o = jnp.dot(p.astype(jnp.bfloat16), v, preferred_element_type=jnp.float32) / l
    return jnp.dot(o.astype(jnp.bfloat16), wo_h, preferred_element_type=jnp.float32)


def _ffn_residual(x, g2, b2, w1, fb1, w2, fb2):
    """LayerNorm2 + Linear/ReLU/Linear + residual (dropout is identity at inference)."""
    xn = _layernorm(x, g2, b2)
    h1 = jnp.dot(xn.astype(jnp.bfloat16), w1, preferred_element_type=jnp.float32) + fb1
    h1 = jnp.maximum(h1, 0.0)
    ff = jnp.dot(h1.astype(jnp.bfloat16), w2, preferred_element_type=jnp.float32) + fb2
    return x + ff


# ----------------------------------------------------------------------------
# Fused FFT-block kernel (primary path, whole padded sequence per grid step)
# ----------------------------------------------------------------------------
def fused_fft_kernel(*refs, n_heads, add_pe, seq_len, scale):
    if add_pe:
        (x_ref, pe_ref, ln1g_ref, ln1b_ref, wq_ref, wk_ref, wv_ref,
         bq_ref, bk_ref, bv_ref, wo_ref, bo_ref, ln2g_ref, ln2b_ref,
         w1_ref, b1_ref, w2_ref, b2_ref, y_ref) = refs
    else:
        (x_ref, ln1g_ref, ln1b_ref, wq_ref, wk_ref, wv_ref,
         bq_ref, bk_ref, bv_ref, wo_ref, bo_ref, ln2g_ref, ln2b_ref,
         w1_ref, b1_ref, w2_ref, b2_ref, y_ref) = refs

    x = x_ref[0].astype(jnp.float32)                       # (Tp, D)
    if add_pe:
        x = x + pe_ref[0].astype(jnp.float32)
    Tp = x.shape[0]

    xn = _layernorm(x, ln1g_ref[...], ln1b_ref[...])
    xn_b = xn.astype(jnp.bfloat16)                         # bf16 feeds the MXU

    attn = jnp.zeros_like(x)
    for h in range(n_heads):                               # static loop, Wo folded per head
        q = (jnp.dot(xn_b, wq_ref[h], preferred_element_type=jnp.float32)
             + bq_ref[h]).astype(jnp.bfloat16)
        k = (jnp.dot(xn_b, wk_ref[h], preferred_element_type=jnp.float32)
             + bk_ref[h]).astype(jnp.bfloat16)
        v = (jnp.dot(xn_b, wv_ref[h], preferred_element_type=jnp.float32)
             + bv_ref[h]).astype(jnp.bfloat16)
        attn = attn + _head_attention(q, k, v, wo_ref[h], seq_len, Tp, scale)

    x = x + attn + bo_ref[...]
    y = _ffn_residual(x, ln2g_ref[...], ln2b_ref[...],
                      w1_ref[...], b1_ref[...], w2_ref[...], b2_ref[...])
    y_ref[0] = y.astype(y_ref.dtype)


def run_fused_fft_block(x, pe, p, n_heads, seq_len):
    B, Tp, D = x.shape
    add_pe = pe is not None
    scale = 1.0 / math.sqrt(D // n_heads)

    args = [x]
    in_specs = [pl.BlockSpec((1, Tp, D), lambda b: (b, 0, 0))]
    if add_pe:
        args.append(pe)
        in_specs.append(pl.BlockSpec((1, Tp, D), lambda b: (0, 0, 0)))
    weights = [p["ln1_g"], p["ln1_b"], p["wq"], p["wk"], p["wv"],
               p["bq"], p["bk"], p["bv"], p["wo"], p["bo"],
               p["ln2_g"], p["ln2_b"], p["w1"], p["b1"], p["w2"], p["b2"]]
    args += weights
    in_specs += [_full_spec(a) for a in weights]

    return pl.pallas_call(
        functools.partial(fused_fft_kernel, n_heads=n_heads, add_pe=add_pe,
                          seq_len=seq_len, scale=scale),
        grid=(B,),
        in_specs=in_specs,
        out_shape=jax.ShapeDtypeStruct((B, Tp, D), x.dtype),
        out_specs=pl.BlockSpec((1, Tp, D), lambda b: (b, 0, 0)),
        compiler_params=_cparams(("parallel",)),
    )(*args)


# ----------------------------------------------------------------------------
# Fallback path (padded sequence too long to fuse): two kernels per FFT block
# ----------------------------------------------------------------------------
def ln_qkv_kernel(*refs, n_heads, add_pe):
    """(optional PE add) + LayerNorm1 + per-head Q/K/V projections, head-major out."""
    if add_pe:
        (x_ref, pe_ref, g_ref, b_ref, wq_ref, wk_ref, wv_ref,
         bq_ref, bk_ref, bv_ref, qkv_ref, xpe_ref) = refs
    else:
        (x_ref, g_ref, b_ref, wq_ref, wk_ref, wv_ref,
         bq_ref, bk_ref, bv_ref, qkv_ref) = refs

    x = x_ref[0].astype(jnp.float32)                       # (tile, D)
    if add_pe:
        x = x + pe_ref[0].astype(jnp.float32)
        xpe_ref[0] = x.astype(xpe_ref.dtype)               # residual for this block

    xn = _layernorm(x, g_ref[...], b_ref[...])
    xn_b = xn.astype(jnp.bfloat16)
    for h in range(n_heads):
        q = jnp.dot(xn_b, wq_ref[h], preferred_element_type=jnp.float32) + bq_ref[h]
        k = jnp.dot(xn_b, wk_ref[h], preferred_element_type=jnp.float32) + bk_ref[h]
        v = jnp.dot(xn_b, wv_ref[h], preferred_element_type=jnp.float32) + bv_ref[h]
        qkv_ref[0, h] = q.astype(qkv_ref.dtype)
        qkv_ref[0, n_heads + h] = k.astype(qkv_ref.dtype)
        qkv_ref[0, 2 * n_heads + h] = v.astype(qkv_ref.dtype)


def run_ln_qkv(x, pe, p, n_heads, tile):
    B, Tp, D = x.shape
    dh = D // n_heads
    nT = Tp // tile
    add_pe = pe is not None

    args = [x]
    in_specs = [pl.BlockSpec((1, tile, D), lambda b, t: (b, t, 0))]
    if add_pe:
        args.append(pe)
        in_specs.append(pl.BlockSpec((1, tile, D), lambda b, t: (0, t, 0)))
    weights = [p["ln1_g"], p["ln1_b"], p["wq"], p["wk"], p["wv"],
               p["bq"], p["bk"], p["bv"]]
    args += weights
    in_specs += [_full_spec(a) for a in weights]

    qkv_shape = jax.ShapeDtypeStruct((B, 3 * n_heads, Tp, dh), jnp.bfloat16)
    qkv_spec = pl.BlockSpec((1, 3 * n_heads, tile, dh), lambda b, t: (b, 0, t, 0))
    if add_pe:
        out_shape = (qkv_shape, jax.ShapeDtypeStruct((B, Tp, D), x.dtype))
        out_specs = (qkv_spec, pl.BlockSpec((1, tile, D), lambda b, t: (b, t, 0)))
    else:
        out_shape = qkv_shape
        out_specs = qkv_spec

    return pl.pallas_call(
        functools.partial(ln_qkv_kernel, n_heads=n_heads, add_pe=add_pe),
        grid=(B, nT),
        in_specs=in_specs,
        out_shape=out_shape,
        out_specs=out_specs,
        compiler_params=_cparams(("parallel", "parallel")),
    )(*args)


def attn_ffn_kernel(x_ref, q_ref, k_ref, v_ref, wo_ref, bo_ref, ln2g_ref, ln2b_ref,
                    w1_ref, b1_ref, w2_ref, b2_ref, y_ref, *, n_heads, seq_len, scale):
    """All-head attention over sequence-resident K/V + out-proj + LN2 + FFN + residual."""
    x = x_ref[0].astype(jnp.float32)                       # (q_tile, D)
    kv_len = k_ref.shape[2]
    attn = jnp.zeros_like(x)
    for h in range(n_heads):
        attn = attn + _head_attention(q_ref[0, h], k_ref[0, h], v_ref[0, h],
                                      wo_ref[h], seq_len, kv_len, scale)
    x = x + attn + bo_ref[...]
    y = _ffn_residual(x, ln2g_ref[...], ln2b_ref[...],
                      w1_ref[...], b1_ref[...], w2_ref[...], b2_ref[...])
    y_ref[0] = y.astype(y_ref.dtype)


def run_attn_ffn(x_res, qkv, p, n_heads, seq_len, q_tile):
    B, Tp, D = x_res.shape
    H = n_heads
    dh = D // H
    nq = Tp // q_tile
    scale = 1.0 / math.sqrt(dh)

    weights = [p["wo"], p["bo"], p["ln2_g"], p["ln2_b"],
               p["w1"], p["b1"], p["w2"], p["b2"]]
    args = [x_res, qkv, qkv, qkv] + weights
    in_specs = [
        pl.BlockSpec((1, q_tile, D), lambda b, qi: (b, qi, 0)),
        pl.BlockSpec((1, H, q_tile, dh), lambda b, qi: (b, 0, qi, 0)),     # Q tile
        pl.BlockSpec((1, H, Tp, dh), lambda b, qi: (b, 1, 0, 0)),          # K: whole seq,
        pl.BlockSpec((1, H, Tp, dh), lambda b, qi: (b, 2, 0, 0)),          # V: const over qi
    ] + [_full_spec(a) for a in weights]

    return pl.pallas_call(
        functools.partial(attn_ffn_kernel, n_heads=n_heads, seq_len=seq_len, scale=scale),
        grid=(B, nq),
        in_specs=in_specs,
        out_shape=jax.ShapeDtypeStruct((B, Tp, D), x_res.dtype),
        out_specs=pl.BlockSpec((1, q_tile, D), lambda b, qi: (b, qi, 0)),
        compiler_params=_cparams(("parallel", "parallel")),
    )(*args)


# ----------------------------------------------------------------------------
# Final LayerNorm + linear head (row-flattened, lane-dense 128-padded output)
# ----------------------------------------------------------------------------
def ln_linear_kernel(*refs, want_xnorm):
    if want_xnorm:
        x_ref, g_ref, b_ref, w_ref, bias_ref, xn_ref, y_ref = refs
    else:
        x_ref, g_ref, b_ref, w_ref, bias_ref, y_ref = refs
    x = x_ref[...].astype(jnp.float32)                     # (tile, D)
    xn = _layernorm(x, g_ref[...], b_ref[...])
    if want_xnorm:
        xn_ref[...] = xn.astype(xn_ref.dtype)
    y = jnp.dot(xn.astype(jnp.bfloat16), w_ref[...],
                preferred_element_type=jnp.float32) + bias_ref[...]
    y_ref[...] = y.astype(y_ref.dtype)


def run_ln_linear(x, g, b, w, bias, want_xnorm):
    B, Tp, D = x.shape
    rows = B * Tp
    xr = x.reshape(rows, D)                                # flatten (B, Tp) -> rows
    tile = _row_tile(rows, ROW_TILE)
    n_out = w.shape[1]                                     # already lane-padded to 128

    args = [xr, g, b, w, bias]
    in_specs = [pl.BlockSpec((tile, D), lambda r: (r, 0))]
    in_specs += [_full_spec(a) for a in args[1:]]
    y_shape = jax.ShapeDtypeStruct((rows, n_out), jnp.float32)
    y_spec = pl.BlockSpec((tile, n_out), lambda r: (r, 0))
    if want_xnorm:
        out_shape = (jax.ShapeDtypeStruct((rows, D), x.dtype), y_shape)
        out_specs = (pl.BlockSpec((tile, D), lambda r: (r, 0)), y_spec)
    else:
        out_shape = y_shape
        out_specs = y_spec

    out = pl.pallas_call(
        functools.partial(ln_linear_kernel, want_xnorm=want_xnorm),
        grid=(rows // tile,),
        in_specs=in_specs,
        out_shape=out_shape,
        out_specs=out_specs,
        compiler_params=_cparams(("parallel",)),
    )(*args)

    if want_xnorm:
        xn, y = out
        return xn.reshape(B, Tp, D), y.reshape(B, Tp, n_out)
    return out.reshape(B, Tp, n_out)


# ----------------------------------------------------------------------------
# Parameter init (deterministic, synthetic) and positional encoding
# ----------------------------------------------------------------------------
def _uniform(key, shape, scale=0.05):
    return jax.random.uniform(key, shape, jnp.float32, -scale, scale)


def init_fft_block(key, d_model, d_ff, n_heads):
    dh = d_model // n_heads
    ks = jax.random.split(key, 12)
    return dict(
        ln1_g=jnp.ones((1, d_model), jnp.float32),
        ln1_b=jnp.zeros((1, d_model), jnp.float32),
        ln2_g=jnp.ones((1, d_model), jnp.float32),
        ln2_b=jnp.zeros((1, d_model), jnp.float32),
        # per-head projection weights, pre-transposed: (H, D, dh) / (H, dh, D)
        wq=_uniform(ks[0], (n_heads, d_model, dh)).astype(jnp.bfloat16),
        wk=_uniform(ks[1], (n_heads, d_model, dh)).astype(jnp.bfloat16),
        wv=_uniform(ks[2], (n_heads, d_model, dh)).astype(jnp.bfloat16),
        bq=_uniform(ks[3], (n_heads, 1, dh)),
        bk=_uniform(ks[4], (n_heads, 1, dh)),
        bv=_uniform(ks[5], (n_heads, 1, dh)),
        wo=_uniform(ks[6], (n_heads, dh, d_model)).astype(jnp.bfloat16),
        bo=_uniform(ks[7], (1, d_model)),
        w1=_uniform(ks[8], (d_model, d_ff)).astype(jnp.bfloat16),
        b1=_uniform(ks[9], (1, d_ff)),
        w2=_uniform(ks[10], (d_ff, d_model)).astype(jnp.bfloat16),
        b2=_uniform(ks[11], (1, d_model)),
    )


def make_positional_encoding(max_len, d_model):
    position = np.arange(0, max_len, dtype=np.float32)[:, None]
    div_term = np.exp(np.arange(0, d_model, 2).astype(np.float32)
                      * (-math.log(10000.0) / d_model))
    pe = np.zeros((max_len, d_model), dtype=np.float32)
    pe[:, 0::2] = np.sin(position * div_term)
    pe[:, 1::2] = np.cos(position * div_term)
    return jnp.asarray(pe)[None]                           # (1, max_len, d_model)


# ----------------------------------------------------------------------------
# Model
# ----------------------------------------------------------------------------
class FastSpeech2Pallas:
    def __init__(self, vocab_size, d_model=384, n_enc_layers=4, n_dec_layers=4,
                 n_heads=2, d_ff=1536, n_mels=80, max_len=10000, key=None):
        assert d_model == 384, "LengthRegulator hard-codes Linear(384, 1)"
        assert d_model % n_heads == 0
        if key is None:
            key = jax.random.PRNGKey(0)
        ks = jax.random.split(key, 5 + n_enc_layers + n_dec_layers)
        self.d_model, self.n_heads = d_model, n_heads
        self.n_mels, self.max_len = n_mels, max_len

        self.embedding = jax.random.normal(ks[0], (vocab_size, d_model), jnp.float32)
        self.pe = make_positional_encoding(max_len, d_model)

        self.enc_blocks = [init_fft_block(ks[1 + i], d_model, d_ff, n_heads)
                           for i in range(n_enc_layers)]
        self.dec_blocks = [init_fft_block(ks[1 + n_enc_layers + i], d_model, d_ff, n_heads)
                           for i in range(n_dec_layers)]
        base = 1 + n_enc_layers + n_dec_layers
        self.enc_norm_g = jnp.ones((1, d_model), jnp.float32)
        self.enc_norm_b = jnp.zeros((1, d_model), jnp.float32)
        self.dec_norm_g = jnp.ones((1, d_model), jnp.float32)
        self.dec_norm_b = jnp.zeros((1, d_model), jnp.float32)

        # duration head Linear(384, 1) -> lane-padded to 128 output columns
        len_w = _uniform(ks[base], (d_model, 1))
        self.len_w = jnp.pad(len_w, ((0, 0), (0, 127))).astype(jnp.bfloat16)
        self.len_b = jnp.pad(_uniform(ks[base + 1], (1, 1)), ((0, 0), (0, 127)))

        # mel head Linear(d_model, n_mels) -> lane-padded to 128 output columns
        mel_w = _uniform(ks[base + 2], (d_model, n_mels))
        self.mel_w = jnp.pad(mel_w, ((0, 0), (0, 128 - n_mels))).astype(jnp.bfloat16)
        self.mel_b = jnp.pad(_uniform(ks[base + 3], (1, n_mels)),
                             ((0, 0), (0, 128 - n_mels)))

    # ---- helpers ----
    def _pe_slice(self, padded_len):
        pe = self.pe[:, :min(padded_len, self.max_len)]
        if pe.shape[1] < padded_len:
            pe = jnp.pad(pe, ((0, 0), (0, padded_len - pe.shape[1]), (0, 0)))
        return pe

    def _padded_len(self, seq_len):
        if seq_len <= FUSED_SEQ_LIMIT:
            return _pad_to(seq_len, 8)
        return _pad_to(seq_len, 512)

    def _fft_stack(self, x, blocks, seq_len):
        _, Tp, _ = x.shape
        pe = self._pe_slice(Tp)
        if Tp <= FUSED_SEQ_LIMIT:
            # Fully fused FFT block: qkv / attention stay in VMEM, one launch per layer.
            for i, p in enumerate(blocks):
                x = run_fused_fft_block(x, pe if i == 0 else None, p,
                                        self.n_heads, seq_len)
        else:
            # TODO(synk): long-sequence fallback still round-trips qkv via HBM.
            row_tile = _row_tile(Tp, ROW_TILE)
            q_tile = _row_tile(Tp, ATTN_Q_TILE)
            for i, p in enumerate(blocks):
                if i == 0:
                    qkv, x = run_ln_qkv(x, pe, p, self.n_heads, row_tile)  # PE add fused
                else:
                    qkv = run_ln_qkv(x, None, p, self.n_heads, row_tile)
                x = run_attn_ffn(x, qkv, p, self.n_heads, seq_len, q_tile)
        return x

    # ---- sub-modules ----
    def encoder(self, src):
        x = jnp.take(self.embedding, src.astype(jnp.int32), axis=0)   # glue gather
        seq_len = min(x.shape[1], self.max_len)
        x = x[:, :seq_len]
        padded = self._padded_len(seq_len)
        if padded > seq_len:
            x = jnp.pad(x, ((0, 0), (0, padded - seq_len), (0, 0)))
        x = self._fft_stack(x, self.enc_blocks, seq_len)
        # fused final LayerNorm + duration linear (row-flattened, lane-dense output)
        xn, dur = run_ln_linear(x, self.enc_norm_g, self.enc_norm_b,
                                self.len_w, self.len_b, want_xnorm=True)
        return xn[:, :seq_len], dur[:, :seq_len, 0]

    def length_regulator(self, enc_out, log_dur, duration_target):
        B, T, _ = enc_out.shape
        duration_pred = jnp.exp(log_dur) - 1.0                        # (B, T)
        if duration_target is None:
            # TODO(synk): data-dependent output length forces a device->host sync here.
            duration_rounded = np.asarray(jnp.round(duration_pred), dtype=np.float32)
        else:
            # Host copy of an *input* (not a kernel output) -> does not serialize
            # the encoder against the decoder.
            duration_rounded = np.asarray(duration_target, dtype=np.float32)[:, :T]
        expanded_len = int(round(float(duration_rounded.sum())))
        if expanded_len > self.max_len:
            scale = self.max_len / expanded_len
            duration_rounded = np.floor(duration_rounded * scale)
            expanded_len = int(round(float(duration_rounded.sum())))
        # Matches the reference exactly: every batch row is expanded by the
        # *batch-summed* per-position duration.
        sizes = [int(round(float(duration_rounded[:, i].sum()))) for i in range(T)]
        idx = np.repeat(np.arange(T), sizes)
        expanded = jnp.take(enc_out, jnp.asarray(idx, jnp.int32), axis=1)
        return expanded, duration_pred

    def decoder(self, x):
        seq_len = min(x.shape[1], self.max_len)
        x = x[:, :seq_len]
        padded = self._padded_len(seq_len)
        if padded > seq_len:
            x = jnp.pad(x, ((0, 0), (0, padded - seq_len), (0, 0)))
        x = self._fft_stack(x, self.dec_blocks, seq_len)
        mel = run_ln_linear(x, self.dec_norm_g, self.dec_norm_b,
                            self.mel_w, self.mel_b, want_xnorm=False)
        return mel[:, :seq_len, :self.n_mels]

    def __call__(self, src, duration_target=None):
        enc_out, log_dur = self.encoder(src)
        expanded, duration_pred = self.length_regulator(enc_out, log_dur, duration_target)
        mel_output = self.decoder(expanded)
        return mel_output, duration_pred


# ----------------------------------------------------------------------------
# Driver
# ----------------------------------------------------------------------------
if __name__ == "__main__":
    key = jax.random.PRNGKey(0)
    k_model, k_src, k_dur = jax.random.split(key, 3)

    vocab_size = 32
    B, T = 2, 8
    model = FastSpeech2Pallas(
        vocab_size=vocab_size, d_model=384, n_enc_layers=2, n_dec_layers=2,
        n_heads=2, d_ff=512, n_mels=80, max_len=1000, key=k_model)

    src = jax.random.randint(k_src, (B, T), 0, vocab_size, dtype=jnp.int32)
    duration_target = jax.random.randint(k_dur, (B, T), 1, 3).astype(jnp.float32)

    mel_output, duration_pred = model(src, duration_target)
    jax.block_until_ready((mel_output, duration_pred))

    assert mel_output.ndim == 3 and mel_output.shape[0] == B and mel_output.shape[2] == 80
    assert duration_pred.shape == (B, T)
    assert bool(jnp.all(jnp.isfinite(mel_output)))
    assert bool(jnp.all(jnp.isfinite(duration_pred)))
    print("KERNEL_OK")
</pallas_src>

<mosaic_0001>
module attributes {stable_mosaic.version = 11 : i64} {
  func.func @fused_fft_kernel(%arg0: i32, %arg1: memref<1x8x384xf32, #tpu.memory_space<vmem>>, %arg2: memref<1x8x384xf32, #tpu.memory_space<vmem>>, %arg3: memref<1x384xf32, #tpu.memory_space<vmem>>, %arg4: memref<1x384xf32, #tpu.memory_space<vmem>>, %arg5: memref<2x384x192xbf16, #tpu.memory_space<vmem>>, %arg6: memref<2x384x192xbf16, #tpu.memory_space<vmem>>, %arg7: memref<2x384x192xbf16, #tpu.memory_space<vmem>>, %arg8: memref<2x1x192xf32, #tpu.memory_space<vmem>>, %arg9: memref<2x1x192xf32, #tpu.memory_space<vmem>>, %arg10: memref<2x1x192xf32, #tpu.memory_space<vmem>>, %arg11: memref<2x192x384xbf16, #tpu.memory_space<vmem>>, %arg12: memref<1x384xf32, #tpu.memory_space<vmem>>, %arg13: memref<1x384xf32, #tpu.memory_space<vmem>>, %arg14: memref<1x384xf32, #tpu.memory_space<vmem>>, %arg15: memref<384x512xbf16, #tpu.memory_space<vmem>>, %arg16: memref<1x512xf32, #tpu.memory_space<vmem>>, %arg17: memref<512x384xbf16, #tpu.memory_space<vmem>>, %arg18: memref<1x384xf32, #tpu.memory_space<vmem>>, %arg19: memref<1x8x384xf32, #tpu.memory_space<vmem>>) attributes {dimension_semantics = [#tpu.dimension_semantics<parallel>], iteration_bounds = array<i64: 2>, scalar_prefetch = 0 : i64, scratch_operands = 0 : i64, tpu.core_type = #tpu.core_type<tc>, window_params = [{transform_indices = @transform_0, window_bounds = array<i64: 1, 8, 384>}, {pipeline_mode = #tpu.pipeline_mode<synchronous>, transform_indices = @transform_1, window_bounds = array<i64: 1, 8, 384>}, {pipeline_mode = #tpu.pipeline_mode<synchronous>, transform_indices = @transform_2, window_bounds = array<i64: 1, 384>}, {pipeline_mode = #tpu.pipeline_mode<synchronous>, transform_indices = @transform_3, window_bounds = array<i64: 1, 384>}, {pipeline_mode = #tpu.pipeline_mode<synchronous>, transform_indices = @transform_4, window_bounds = array<i64: 2, 384, 192>}, {pipeline_mode = #tpu.pipeline_mode<synchronous>, transform_indices = @transform_5, window_bounds = array<i64: 2, 384, 192>}, {pipeline_mode = #tpu.pipeline_mode<synchronous>, transform_indices = @transform_6, window_bounds = array<i64: 2, 384, 192>}, {pipeline_mode = #tpu.pipeline_mode<synchronous>, transform_indices = @transform_7, window_bounds = array<i64: 2, 1, 192>}, {pipeline_mode = #tpu.pipeline_mode<synchronous>, transform_indices = @transform_8, window_bounds = array<i64: 2, 1, 192>}, {pipeline_mode = #tpu.pipeline_mode<synchronous>, transform_indices = @transform_9, window_bounds = array<i64: 2, 1, 192>}, {pipeline_mode = #tpu.pipeline_mode<synchronous>, transform_indices = @transform_10, window_bounds = array<i64: 2, 192, 384>}, {pipeline_mode = #tpu.pipeline_mode<synchronous>, transform_indices = @transform_11, window_bounds = array<i64: 1, 384>}, {pipeline_mode = #tpu.pipeline_mode<synchronous>, transform_indices = @transform_12, window_bounds = array<i64: 1, 384>}, {pipeline_mode = #tpu.pipeline_mode<synchronous>, transform_indices = @transform_13, window_bounds = array<i64: 1, 384>}, {pipeline_mode = #tpu.pipeline_mode<synchronous>, transform_indices = @transform_14, window_bounds = array<i64: 384, 512>}, {pipeline_mode = #tpu.pipeline_mode<synchronous>, transform_indices = @transform_15, window_bounds = array<i64: 1, 512>}, {pipeline_mode = #tpu.pipeline_mode<synchronous>, transform_indices = @transform_16, window_bounds = array<i64: 512, 384>}, {pipeline_mode = #tpu.pipeline_mode<synchronous>, transform_indices = @transform_17, window_bounds = array<i64: 1, 384>}, {transform_indices = @transform_18, window_bounds = array<i64: 1, 8, 384>}]} {
    %c0 = arith.constant 0 : index
    %c0_0 = arith.constant 0 : index
    %c0_1 = arith.constant 0 : index
    %0 = vector.load %arg1[%c0, %c0_0, %c0_1] : memref<1x8x384xf32, #tpu.memory_space<vmem>>, vector<1x8x384xf32>
    %1 = vector.shape_cast %0 : vector<1x8x384xf32> to vector<8x384xf32>
    %c0_2 = arith.constant 0 : index
    %c0_3 = arith.constant 0 : index
    %c0_4 = arith.constant 0 : index
    %2 = vector.load %arg2[%c0_2, %c0_3, %c0_4] : memref<1x8x384xf32, #tpu.memory_space<vmem>>, vector<1x8x384xf32>
    %3 = vector.shape_cast %2 : vector<1x8x384xf32> to vector<8x384xf32>
    %4 = arith.addf %1, %3 : vector<8x384xf32>
    %c0_5 = arith.constant 0 : index
    %c0_6 = arith.constant 0 : index
    %5 = vector.load %arg3[%c0_5, %c0_6] : memref<1x384xf32, #tpu.memory_space<vmem>>, vector<1x384xf32>
    %c0_7 = arith.constant 0 : index
    %c0_8 = arith.constant 0 : index
    %6 = vector.load %arg4[%c0_7, %c0_8] : memref<1x384xf32, #tpu.memory_space<vmem>>, vector<1x384xf32>
    %cst = arith.constant dense<0.000000e+00> : vector<8xf32>
    %7 = vector.multi_reduction <add>, %4, %cst [1] : vector<8x384xf32> to vector<8xf32>
    %8 = vector.shape_cast %7 : vector<8xf32> to vector<8x1xf32>
    %cst_9 = arith.constant 3.840000e+02 : f32
    %9 = vector.broadcast %cst_9 : f32 to vector<8x1xf32>
    %10 = arith.divf %8, %9 : vector<8x1xf32>
    %11 = vector.broadcast %10 : vector<8x1xf32> to vector<8x384xf32>
    %12 = arith.subf %4, %11 : vector<8x384xf32>
    %13 = arith.mulf %12, %12 : vector<8x384xf32>
    %cst_10 = arith.constant dense<0.000000e+00> : vector<8xf32>
    %14 = vector.multi_reduction <add>, %13, %cst_10 [1] : vector<8x384xf32> to vector<8xf32>
    %15 = vector.shape_cast %14 : vector<8xf32> to vector<8x1xf32>
    %cst_11 = arith.constant 3.840000e+02 : f32
    %16 = vector.broadcast %cst_11 : f32 to vector<8x1xf32>
    %17 = arith.divf %15, %16 : vector<8x1xf32>
    %18 = vector.broadcast %10 : vector<8x1xf32> to vector<8x384xf32>
    %19 = arith.subf %4, %18 : vector<8x384xf32>
    %cst_12 = arith.constant 9.99999974E-6 : f32
    %20 = vector.broadcast %cst_12 : f32 to vector<8x1xf32>
    %21 = arith.addf %17, %20 : vector<8x1xf32>
    %22 = math.rsqrt %21 : vector<8x1xf32>
    %23 = vector.broadcast %22 : vector<8x1xf32> to vector<8x384xf32>
    %24 = arith.mulf %19, %23 : vector<8x384xf32>
    %25 = vector.broadcast %5 : vector<1x384xf32> to vector<8x384xf32>
    %26 = arith.mulf %24, %25 : vector<8x384xf32>
    %27 = vector.broadcast %6 : vector<1x384xf32> to vector<8x384xf32>
    %28 = arith.addf %26, %27 : vector<8x384xf32>
    %29 = arith.truncf %28 : vector<8x384xf32> to vector<8x384xbf16>
    %cst_13 = arith.constant 0.000000e+00 : f32
    %30 = vector.broadcast %cst_13 : f32 to vector<8x384xf32>
    %c0_14 = arith.constant 0 : index
    %c0_15 = arith.constant 0 : index
    %c0_16 = arith.constant 0 : index
    %31 = vector.load %arg5[%c0_14, %c0_15, %c0_16] : memref<2x384x192xbf16, #tpu.memory_space<vmem>>, vector<1x384x192xbf16>
    %32 = vector.shape_cast %31 : vector<1x384x192xbf16> to vector<384x192xbf16>
    %cst_17 = arith.constant dense<0.000000e+00> : vector<8x192xf32>
    %33 = tpu.matmul %29, %32, %cst_17 {dimension_numbers = #tpu.dot_dimension_numbers<[1], [0], [0], [1], [0, 0, 1, 1], [], []>} : vector<8x384xbf16>, vector<384x192xbf16>, vector<8x192xf32> -> vector<8x192xf32>
    %c0_18 = arith.constant 0 : index
    %c0_19 = arith.constant 0 : index
    %c0_20 = arith.constant 0 : index
    %34 = vector.load %arg8[%c0_18, %c0_19, %c0_20] : memref<2x1x192xf32, #tpu.memory_space<vmem>>, vector<1x1x192xf32>
    %35 = vector.shape_cast %34 : vector<1x1x192xf32> to vector<1x192xf32>
    %36 = vector.broadcast %35 : vector<1x192xf32> to vector<8x192xf32>
    %37 = arith.addf %33, %36 : vector<8x192xf32>
    %38 = arith.truncf %37 : vector<8x192xf32> to vector<8x192xbf16>
    %c0_21 = arith.constant 0 : index
    %c0_22 = arith.constant 0 : index
    %c0_23 = arith.constant 0 : index
    %39 = vector.load %arg6[%c0_21, %c0_22, %c0_23] : memref<2x384x192xbf16, #tpu.memory_space<vmem>>, vector<1x384x192xbf16>
    %40 = vector.shape_cast %39 : vector<1x384x192xbf16> to vector<384x192xbf16>
    %cst_24 = arith.constant dense<0.000000e+00> : vector<8x192xf32>
    %41 = tpu.matmul %29, %40, %cst_24 {dimension_numbers = #tpu.dot_dimension_numbers<[1], [0], [0], [1], [0, 0, 1, 1], [], []>} : vector<8x384xbf16>, vector<384x192xbf16>, vector<8x192xf32> -> vector<8x192xf32>
    %c0_25 = arith.constant 0 : index
    %c0_26 = arith.constant 0 : index
    %c0_27 = arith.constant 0 : index
    %42 = vector.load %arg9[%c0_25, %c0_26, %c0_27] : memref<2x1x192xf32, #tpu.memory_space<vmem>>, vector<1x1x192xf32>
    %43 = vector.shape_cast %42 : vector<1x1x192xf32> to vector<1x192xf32>
    %44 = vector.broadcast %43 : vector<1x192xf32> to vector<8x192xf32>
    %45 = arith.addf %41, %44 : vector<8x192xf32>
    %46 = arith.truncf %45 : vector<8x192xf32> to vector<8x192xbf16>
    %c0_28 = arith.constant 0 : index
    %c0_29 = arith.constant 0 : index
    %c0_30 = arith.constant 0 : index
    %47 = vector.load %arg7[%c0_28, %c0_29, %c0_30] : memref<2x384x192xbf16, #tpu.memory_space<vmem>>, vector<1x384x192xbf16>
    %48 = vector.shape_cast %47 : vector<1x384x192xbf16> to vector<384x192xbf16>
    %cst_31 = arith.constant dense<0.000000e+00> : vector<8x192xf32>
    %49 = tpu.matmul %29, %48, %cst_31 {dimension_numbers = #tpu.dot_dimension_numbers<[1], [0], [0], [1], [0, 0, 1, 1], [], []>} : vector<8x384xbf16>, vector<384x192xbf16>, vector<8x192xf32> -> vector<8x192xf32>
    %c0_32 = arith.constant 0 : index
    %c0_33 = arith.constant 0 : index
    %c0_34 = arith.constant 0 : index
    %50 = vector.load %arg10[%c0_32, %c0_33, %c0_34] : memref<2x1x192xf32, #tpu.memory_space<vmem>>, vector<1x1x192xf32>
    %51 = vector.shape_cast %50 : vector<1x1x192xf32> to vector<1x192xf32>
    %52 = vector.broadcast %51 : vector<1x192xf32> to vector<8x192xf32>
    %53 = arith.addf %49, %52 : vector<8x192xf32>
    %54 = arith.truncf %53 : vector<8x192xf32> to vector<8x192xbf16>
    %c0_35 = arith.constant 0 : index
    %c0_36 = arith.constant 0 : index
    %c0_37 = arith.constant 0 : index
    %55 = vector.load %arg11[%c0_35, %c0_36, %c0_37] : memref<2x192x384xbf16, #tpu.memory_space<vmem>>, vector<1x192x384xbf16>
    %56 = vector.shape_cast %55 : vector<1x192x384xbf16> to vector<192x384xbf16>
    %cst_38 = arith.constant dense<0.000000e+00> : vector<8x8xf32>
    %57 = tpu.matmul %38, %46, %cst_38 {dimension_numbers = #tpu.dot_dimension_numbers<[1], [1], [0], [0], [0, 0, 1, 0], [], []>} : vector<8x192xbf16>, vector<8x192xbf16>, vector<8x8xf32> -> vector<8x8xf32>
    %cst_39 = arith.constant 0.0721687824 : f32
    %58 = vector.broadcast %cst_39 : f32 to vector<8x8xf32>
    %59 = arith.mulf %57, %58 : vector<8x8xf32>
    %cst_40 = arith.constant dense<0xFF800000> : vector<8xf32>
    %60 = vector.multi_reduction <maximumf>, %59, %cst_40 [1] : vector<8x8xf32> to vector<8xf32>
    %61 = vector.shape_cast %60 : vector<8xf32> to vector<8x1xf32>
    %62 = vector.broadcast %61 : vector<8x1xf32> to vector<8x8xf32>
    %63 = arith.subf %59, %62 : vector<8x8xf32>
    %64 = math.exp %63 : vector<8x8xf32>
    %cst_41 = arith.constant dense<0.000000e+00> : vector<8xf32>
    %65 = vector.multi_reduction <add>, %64, %cst_41 [1] : vector<8x8xf32> to vector<8xf32>
    %66 = vector.shape_cast %65 : vector<8xf32> to vector<8x1xf32>
    %67 = arith.truncf %64 : vector<8x8xf32> to vector<8x8xbf16>
    %cst_42 = arith.constant dense<0.000000e+00> : vector<8x192xf32>
    %68 = tpu.matmul %67, %54, %cst_42 {dimension_numbers = #tpu.dot_dimension_numbers<[1], [0], [0], [1], [0, 0, 1, 1], [], []>} : vector<8x8xbf16>, vector<8x192xbf16>, vector<8x192xf32> -> vector<8x192xf32>
    %69 = vector.broadcast %66 : vector<8x1xf32> to vector<8x192xf32>
    %70 = arith.divf %68, %69 : vector<8x192xf32>
    %71 = arith.truncf %70 : vector<8x192xf32> to vector<8x192xbf16>
    %cst_43 = arith.constant dense<0.000000e+00> : vector<8x384xf32>
    %72 = tpu.matmul %71, %56, %cst_43 {dimension_numbers = #tpu.dot_dimension_numbers<[1], [0], [0], [1], [0, 0, 1, 1], [], []>} : vector<8x192xbf16>, vector<192x384xbf16>, vector<8x384xf32> -> vector<8x384xf32>
    %73 = arith.addf %30, %72 : vector<8x384xf32>
    %c1 = arith.constant 1 : index
    %c0_44 = arith.constant 0 : index
    %c0_45 = arith.constant 0 : index
    %74 = vector.load %arg5[%c1, %c0_44, %c0_45] : memref<2x384x192xbf16, #tpu.memory_space<vmem>>, vector<1x384x192xbf16>
    %75 = vector.shape_cast %74 : vector<1x384x192xbf16> to vector<384x192xbf16>
    %cst_46 = arith.constant dense<0.000000e+00> : vector<8x192xf32>
    %76 = tpu.matmul %29, %75, %cst_46 {dimension_numbers = #tpu.dot_dimension_numbers<[1], [0], [0], [1], [0, 0, 1, 1], [], []>} : vector<8x384xbf16>, vector<384x192xbf16>, vector<8x192xf32> -> vector<8x192xf32>
    %c1_47 = arith.constant 1 : index
    %c0_48 = arith.constant 0 : index
    %c0_49 = arith.constant 0 : index
    %77 = vector.load %arg8[%c1_47, %c0_48, %c0_49] : memref<2x1x192xf32, #tpu.memory_space<vmem>>, vector<1x1x192xf32>
    %78 = vector.shape_cast %77 : vector<1x1x192xf32> to vector<1x192xf32>
    %79 = vector.broadcast %78 : vector<1x192xf32> to vector<8x192xf32>
    %80 = arith.addf %76, %79 : vector<8x192xf32>
    %81 = arith.truncf %80 : vector<8x192xf32> to vector<8x192xbf16>
    %c1_50 = arith.constant 1 : index
    %c0_51 = arith.constant 0 : index
    %c0_52 = arith.constant 0 : index
    %82 = vector.load %arg6[%c1_50, %c0_51, %c0_52] : memref<2x384x192xbf16, #tpu.memory_space<vmem>>, vector<1x384x192xbf16>
    %83 = vector.shape_cast %82 : vector<1x384x192xbf16> to vector<384x192xbf16>
    %cst_53 = arith.constant dense<0.000000e+00> : vector<8x192xf32>
    %84 = tpu.matmul %29, %83, %cst_53 {dimension_numbers = #tpu.dot_dimension_numbers<[1], [0], [0], [1], [0, 0, 1, 1], [], []>} : vector<8x384xbf16>, vector<384x192xbf16>, vector<8x192xf32> -> vector<8x192xf32>
    %c1_54 = arith.constant 1 : index
    %c0_55 = arith.constant 0 : index
    %c0_56 = arith.constant 0 : index
    %85 = vector.load %arg9[%c1_54, %c0_55, %c0_56] : memref<2x1x192xf32, #tpu.memory_space<vmem>>, vector<1x1x192xf32>
    %86 = vector.shape_cast %85 : vector<1x1x192xf32> to vector<1x192xf32>
    %87 = vector.broadcast %86 : vector<1x192xf32> to vector<8x192xf32>
    %88 = arith.addf %84, %87 : vector<8x192xf32>
    %89 = arith.truncf %88 : vector<8x192xf32> to vector<8x192xbf16>
    %c1_57 = arith.constant 1 : index
    %c0_58 = arith.constant 0 : index
    %c0_59 = arith.constant 0 : index
    %90 = vector.load %arg7[%c1_57, %c0_58, %c0_59] : memref<2x384x192xbf16, #tpu.memory_space<vmem>>, vector<1x384x192xbf16>
    %91 = vector.shape_cast %90 : vector<1x384x192xbf16> to vector<384x192xbf16>
    %cst_60 = arith.constant dense<0.000000e+00> : vector<8x192xf32>
    %92 = tpu.matmul %29, %91, %cst_60 {dimension_numbers = #tpu.dot_dimension_numbers<[1], [0], [0], [1], [0, 0, 1, 1], [], []>} : vector<8x384xbf16>, vector<384x192xbf16>, vector<8x192xf32> -> vector<8x192xf32>
    %c1_61 = arith.constant 1 : index
    %c0_62 = arith.constant 0 : index
    %c0_63 = arith.constant 0 : index
    %93 = vector.load %arg10[%c1_61, %c0_62, %c0_63] : memref<2x1x192xf32, #tpu.memory_space<vmem>>, vector<1x1x192xf32>
    %94 = vector.shape_cast %93 : vector<1x1x192xf32> to vector<1x192xf32>
    %95 = vector.broadcast %94 : vector<1x192xf32> to vector<8x192xf32>
    %96 = arith.addf %92, %95 : vector<8x192xf32>
    %97 = arith.truncf %96 : vector<8x192xf32> to vector<8x192xbf16>
    %c1_64 = arith.constant 1 : index
    %c0_65 = arith.constant 0 : index
    %c0_66 = arith.constant 0 : index
    %98 = vector.load %arg11[%c1_64, %c0_65, %c0_66] : memref<2x192x384xbf16, #tpu.memory_space<vmem>>, vector<1x192x384xbf16>
    %99 = vector.shape_cast %98 : vector<1x192x384xbf16> to vector<192x384xbf16>
    %cst_67 = arith.constant dense<0.000000e+00> : vector<8x8xf32>
    %100 = tpu.matmul %81, %89, %cst_67 {dimension_numbers = #tpu.dot_dimension_numbers<[1], [1], [0], [0], [0, 0, 1, 0], [], []>} : vector<8x192xbf16>, vector<8x192xbf16>, vector<8x8xf32> -> vector<8x8xf32>
    %cst_68 = arith.constant 0.0721687824 : f32
    %101 = vector.broadcast %cst_68 : f32 to vector<8x8xf32>
    %102 = arith.mulf %100, %101 : vector<8x8xf32>
    %cst_69 = arith.constant dense<0xFF800000> : vector<8xf32>
    %103 = vector.multi_reduction <maximumf>, %102, %cst_69 [1] : vector<8x8xf32> to vector<8xf32>
    %104 = vector.shape_cast %103 : vector<8xf32> to vector<8x1xf32>
    %105 = vector.broadcast %104 : vector<8x1xf32> to vector<8x8xf32>
    %106 = arith.subf %102, %105 : vector<8x8xf32>
    %107 = math.exp %106 : vector<8x8xf32>
    %cst_70 = arith.constant dense<0.000000e+00> : vector<8xf32>
    %108 = vector.multi_reduction <add>, %107, %cst_70 [1] : vector<8x8xf32> to vector<8xf32>
    %109 = vector.shape_cast %108 : vector<8xf32> to vector<8x1xf32>
    %110 = arith.truncf %107 : vector<8x8xf32> to vector<8x8xbf16>
    %cst_71 = arith.constant dense<0.000000e+00> : vector<8x192xf32>
    %111 = tpu.matmul %110, %97, %cst_71 {dimension_numbers = #tpu.dot_dimension_numbers<[1], [0], [0], [1], [0, 0, 1, 1], [], []>} : vector<8x8xbf16>, vector<8x192xbf16>, vector<8x192xf32> -> vector<8x192xf32>
    %112 = vector.broadcast %109 : vector<8x1xf32> to vector<8x192xf32>
    %113 = arith.divf %111, %112 : vector<8x192xf32>
    %114 = arith.truncf %113 : vector<8x192xf32> to vector<8x192xbf16>
    %cst_72 = arith.constant dense<0.000000e+00> : vector<8x384xf32>
    %115 = tpu.matmul %114, %99, %cst_72 {dimension_numbers = #tpu.dot_dimension_numbers<[1], [0], [0], [1], [0, 0, 1, 1], [], []>} : vector<8x192xbf16>, vector<192x384xbf16>, vector<8x384xf32> -> vector<8x384xf32>
    %116 = arith.addf %73, %115 : vector<8x384xf32>
    %117 = arith.addf %4, %116 : vector<8x384xf32>
    %c0_73 = arith.constant 0 : index
    %c0_74 = arith.constant 0 : index
    %118 = vector.load %arg12[%c0_73, %c0_74] : memref<1x384xf32, #tpu.memory_space<vmem>>, vector<1x384xf32>
    %119 = vector.broadcast %118 : vector<1x384xf32> to vector<8x384xf32>
    %120 = arith.addf %117, %119 : vector<8x384xf32>
    %c0_75 = arith.constant 0 : index
    %c0_76 = arith.constant 0 : index
    %121 = vector.load %arg13[%c0_75, %c0_76] : memref<1x384xf32, #tpu.memory_space<vmem>>, vector<1x384xf32>
    %c0_77 = arith.constant 0 : index
    %c0_78 = arith.constant 0 : index
    %122 = vector.load %arg14[%c0_77, %c0_78] : memref<1x384xf32, #tpu.memory_space<vmem>>, vector<1x384xf32>
    %c0_79 = arith.constant 0 : index
    %c0_80 = arith.constant 0 : index
    %123 = vector.load %arg15[%c0_79, %c0_80] : memref<384x512xbf16, #tpu.memory_space<vmem>>, vector<384x512xbf16>
    %c0_81 = arith.constant 0 : index
    %c0_82 = arith.constant 0 : index
    %124 = vector.load %arg16[%c0_81, %c0_82] : memref<1x512xf32, #tpu.memory_space<vmem>>, vector<1x512xf32>
    %c0_83 = arith.constant 0 : index
    %c0_84 = arith.constant 0 : index
    %125 = vector.load %arg17[%c0_83, %c0_84] : memref<512x384xbf16, #tpu.memory_space<vmem>>, vector<512x384xbf16>
    %c0_85 = arith.constant 0 : index
    %c0_86 = arith.constant 0 : index
    %126 = vector.load %arg18[%c0_85, %c0_86] : memref<1x384xf32, #tpu.memory_space<vmem>>, vector<1x384xf32>
    %cst_87 = arith.constant dense<0.000000e+00> : vector<8xf32>
    %127 = vector.multi_reduction <add>, %120, %cst_87 [1] : vector<8x384xf32> to vector<8xf32>
    %128 = vector.shape_cast %127 : vector<8xf32> to vector<8x1xf32>
    %cst_88 = arith.constant 3.840000e+02 : f32
    %129 = vector.broadcast %cst_88 : f32 to vector<8x1xf32>
    %130 = arith.divf %128, %129 : vector<8x1xf32>
    %131 = vector.broadcast %130 : vector<8x1xf32> to vector<8x384xf32>
    %132 = arith.subf %120, %131 : vector<8x384xf32>
    %133 = arith.mulf %132, %132 : vector<8x384xf32>
    %cst_89 = arith.constant dense<0.000000e+00> : vector<8xf32>
    %134 = vector.multi_reduction <add>, %133, %cst_89 [1] : vector<8x384xf32> to vector<8xf32>
    %135 = vector.shape_cast %134 : vector<8xf32> to vector<8x1xf32>
    %cst_90 = arith.constant 3.840000e+02 : f32
    %136 = vector.broadcast %cst_90 : f32 to vector<8x1xf32>
    %137 = arith.divf %135, %136 : vector<8x1xf32>
    %138 = vector.broadcast %130 : vector<8x1xf32> to vector<8x384xf32>
    %139 = arith.subf %120, %138 : vector<8x384xf32>
    %cst_91 = arith.constant 9.99999974E-6 : f32
    %140 = vector.broadcast %cst_91 : f32 to vector<8x1xf32>
    %141 = arith.addf %137, %140 : vector<8x1xf32>
    %142 = math.rsqrt %141 : vector<8x1xf32>
    %143 = vector.broadcast %142 : vector<8x1xf32> to vector<8x384xf32>
    %144 = arith.mulf %139, %143 : vector<8x384xf32>
    %145 = vector.broadcast %121 : vector<1x384xf32> to vector<8x384xf32>
    %146 = arith.mulf %144, %145 : vector<8x384xf32>
    %147 = vector.broadcast %122 : vector<1x384xf32> to vector<8x384xf32>
    %148 = arith.addf %146, %147 : vector<8x384xf32>
    %149 = arith.truncf %148 : vector<8x384xf32> to vector<8x384xbf16>
    %cst_92 = arith.constant dense<0.000000e+00> : vector<8x512xf32>
    %150 = tpu.matmul %149, %123, %cst_92 {dimension_numbers = #tpu.dot_dimension_numbers<[1], [0], [0], [1], [0, 0, 1, 1], [], []>} : vector<8x384xbf16>, vector<384x512xbf16>, vector<8x512xf32> -> vector<8x512xf32>
    %151 = vector.broadcast %124 : vector<1x512xf32> to vector<8x512xf32>
    %152 = arith.addf %150, %151 : vector<8x512xf32>
    %cst_93 = arith.constant 0.000000e+00 : f32
    %153 = vector.broadcast %cst_93 : f32 to vector<8x512xf32>
    %154 = arith.maximumf %152, %153 : vector<8x512xf32>
    %155 = arith.truncf %154 : vector<8x512xf32> to vector<8x512xbf16>
    %cst_94 = arith.constant dense<0.000000e+00> : vector<8x384xf32>
    %156 = tpu.matmul %155, %125, %cst_94 {dimension_numbers = #tpu.dot_dimension_numbers<[1], [0], [0], [1], [0, 0, 1, 1], [], []>} : vector<8x512xbf16>, vector<512x384xbf16>, vector<8x384xf32> -> vector<8x384xf32>
    %157 = vector.broadcast %126 : vector<1x384xf32> to vector<8x384xf32>
    %158 = arith.addf %156, %157 : vector<8x384xf32>
    %159 = arith.addf %120, %158 : vector<8x384xf32>
    %c0_95 = arith.constant 0 : index
    %c0_96 = arith.constant 0 : index
    %c0_97 = arith.constant 0 : index
    %160 = vector.load %arg19[%c0_95, %c0_96, %c0_97] : memref<1x8x384xf32, #tpu.memory_space<vmem>>, vector<1x8x384xf32>
    %161 = vector.shape_cast %160 : vector<1x8x384xf32> to vector<8x384xf32>
    %162 = vector.shape_cast %159 : vector<8x384xf32> to vector<1x8x384xf32>
    tpu.vector_store %arg19[%c0_95, %c0_96, %c0_97], %162 {strides = array<i32>} : memref<1x8x384xf32, #tpu.memory_space<vmem>>, vector<1x8x384xf32>,
    return
  }
  func.func @transform_0(%arg0: i32) -> (i32, i32, i32) {
    %c0_i32 = arith.constant 0 : i32
    %c0_i32_0 = arith.constant 0 : i32
    %c0_i32_1 = arith.constant 0 : i32
    return %arg0, %c0_i32, %c0_i32_0 : i32, i32, i32
  }
  func.func @transform_1(%arg0: i32) -> (i32, i32, i32) {
    %c0_i32 = arith.constant 0 : i32
    %c0_i32_0 = arith.constant 0 : i32
    %c0_i32_1 = arith.constant 0 : i32
    %c0_i32_2 = arith.constant 0 : i32
    return %c0_i32, %c0_i32_0, %c0_i32_1 : i32, i32, i32
  }
  func.func @transform_2(%arg0: i32) -> (i32, i32) {
    %c0_i32 = arith.constant 0 : i32
    %c0_i32_0 = arith.constant 0 : i32
    %c0_i32_1 = arith.constant 0 : i32
    return %c0_i32, %c0_i32_0 : i32, i32
  }
  func.func @transform_3(%arg0: i32) -> (i32, i32) {
    %c0_i32 = arith.constant 0 : i32
    %c0_i32_0 = arith.constant 0 : i32
    %c0_i32_1 = arith.constant 0 : i32
    return %c0_i32, %c0_i32_0 : i32, i32
  }
  func.func @transform_4(%arg0: i32) -> (i32, i32, i32) {
    %c0_i32 = arith.constant 0 : i32
    %c0_i32_0 = arith.constant 0 : i32
    %c0_i32_1 = arith.constant 0 : i32
    %c0_i32_2 = arith.constant 0 : i32
    return %c0_i32, %c0_i32_0, %c0_i32_1 : i32, i32, i32
  }
  func.func @transform_5(%arg0: i32) -> (i32, i32, i32) {
    %c0_i32 = arith.constant 0 : i32
    %c0_i32_0 = arith.constant 0 : i32
    %c0_i32_1 = arith.constant 0 : i32
    %c0_i32_2 = arith.constant 0 : i32
    return %c0_i32, %c0_i32_0, %c0_i32_1 : i32, i32, i32
  }
  func.func @transform_6(%arg0: i32) -> (i32, i32, i32) {
    %c0_i32 = arith.constant 0 : i32
    %c0_i32_0 = arith.constant 0 : i32
    %c0_i32_1 = arith.constant 0 : i32
    %c0_i32_2 = arith.constant 0 : i32
    return %c0_i32, %c0_i32_0, %c0_i32_1 : i32, i32, i32
  }
  func.func @transform_7(%arg0: i32) -> (i32, i32, i32) {
    %c0_i32 = arith.constant 0 : i32
    %c0_i32_0 = arith.constant 0 : i32
    %c0_i32_1 = arith.constant 0 : i32
    %c0_i32_2 = arith.constant 0 : i32
    return %c0_i32, %c0_i32_0, %c0_i32_1 : i32, i32, i32
  }
  func.func @transform_8(%arg0: i32) -> (i32, i32, i32) {
    %c0_i32 = arith.constant 0 : i32
    %c0_i32_0 = arith.constant 0 : i32
    %c0_i32_1 = arith.constant 0 : i32
    %c0_i32_2 = arith.constant 0 : i32
    return %c0_i32, %c0_i32_0, %c0_i32_1 : i32, i32, i32
  }
  func.func @transform_9(%arg0: i32) -> (i32, i32, i32) {
    %c0_i32 = arith.constant 0 : i32
    %c0_i32_0 = arith.constant 0 : i32
    %c0_i32_1 = arith.constant 0 : i32
    %c0_i32_2 = arith.constant 0 : i32
    return %c0_i32, %c0_i32_0, %c0_i32_1 : i32, i32, i32
  }
  func.func @transform_10(%arg0: i32) -> (i32, i32, i32) {
    %c0_i32 = arith.constant 0 : i32
    %c0_i32_0 = arith.constant 0 : i32
    %c0_i32_1 = arith.constant 0 : i32
    %c0_i32_2 = arith.constant 0 : i32
    return %c0_i32, %c0_i32_0, %c0_i32_1 : i32, i32, i32
  }
  func.func @transform_11(%arg0: i32) -> (i32, i32) {
    %c0_i32 = arith.constant 0 : i32
    %c0_i32_0 = arith.constant 0 : i32
    %c0_i32_1 = arith.constant 0 : i32
    return %c0_i32, %c0_i32_0 : i32, i32
  }
  func.func @transform_12(%arg0: i32) -> (i32, i32) {
    %c0_i32 = arith.constant 0 : i32
    %c0_i32_0 = arith.constant 0 : i32
    %c0_i32_1 = arith.constant 0 : i32
    return %c0_i32, %c0_i32_0 : i32, i32
  }
  func.func @transform_13(%arg0: i32) -> (i32, i32) {
    %c0_i32 = arith.constant 0 : i32
    %c0_i32_0 = arith.constant 0 : i32
    %c0_i32_1 = arith.constant 0 : i32
    return %c0_i32, %c0_i32_0 : i32, i32
  }
  func.func @transform_14(%arg0: i32) -> (i32, i32) {
    %c0_i32 = arith.constant 0 : i32
    %c0_i32_0 = arith.constant 0 : i32
    %c0_i32_1 = arith.constant 0 : i32
    return %c0_i32, %c0_i32_0 : i32, i32
  }
  func.func @transform_15(%arg0: i32) -> (i32, i32) {
    %c0_i32 = arith.constant 0 : i32
    %c0_i32_0 = arith.constant 0 : i32
    %c0_i32_1 = arith.constant 0 : i32
    return %c0_i32, %c0_i32_0 : i32, i32
  }
  func.func @transform_16(%arg0: i32) -> (i32, i32) {
    %c0_i32 = arith.constant 0 : i32
    %c0_i32_0 = arith.constant 0 : i32
    %c0_i32_1 = arith.constant 0 : i32
    return %c0_i32, %c0_i32_0 : i32, i32
  }
  func.func @transform_17(%arg0: i32) -> (i32, i32) {
    %c0_i32 = arith.constant 0 : i32
    %c0_i32_0 = arith.constant 0 : i32
    %c0_i32_1 = arith.constant 0 : i32
    return %c0_i32, %c0_i32_0 : i32, i32
  }
  func.func @transform_18(%arg0: i32) -> (i32, i32, i32) {
    %c0_i32 = arith.constant 0 : i32
    %c0_i32_0 = arith.constant 0 : i32
    %c0_i32_1 = arith.constant 0 : i32
    return %arg0, %c0_i32, %c0_i32_0 : i32, i32, i32
  }
}

</mosaic_0001>

<bundles_post_ra>
// kernel: tpu_custom_call.1
= control target key start
LH: loop header
LB: loop body
LE: loop exit
PB: predicated region body
PF: predicated region fallthrough
CT: control target
= control target key end

     0   :  { %s12374_s0 = inlined_call_operand.vmem [shape: f32[2,8,384], index: 0, kind: input, shape index: {}]   ;;  %s12375_s1 = inlined_call_operand.vmem [shape: f32[1,8,384], index: 1, kind: input, shape index: {}]   ;;  %s12376_s2 = inlined_call_operand.vmem [shape: f32[1,384], index: 2, kind: input, shape index: {}]   ;;  %s12377_s3 = inlined_call_operand.vmem [shape: f32[1,384], index: 3, kind: input, shape index: {}]   ;;  %s12378_s4 = inlined_call_operand.vmem [shape: bf16[2,384,192], index: 4, kind: input, shape index: {}]   ;;  %s12379_s5 = inlined_call_operand.vmem [shape: bf16[2,384,192], index: 5, kind: input, shape index: {}]   ;;  %s12380_s6 = inlined_call_operand.vmem [shape: bf16[2,384,192], index: 6, kind: input, shape index: {}]   ;;  %s12381_s7 = inlined_call_operand.vmem [shape: f32[2,1,192], index: 7, kind: input, shape index: {}]   ;;  %s12382_s8 = inlined_call_operand.vmem [shape: f32[2,1,192], index: 8, kind: input, shape index: {}]   ;;  %s12383_s9 = inlined_call_operand.vmem [shape: f32[2,1,192], index: 9, kind: input, shape index: {}]   ;;  %s12384_s10 = inlined_call_operand.vmem [shape: bf16[2,192,384], index: 10, kind: input, shape index: {}]   ;;  %s12385_s11 = inlined_call_operand.vmem [shape: f32[1,384], index: 11, kind: input, shape index: {}]   ;;  %s12386_s12 = inlined_call_operand.vmem [shape: f32[1,384], index: 12, kind: input, shape index: {}]   ;;  %s12387_s13 = inlined_call_operand.vmem [shape: f32[1,384], index: 13, kind: input, shape index: {}]   ;;  %s12388_s14 = inlined_call_operand.vmem [shape: bf16[384,512], index: 14, kind: input, shape index: {}]   ;;  %s12389_s15 = inlined_call_operand.vmem [shape: f32[1,512], index: 15, kind: input, shape index: {}]   ;;  %s12390_s16 = inlined_call_operand.vmem [shape: bf16[512,384], index: 16, kind: input, shape index: {}]   ;;  %s12391_s17 = inlined_call_operand.vmem [shape: f32[1,384], index: 17, kind: input, shape index: {}]   ;;  %s12392_s18 = inlined_call_operand.hbm [shape: f32[2,8,384], index: 18, kind: output, shape index: {}]  }
   0x1   :  { %12402 = sst [smem:[#allocation12_spill]] %s12374_s0 }
   0x2   :  { %12403 = sst [smem:[#allocation13_spill]] %s12375_s1 }
   0x3   :  { %12404 = sst [smem:[#allocation14_spill]] %s12376_s2 }
   0x4   :  { %12405 = sst [smem:[#allocation15_spill]] %s12377_s3 }
   0x5   :  { %12406 = sst [smem:[#allocation16_spill]] %s12378_s4 }
   0x6   :  { %23 = vsyncpa [#allocation3], 0 }
   0x7   :  { %25 = vsyncpa [#allocation3 + $0x1], 0  ;;  %s8631_s27 = smov 0   ;;  %s8633_s28 = smov 0  }
   0x8   :  { %s8635_s29 = smov 0   ;;  %s8637_s30 = smov 0  }
   0x9 LB: > { %12407 = sst [smem:[#allocation5_spill]] %s8521_s27  ;;  %s8652_s0 = sadd.s32 4294967295, %s8533_s30   ;;  %s8533_s30 = sphi %s8637_s30, %s12427_s30   ;;  %s8529_s29 = sphi %s8635_s29, %s12429_s29   ;;  %s8525_s28 = sphi %s8633_s28, %s12431_s28   ;;  %s8521_s27 = sphi %s8631_s27, %s12430_s27  }
   0xa   : > { %12408 = sst [smem:[#allocation6_spill]] %s8529_s29  ;;  %s5439_s19 = sadd.s32 4294967294, %s8533_s30  }
   0xb   : > { %12409 = sst [smem:[#allocation7_spill]] %s8533_s30  ;;  %s8656_s1 = sadd.s32 1, %s8533_s30  }
   0xc   : > { %12410 = sst [smem:[#allocation8_spill]] %s8656_s1  ;;  %s421_s20 = sadd.s32 1, %s8529_s29 }
   0xd   : > { %s418_s21 = ssub.s32 %s8533_s30, %s8656_s1  ;;  %p431_p0 = scmp.ne.s32.totalorder %s8529_s29, %s8525_s28 }
   0xe   : > { %p419_p1 = scmp.eq.s32.totalorder %s418_s21, 0  ;;  %p432_p2 = scmp.eq.s32.totalorder %s8652_s0, 1 }
   0xf   : > { %p437_p3 = scmp.ne.s32.totalorder %s8525_s28, %s8521_s27  ;;  %p438_p4 = scmp.eq.s32.totalorder %s5439_s19, 1 }
  0x10   : > { %s8667_s22 = scalar_select %p419_p1, %s8529_s29, %s421_s20  }
  0x11   : > { %p8669_p5 = por %p432_p2, %p431_p0  ;;  %p8673_p6 = por %p438_p4, %p437_p3 }
  0x12   : > { %12411 = sst [smem:[#allocation9_spill]] %s8667_s22  ;;  %p5442_p7 = scmp.ge.s32.totalorder %s8533_s30, 1 }
  0x13   : > { %s12412_s2 = scalar_select %p8669_p5, 1, 0 }
  0x14   : > { %s12414_s23 = scalar_select %p8673_p6, 1, 0 }
  0x15   : > { %12413 = sst [smem:[#allocation10_spill]] %s12412_s2  ;;  %p515_p8 = scmp.lt.s32.totalorder %s8533_s30, 3 }
  0x16   : > { %12415 = sst [smem:[#allocation11_spill]] %s12414_s23 }
  0x17   : > { %p516_p9 = pnand %p5442_p7, %p515_p8 }
  0x18   : > { %p569_p10 = scmp.lt.s32.totalorder (!%p516_p9), %s8652_s0, 1  ;;  %s12416_s20 = sld [smem:[#allocation13_spill]] (!%p516_p9) }
  0x19   : > { %519 = sbr.rel (%p516_p9) target bundleno = 2171 (0x87b), region = 92  ;;  %s12417_s30 = sld [smem:[#allocation12_spill]] (!%p516_p9) }
  0x1a   : > { %s12418_s4 = sld [smem:[#allocation16_spill]] (!%p516_p9)  ;;  %s566_s1 = sand.u32 (!%p516_p9), 1, %s8525_s28  }
  0x1b   : > { %s12419_s23 = sld [smem:[#allocation14_spill]] (!%p516_p9)  ;;  %s8414_s22 = smul.u32 (!%p516_p9), 24, %s566_s1 }
  0x1c   : > { %s12420_s3 = sld [smem:[#allocation15_spill]] (!%p516_p9)  ;;  %s5364_s29 = scalar_lea.sflag (!%p516_p9), [#allocation3], %s566_s1 }
  0x1e   : > { %s570_s24 = scalar_select %p569_p10, %s8652_s0, 1  ;;  %v578_v0 = vld [vmem:[%s12416_s20] sm:$0xff]  ;;  %v579_v1 = vld [vmem:[%s12416_s20 + $0x8] sm:$0xff]  ;;  %v580_v2 = vld [vmem:[%s12416_s20 + $0x10] sm:$0xff]  ;;  %v8535_v11 = vmov 384.0   ;;  %vm1816_vm4 = vcmask 523264  }
  0x1f   : > { %8457 = vrcp.f32 %v8535_v11  ;;  %vm1864_vm5 = vcmask 1043456   ;;  %vm1850_vm6 = vcmask 64512  }
  0x20   : > { %s8415_s25 = smul.u32 24, %s570_s24  ;;  %v5502_v15 = vld [vmem:[%s12418_s4 + $0x70] sm:$0xf]  ;;  %v7877_v16 = vld [vmem:[%s12418_s4 + $0x74] sm:$0xf0]  ;;  %s8491_s24 = scalar_lea.hbm %s12392_s18, 48 }
  0x21   : > { %v5566_v17 = vld [vmem:[%s12418_s4 + $0xf0] sm:$0xf]  ;;  %v5503_v18 = vor.u32 %v7877_v16, %v5502_v15  ;;  %v7893_v19 = vld [vmem:[%s12418_s4 + $0xf4] sm:$0xf0]  ;;  %v7876_v24 = vld [vmem:[%s12418_s4 + $0x74] sm:$0xf] }
  0x22   : > { %s573_s2 = scalar_lea.vmem %s12417_s30, %s8415_s25  ;;  %v5630_v20 = vld [vmem:[%s12418_s4 + $0x170] sm:$0xf]  ;;  %v7909_v21 = vld [vmem:[%s12418_s4 + $0x174] sm:$0xf0]  ;;  %v5567_v22 = vor.u32 %v7893_v19, %v5566_v17  ;;  %v5504_v25 = vld [vmem:[%s12418_s4 + $0x78] sm:$0xf0] }
  0x23   : > { %v575_v3 = vld [vmem:[%s573_s2] sm:$0xff]  ;;  %v576_v4 = vld [vmem:[%s573_s2 + $0x8] sm:$0xff]  ;;  %v577_v5 = vld [vmem:[%s573_s2 + $0x10] sm:$0xff]  ;;  %v5631_v23 = vor.u32 %v7909_v21, %v5630_v20  ;;  %940 = vmatpush.bf16.msra.mxu0 %v5503_v18  ;;  %v5507_v27 = vor.u32 %v7876_v24, %v5504_v25  ;;  %s12333_s2 = scalar_lea.vmem [#allocation2], %s8414_s22 }
  0x24   : > { %v8693_v6 = vadd.f32 %v578_v0, %v575_v3  ;;  %v8695_v7 = vadd.f32 %v579_v1, %v576_v4  ;;  %v8697_v8 = vadd.f32 %v580_v2, %v577_v5  ;;  %v5494_v26 = vld [vmem:[%s12418_s4 + $0x60] sm:$0xf]  ;;  %v7875_v28 = vld [vmem:[%s12418_s4 + $0x64] sm:$0xf0]  ;;  %953 = vmatpush.bf16.msra.mxu1 %v5567_v22  ;;  %v7874_v35 = vld [vmem:[%s12418_s4 + $0x64] sm:$0xf] }
  0x25   : > { %v8702_v12 = vpop.eup %8457  ;;  %v5558_v29 = vld [vmem:[%s12418_s4 + $0xe0] sm:$0xf]  ;;  %v7891_v30 = vld [vmem:[%s12418_s4 + $0xe4] sm:$0xf0]  ;;  %966 = vmatpush.bf16.msra.mxu2 %v5631_v23  ;;  %v5495_v31 = vor.u32 %v7875_v28, %v5494_v26  ;;  %979 = vmatpush.bf16.msra.mxu3 %v5507_v27  ;;  %v5496_v37 = vld [vmem:[%s12418_s4 + $0x68] sm:$0xf0] }
  0x26   : > { %v586_v9 = vadd.f32 %v8695_v7, %v8693_v6  ;;  %v591_v13 = vmul.f32 384.0, %v8702_v12  ;;  %v5559_v32 = vor.u32 %v7891_v30, %v5558_v29  ;;  %v5622_v33 = vld [vmem:[%s12418_s4 + $0x160] sm:$0xf]  ;;  %v7907_v34 = vld [vmem:[%s12418_s4 + $0x164] sm:$0xf0]  ;;  %v5499_v40 = vor.u32 %v7874_v35, %v5496_v37  ;;  %s5377_s21 = sshll.u32 %s12333_s2, 4  ;;  %s5378_s21 = int_to_ptr.vmem [resolvable:$true] %s5377_s21 }
  0x27   : > { %v5623_v36 = vor.u32 %v7907_v34, %v5622_v33  ;;  %v5486_v38 = vld [vmem:[%s12418_s4 + $0x50] sm:$0xf]  ;;  %v7873_v39 = vld [vmem:[%s12418_s4 + $0x54] sm:$0xf0]  ;;  %941 = vmatpush.bf16.msra.mxu0 %v5495_v31  ;;  %v7872_v46 = vld [vmem:[%s12418_s4 + $0x54] sm:$0xf]  ;;  %vm595_vm0 = vweird.f32 %v8702_v12 }
  0x28   : > { %v587_v10 = vadd.f32 %v586_v9, %v8697_v8  ;;  %v592_v14 = vsub.f32 1.0, %v591_v13  ;;  %v5550_v41 = vld [vmem:[%s12418_s4 + $0xd0] sm:$0xf]  ;;  %v7889_v42 = vld [vmem:[%s12418_s4 + $0xd4] sm:$0xf0]  ;;  %v5487_v44 = vor.u32 %v7873_v39, %v5486_v38  ;;  %954 = vmatpush.bf16.msra.mxu1 %v5559_v32 }
  0x29   : > { %v5614_v43 = vld [vmem:[%s12418_s4 + $0x150] sm:$0xf]  ;;  %v7905_v45 = vld [vmem:[%s12418_s4 + $0x154] sm:$0xf0]  ;;  %v5488_v47 = vld [vmem:[%s12418_s4 + $0x58] sm:$0xf0]  ;;  %967 = vmatpush.bf16.msra.mxu2 %v5623_v36  ;;  %v5551_v48 = vor.u32 %v7889_v42, %v5550_v41  ;;  %980 = vmatpush.bf16.msra.mxu3 %v5499_v40 }
  0x2a   : > { %588 = vadd.xlane.f32.xlu0 %v587_v10  ;;  %v5615_v49 = vor.u32 %v7905_v45, %v5614_v43  ;;  %v5478_v50 = vld [vmem:[%s12418_s4 + $0x40] sm:$0xf]  ;;  %v7871_v51 = vld [vmem:[%s12418_s4 + $0x44] sm:$0xf0]  ;;  %v5491_v53 = vor.u32 %v7872_v46, %v5488_v47  ;;  %v7870_v57 = vld [vmem:[%s12418_s4 + $0x44] sm:$0xf]  ;;  %v593_v59 = vmul.f32 %v8702_v12, %v592_v14 }
  0x2b   : > { %v5542_v52 = vld [vmem:[%s12418_s4 + $0xc0] sm:$0xf]  ;;  %v7887_v54 = vld [vmem:[%s12418_s4 + $0xc4] sm:$0xf0]  ;;  %v5480_v58 = vld [vmem:[%s12418_s4 + $0x48] sm:$0xf0]  ;;  %942 = vmatpush.bf16.msra.mxu0 %v5487_v44  ;;  %v5479_v60 = vor.u32 %v7871_v51, %v5478_v50 }
  0x2c   : > { %v5606_v55 = vld [vmem:[%s12418_s4 + $0x140] sm:$0xf]  ;;  %v7903_v56 = vld [vmem:[%s12418_s4 + $0x144] sm:$0xf0]  ;;  %955 = vmatpush.bf16.msra.mxu1 %v5551_v48  ;;  %v5543_v61 = vor.u32 %v7887_v54, %v5542_v52  ;;  %v5470_v63 = vld [vmem:[%s12418_s4 + $0x30] sm:$0xf]  ;;  %v5483_v2 = vor.u32 %v7870_v57, %v5480_v58  ;;  %v594_v11 = vadd.f32 %v8702_v12, %v593_v59 }
  0x2d   : > { %968 = vmatpush.bf16.msra.mxu2 %v5615_v49  ;;  %v5607_v62 = vor.u32 %v7903_v56, %v5606_v55  ;;  %v7869_v0 = vld [vmem:[%s12418_s4 + $0x34] sm:$0xf0]  ;;  %v5534_v1 = vld [vmem:[%s12418_s4 + $0xb0] sm:$0xf]  ;;  %981 = vmatpush.bf16.msra.mxu3 %v5491_v53  ;;  %v7868_v9 = vld [vmem:[%s12418_s4 + $0x34] sm:$0xf] }
  0x2e   : > { %v7885_v3 = vld [vmem:[%s12418_s4 + $0xb4] sm:$0xf0]  ;;  %v5598_v4 = vld [vmem:[%s12418_s4 + $0x130] sm:$0xf]  ;;  %v5472_v10 = vld [vmem:[%s12418_s4 + $0x38] sm:$0xf0]  ;;  %v5471_v13 = vor.u32 %v7869_v0, %v5470_v63  ;;  %v8853_v25 = vsel %vm595_vm0, %v8702_v12, %v594_v11 }
  0x2f   : > { %v7901_v5 = vld [vmem:[%s12418_s4 + $0x134] sm:$0xf0]  ;;  %943 = vmatpush.bf16.msra.mxu0 %v5479_v60  ;;  %v5535_v14 = vor.u32 %v7885_v3, %v5534_v1  ;;  %v5462_v16 = vld [vmem:[%s12418_s4 + $0x20] sm:$0xf]  ;;  %v7867_v17 = vld [vmem:[%s12418_s4 + $0x24] sm:$0xf0]  ;;  %v5475_v19 = vor.u32 %v7868_v9, %v5472_v10 }
  0x30   : > { %956 = vmatpush.bf16.msra.mxu1 %v5543_v61  ;;  %v5599_v15 = vor.u32 %v7901_v5, %v5598_v4  ;;  %v5526_v18 = vld [vmem:[%s12418_s4 + $0xa0] sm:$0xf]  ;;  %v7883_v20 = vld [vmem:[%s12418_s4 + $0xa4] sm:$0xf0]  ;;  %v7866_v23 = vld [vmem:[%s12418_s4 + $0x24] sm:$0xf]  ;;  %v5463_v26 = vor.u32 %v7867_v17, %v5462_v16 }
  0x31   : > { %969 = vmatpush.bf16.msra.mxu2 %v5607_v62  ;;  %982 = vmatpush.bf16.msra.mxu3 %v5483_v2  ;;  %v5590_v21 = vld [vmem:[%s12418_s4 + $0x120] sm:$0xf]  ;;  %v7899_v22 = vld [vmem:[%s12418_s4 + $0x124] sm:$0xf0]  ;;  %v5464_v24 = vld [vmem:[%s12418_s4 + $0x28] sm:$0xf0]  ;;  %v5527_v30 = vor.u32 %v7883_v20, %v5526_v18 }
  0x32   : > { %v5454_v27 = vld [vmem:[%s12418_s4 + $0x10] sm:$0xf]  ;;  %v7865_v28 = vld [vmem:[%s12418_s4 + $0x14] sm:$0xf0]  ;;  %v5591_v31 = vor.u32 %v7899_v22, %v5590_v21  ;;  %v5467_v35 = vor.u32 %v7866_v23, %v5464_v24  ;;  %v7864_v37 = vld [vmem:[%s12418_s4 + $0x14] sm:$0xf] }
  0x33   : > { %944 = vmatpush.bf16.msra.mxu0 %v5471_v13  ;;  %v5518_v29 = vld [vmem:[%s12418_s4 + $0x90] sm:$0xf]  ;;  %v7881_v12 = vld [vmem:[%s12418_s4 + $0x94] sm:$0xf0]  ;;  %v5456_v38 = vld [vmem:[%s12418_s4 + $0x18] sm:$0xf0]  ;;  %v5455_v39 = vor.u32 %v7865_v28, %v5454_v27 }
  0x34   : > { %957 = vmatpush.bf16.msra.mxu1 %v5535_v14  ;;  %v5582_v32 = vld [vmem:[%s12418_s4 + $0x110] sm:$0xf]  ;;  %v7897_v33 = vld [vmem:[%s12418_s4 + $0x114] sm:$0xf0]  ;;  %v5519_v40 = vor.u32 %v7881_v12, %v5518_v29  ;;  %v5459_v45 = vor.u32 %v7864_v37, %v5456_v38  ;;  %v5446_v51 = vld [vmem:[%s12418_s4] sm:$0xf] }
  0x35   : > { %970 = vmatpush.bf16.msra.mxu2 %v5599_v15  ;;  %983 = vmatpush.bf16.msra.mxu3 %v5475_v19  ;;  %v5583_v41 = vor.u32 %v7897_v33, %v5582_v32  ;;  %v7863_v52 = vld [vmem:[%s12418_s4 + $0x4] sm:$0xf0]  ;;  %v5510_v53 = vld [vmem:[%s12418_s4 + $0x80] sm:$0xf]  ;;  %v7862_v60 = vld [vmem:[%s12418_s4 + $0x4] sm:$0xf] }
  0x36   : > { %v5447_v54 = vor.u32 %v7863_v52, %v5446_v51  ;;  %v7879_v55 = vld [vmem:[%s12418_s4 + $0x84] sm:$0xf0]  ;;  %v5574_v56 = vld [vmem:[%s12418_s4 + $0x100] sm:$0xf]  ;;  %v5448_v61 = vld [vmem:[%s12418_s4 + $0x8] sm:$0xf0] }
  0x37   : > { %945 = vmatpush.bf16.msra.mxu0 %v5463_v26  ;;  %v7895_v57 = vld [vmem:[%s12418_s4 + $0x104] sm:$0xf0]  ;;  %v5511_v58 = vor.u32 %v7879_v55, %v5510_v53  ;;  %v7892_v62 = vld [vmem:[%s12418_s4 + $0xf4] sm:$0xf]  ;;  %v5451_v63 = vor.u32 %v7862_v60, %v5448_v61  ;;  %v5568_v0 = vld [vmem:[%s12418_s4 + $0xf8] sm:$0xf0] }
  0x38   : > { %958 = vmatpush.bf16.msra.mxu1 %v5527_v30  ;;  %v5575_v59 = vor.u32 %v7895_v57, %v5574_v56  ;;  %v7908_v1 = vld [vmem:[%s12418_s4 + $0x174] sm:$0xf]  ;;  %v5632_v2 = vld [vmem:[%s12418_s4 + $0x178] sm:$0xf0]  ;;  %v5571_v3 = vor.u32 %v7892_v62, %v5568_v0  ;;  %v5694_v5 = vld [vmem:[%s12379_s5 + $0x70] sm:$0xf] }
  0x39   : > { %971 = vmatpush.bf16.msra.mxu2 %v5591_v31  ;;  %984 = vmatpush.bf16.msra.mxu3 %v5467_v35  ;;  %v5635_v4 = vor.u32 %v7908_v1, %v5632_v2  ;;  %v7925_v9 = vld [vmem:[%s12379_s5 + $0x74] sm:$0xf0]  ;;  %v5758_v10 = vld [vmem:[%s12379_s5 + $0xf0] sm:$0xf]  ;;  %v7890_v14 = vld [vmem:[%s12418_s4 + $0xe4] sm:$0xf] }
  0x3a   : > { %v5695_v11 = vor.u32 %v7925_v9, %v5694_v5  ;;  %v7941_v13 = vld [vmem:[%s12379_s5 + $0xf4] sm:$0xf0]  ;;  %v5560_v15 = vld [vmem:[%s12418_s4 + $0xe8] sm:$0xf0]  ;;  %v7906_v18 = vld [vmem:[%s12418_s4 + $0x164] sm:$0xf] }
  0x3b   : > { %946 = vmatpush.bf16.msra.mxu0 %v5455_v39  ;;  %v5759_v16 = vor.u32 %v7941_v13, %v5758_v10  ;;  %v5563_v17 = vor.u32 %v7890_v14, %v5560_v15  ;;  %v5624_v19 = vld [vmem:[%s12418_s4 + $0x168] sm:$0xf0]  ;;  %v5686_v20 = vld [vmem:[%s12379_s5 + $0x60] sm:$0xf]  ;;  %v7923_v22 = vld [vmem:[%s12379_s5 + $0x64] sm:$0xf0] }
  0x3c   : > { %959 = vmatpush.bf16.msra.mxu1 %v5519_v40  ;;  %v5627_v21 = vor.u32 %v7906_v18, %v5624_v19  ;;  %v5750_v23 = vld [vmem:[%s12379_s5 + $0xe0] sm:$0xf]  ;;  %v7939_v24 = vld [vmem:[%s12379_s5 + $0xe4] sm:$0xf0]  ;;  %v5687_v26 = vor.u32 %v7923_v22, %v5686_v20  ;;  %v7888_v28 = vld [vmem:[%s12418_s4 + $0xd4] sm:$0xf] }
  0x3d   : > { %972 = vmatpush.bf16.msra.mxu2 %v5583_v41  ;;  %985 = vmatpush.bf16.msra.mxu3 %v5459_v45  ;;  %v5751_v27 = vor.u32 %v7939_v24, %v5750_v23  ;;  %v5552_v29 = vld [vmem:[%s12418_s4 + $0xd8] sm:$0xf0]  ;;  %v7904_v30 = vld [vmem:[%s12418_s4 + $0x154] sm:$0xf]  ;;  %v5678_v32 = vld [vmem:[%s12379_s5 + $0x50] sm:$0xf] }
  0x3e   : > { %v5555_v31 = vor.u32 %v7888_v28, %v5552_v29  ;;  %v5616_v12 = vld [vmem:[%s12418_s4 + $0x158] sm:$0xf0]  ;;  %v7921_v33 = vld [vmem:[%s12379_s5 + $0x54] sm:$0xf0]  ;;  %v7886_v39 = vld [vmem:[%s12418_s4 + $0xc4] sm:$0xf] }
  0x3f   : > { %947 = vmatpush.bf16.msra.mxu0 %v5447_v54  ;;  %v5679_v35 = vor.u32 %v7921_v33, %v5678_v32  ;;  %v7937_v37 = vld [vmem:[%s12379_s5 + $0xd4] sm:$0xf0]  ;;  %v5544_v40 = vld [vmem:[%s12418_s4 + $0xc8] sm:$0xf0]  ;;  %v7902_v41 = vld [vmem:[%s12418_s4 + $0x144] sm:$0xf] }
  0x40   : > { %960 = vmatpush.bf16.msra.mxu1 %v5511_v58  ;;  %v5547_v45 = vor.u32 %v7886_v39, %v5544_v40  ;;  %v5734_v51 = vld [vmem:[%s12379_s5 + $0xc0] sm:$0xf]  ;;  %v7935_v52 = vld [vmem:[%s12379_s5 + $0xc4] sm:$0xf0]  ;;  %v7884_v54 = vld [vmem:[%s12418_s4 + $0xb4] sm:$0xf] }
  0x41   : > { %973 = vmatpush.bf16.msra.mxu2 %v5575_v59  ;;  %986 = vmatpush.bf16.msra.mxu3 %v5451_v63  ;;  %v5735_v53 = vor.u32 %v7935_v52, %v5734_v51  ;;  %v5536_v55 = vld [vmem:[%s12418_s4 + $0xb8] sm:$0xf0]  ;;  %v7900_v56 = vld [vmem:[%s12418_s4 + $0x134] sm:$0xf]  ;;  %v5662_v59 = vld [vmem:[%s12379_s5 + $0x30] sm:$0xf] }
  0x42   : > { %v5539_v57 = vor.u32 %v7884_v54, %v5536_v55  ;;  %v5600_v58 = vld [vmem:[%s12418_s4 + $0x138] sm:$0xf0]  ;;  %v7917_v60 = vld [vmem:[%s12379_s5 + $0x34] sm:$0xf0]  ;;  %v5726_v63 = vld [vmem:[%s12379_s5 + $0xb0] sm:$0xf] }
  0x43   : > { %992 = vmatpush.bf16.msrb.mxu0 %v5571_v3  ;;  %v5603_v61 = vor.u32 %v7900_v56, %v5600_v58  ;;  %v5663_v62 = vor.u32 %v7917_v60, %v5662_v59  ;;  %v7933_v0 = vld [vmem:[%s12379_s5 + $0xb4] sm:$0xf0]  ;;  %v7882_v2 = vld [vmem:[%s12418_s4 + $0xa4] sm:$0xf]  ;;  %v5528_v3 = vld [vmem:[%s12418_s4 + $0xa8] sm:$0xf0] }
  0x44   : > { %1005 = vmatpush.bf16.msrb.mxu1 %v5635_v4  ;;  %v5727_v1 = vor.u32 %v7933_v0, %v5726_v63  ;;  %v7898_v4 = vld [vmem:[%s12418_s4 + $0x124] sm:$0xf]  ;;  %v5531_v5 = vor.u32 %v7882_v2, %v5528_v3  ;;  %v5592_v9 = vld [vmem:[%s12418_s4 + $0x128] sm:$0xf0]  ;;  %v5654_v10 = vld [vmem:[%s12379_s5 + $0x20] sm:$0xf] }
  0x45   : > { %1314 = vmatpush.bf16.msrb.mxu2 %v5695_v11  ;;  %1327 = vmatpush.bf16.msrb.mxu3 %v5759_v16  ;;  %v7915_v11 = vld [vmem:[%s12379_s5 + $0x24] sm:$0xf0]  ;;  %v5595_v13 = vor.u32 %v7898_v4, %v5592_v9  ;;  %v5718_v15 = vld [vmem:[%s12379_s5 + $0xa0] sm:$0xf]  ;;  %v7880_v18 = vld [vmem:[%s12418_s4 + $0x94] sm:$0xf] }
  0x46   : > { %v5655_v14 = vor.u32 %v7915_v11, %v5654_v10  ;;  %v7931_v16 = vld [vmem:[%s12379_s5 + $0xa4] sm:$0xf0]  ;;  %v5520_v19 = vld [vmem:[%s12418_s4 + $0x98] sm:$0xf0]  ;;  %v7896_v20 = vld [vmem:[%s12418_s4 + $0x114] sm:$0xf] }
  0x47   : > { %993 = vmatpush.bf16.msrb.mxu0 %v5563_v17  ;;  %v5719_v17 = vor.u32 %v7931_v16, %v5718_v15  ;;  %v5584_v22 = vld [vmem:[%s12418_s4 + $0x118] sm:$0xf0]  ;;  %v5646_v23 = vld [vmem:[%s12379_s5 + $0x10] sm:$0xf]  ;;  %v7913_v24 = vld [vmem:[%s12379_s5 + $0x14] sm:$0xf0] }
  0x48   : > { %1006 = vmatpush.bf16.msrb.mxu1 %v5627_v21  ;;  %v5523_v21 = vor.u32 %v7880_v18, %v5520_v19  ;;  %v5710_v28 = vld [vmem:[%s12379_s5 + $0x90] sm:$0xf]  ;;  %v7929_v29 = vld [vmem:[%s12379_s5 + $0x94] sm:$0xf0]  ;;  %v7894_v32 = vld [vmem:[%s12418_s4 + $0x104] sm:$0xf] }
  0x49   : > { %1315 = vmatpush.bf16.msrb.mxu2 %v5687_v26  ;;  %1328 = vmatpush.bf16.msrb.mxu3 %v5751_v27  ;;  %v5587_v26 = vor.u32 %v7896_v20, %v5584_v22  ;;  %v5647_v27 = vor.u32 %v7913_v24, %v5646_v23  ;;  %v5702_v39 = vld [vmem:[%s12379_s5 + $0x80] sm:$0xf]  ;;  %v7927_v40 = vld [vmem:[%s12379_s5 + $0x84] sm:$0xf0]  ;;  %v7957_v9 = vld [vmem:[%s12379_s5 + $0x174] sm:$0xf0] }
  0x4a   : > { %v584_v52 = vld [vmem:[%s12419_s23] sm:$0x7]  ;;  %v7924_v10 = vld [vmem:[%s12379_s5 + $0x74] sm:$0xf]  ;;  %v5824_v16 = vld [vmem:[%s12379_s5 + $0x178] sm:$0xf0] }
  0x4b   : > { %994 = vmatpush.bf16.msrb.mxu0 %v5555_v31  ;;  %v7878_v31 = vld [vmem:[%s12418_s4 + $0x84] sm:$0xf]  ;;  %v585_v54 = vld [vmem:[%s12420_s3] sm:$0x7]  ;;  %v624_v56 = vperm.slane %v584_v52, 0  ;;  %v626_v58 = vperm.slane %v584_v52, 2 }
  0x4c   : > { %v634_v59 = vperm.slane %v585_v54, 0  ;;  %v635_v60 = vperm.slane %v585_v54, 1  ;;  %v7956_v15 = vld [vmem:[%s12379_s5 + $0x174] sm:$0xf]  ;;  %v5814_v22 = vld [vmem:[%s12379_s5 + $0x160] sm:$0xf] }
  0x4d   : > { %1316 = vmatpush.bf16.msrb.mxu2 %v5679_v35  ;;  %v5638_v35 = vld [vmem:[%s12379_s5] sm:$0xf]  ;;  %v7955_v23 = vld [vmem:[%s12379_s5 + $0x164] sm:$0xf0]  ;;  %s8416_s23 = smul.u32 24, %s8652_s0 }
  0x4f   : > { %995 = vmatpush.bf16.msrb.mxu0 %v5547_v45  ;;  %s5375_s19 = scalar_lea.hbm %s12392_s18, %s8416_s23 }
  0x50   : > { %s5379_s27 = sshll.u32 %s5375_s19, 4  ;;  %s5380_s27 = int_to_ptr.hbm [resolvable:$true] %s5379_s27 }
  0x51   : > { %s8485_s0 = sshra.s32 %s5380_s27, 4  ;;  %s8486_s0 = int_to_ptr.hbm [resolvable:$true] %s8485_s0 }
  0x52   : > { %s8487_s30 = scalar_lea.hbm %s8486_s0, 24  ;;  %p8492_p0 = scmp.lt.s32.totalorder %s8486_s0, %s12392_s18 }
  0x53   : > { %996 = vmatpush.bf16.msrb.mxu0 %v5539_v57  ;;  %v625_v57 = vperm.slane %v584_v52, 1  ;;  %p8488_p11 = scmp.ne.s32.totalorder %s8486_s0, %s8487_s30  ;;  %p8493_p1 = scmp.lt.s32.totalorder %s8491_s24, %s8487_s30 }
  0x55   : > { %p8489_p12 = pnand %p8488_p11, %p8669_p5  ;;  %p8494_p2 = por %p8493_p1, %p8492_p0 }
  0x57   : > { %997 = vmatpush.bf16.msrb.mxu0 %v5531_v5  ;;  %v5822_v5 = vld [vmem:[%s12379_s5 + $0x170] sm:$0xf]  ;;  %p8490_p13 = pneg %p8489_p12 }
  0x59   : > { %p8495_p3 = pnand %p8494_p2, %p8490_p13 }
  0x5b   : > { %998 = vmatpush.bf16.msrb.mxu0 %v5523_v21 }
  0x9d   : > { %v589_v34 = vpop.xlane.xlu0 %588 }
  0x9e   : > { %v597_v36 = vmul.f32 %v8853_v25, %v589_v34  ;;  %v5619_v34 = vor.u32 %v7904_v30, %v5616_v12  ;;  %v5711_v30 = vor.u32 %v7929_v29, %v5710_v28  ;;  %v5512_v12 = vld [vmem:[%s12418_s4 + $0x88] sm:$0xf0]  ;;  %v7938_v29 = vld [vmem:[%s12379_s5 + $0xe4] sm:$0xf] }
  0x9f   : > { %v5515_v33 = vor.u32 %v7878_v31, %v5512_v12  ;;  %v5688_v28 = vld [vmem:[%s12379_s5 + $0x68] sm:$0xf0]  ;;  %v7954_v31 = vld [vmem:[%s12379_s5 + $0x164] sm:$0xf] }
  0xa0   : > { %v8881_v42 = vsub.f32 %v8693_v6, %v597_v36  ;;  %v8884_v43 = vsub.f32 %v8695_v7, %v597_v36  ;;  %v8887_v44 = vsub.f32 %v8697_v8, %v597_v36  ;;  %v5742_v36 = vld [vmem:[%s12379_s5 + $0xd0] sm:$0xf]  ;;  %1007 = vmatpush.bf16.msrb.mxu1 %v5619_v34  ;;  %v5576_v34 = vld [vmem:[%s12418_s4 + $0x108] sm:$0xf0] }
  0xa1   : > { %v5743_v38 = vor.u32 %v7937_v37, %v5742_v36  ;;  %v7911_v36 = vld [vmem:[%s12379_s5 + $0x4] sm:$0xf0]  ;;  %v5579_v37 = vor.u32 %v7894_v32, %v5576_v34  ;;  %999 = vmatpush.bf16.msrb.mxu0 %v5515_v33  ;;  %v5816_v12 = vld [vmem:[%s12379_s5 + $0x168] sm:$0xf0]  ;;  %v5815_v32 = vor.u32 %v7955_v23, %v5814_v22  ;;  %v5806_v34 = vld [vmem:[%s12379_s5 + $0x150] sm:$0xf] }
  0xa2   : > { %v601_v46 = vmul.f32 %v8881_v42, %v8881_v42  ;;  %v602_v47 = vmul.f32 %v8884_v43, %v8884_v43  ;;  %v603_v48 = vmul.f32 %v8887_v44, %v8887_v44  ;;  %v5784_v22 = vld [vmem:[%s12379_s5 + $0x128] sm:$0xf0] }
  0xa3   : > { %1329 = vmatpush.bf16.msrb.mxu3 %v5743_v38  ;;  %v5639_v38 = vor.u32 %v7911_v36, %v5638_v35  ;;  %v7953_v35 = vld [vmem:[%s12379_s5 + $0x154] sm:$0xf0] }
  0xa4   : > { %v604_v49 = vadd.f32 %v602_v47, %v601_v46  ;;  %v5608_v46 = vld [vmem:[%s12418_s4 + $0x148] sm:$0xf0]  ;;  %v5670_v47 = vld [vmem:[%s12379_s5 + $0x40] sm:$0xf] }
  0xa6   : > { %v605_v50 = vadd.f32 %v604_v49, %v603_v48  ;;  %v7919_v48 = vld [vmem:[%s12379_s5 + $0x44] sm:$0xf0]  ;;  %v5611_v49 = vor.u32 %v7902_v41, %v5608_v46  ;;  %v5703_v41 = vor.u32 %v7927_v40, %v5702_v39  ;;  %v5680_v39 = vld [vmem:[%s12379_s5 + $0x58] sm:$0xf0]  ;;  %v7936_v40 = vld [vmem:[%s12379_s5 + $0xd4] sm:$0xf] }
  0xa7   : > { %1330 = vmatpush.bf16.msrb.mxu3 %v5735_v53 }
  0xa8   : > { %606 = vadd.xlane.f32.xlu0 %v605_v50  ;;  %v5671_v50 = vor.u32 %v7919_v48, %v5670_v47  ;;  %1008 = vmatpush.bf16.msrb.mxu1 %v5611_v49 }
  0xaa   : > { %1317 = vmatpush.bf16.msrb.mxu2 %v5671_v50 }
  0xab   : > { %1331 = vmatpush.bf16.msrb.mxu3 %v5727_v1 }
  0xac   : > { %1009 = vmatpush.bf16.msrb.mxu1 %v5603_v61 }
  0xae   : > { %1318 = vmatpush.bf16.msrb.mxu2 %v5663_v62  ;;  %v636_v62 = vperm.slane %v585_v54, 2  ;;  %v5672_v54 = vld [vmem:[%s12379_s5 + $0x48] sm:$0xf0] }
  0xaf   : > { %1332 = vmatpush.bf16.msrb.mxu3 %v5719_v17  ;;  %v5823_v17 = vor.u32 %v7957_v9, %v5822_v5  ;;  %v7948_v5 = vld [vmem:[%s12379_s5 + $0x134] sm:$0xf]  ;;  %v5792_v9 = vld [vmem:[%s12379_s5 + $0x138] sm:$0xf0] }
  0xb0   : > { %1010 = vmatpush.bf16.msrb.mxu1 %v5595_v13 }
  0xb2   : > { %1319 = vmatpush.bf16.msrb.mxu2 %v5655_v14  ;;  %v5760_v14 = vld [vmem:[%s12379_s5 + $0xf8] sm:$0xf0] }
  0xb3   : > { %1333 = vmatpush.bf16.msrb.mxu3 %v5711_v30  ;;  %v5752_v30 = vld [vmem:[%s12379_s5 + $0xe8] sm:$0xf0] }
  0xb4   : > { %1011 = vmatpush.bf16.msrb.mxu1 %v5587_v26  ;;  %v5827_v26 = vor.u32 %v7956_v15, %v5824_v16  ;;  %v5755_v36 = vor.u32 %v7938_v29, %v5752_v30  ;;  %v5656_v15 = vld [vmem:[%s12379_s5 + $0x28] sm:$0xf0]  ;;  %v7930_v16 = vld [vmem:[%s12379_s5 + $0xa4] sm:$0xf]  ;;  %v7912_v30 = vld [vmem:[%s12379_s5 + $0x14] sm:$0xf] }
  0xb6   : > { %1320 = vmatpush.bf16.msrb.mxu2 %v5647_v27  ;;  %v7922_v27 = vld [vmem:[%s12379_s5 + $0x64] sm:$0xf] }
  0xb7   : > { %1334 = vmatpush.bf16.msrb.mxu3 %v5703_v41  ;;  %v5691_v33 = vor.u32 %v7922_v27, %v5688_v28  ;;  %v5744_v41 = vld [vmem:[%s12379_s5 + $0xd8] sm:$0xf0]  ;;  %v7945_v27 = vld [vmem:[%s12379_s5 + $0x114] sm:$0xf0] }
  0xb8   : > { %1012 = vmatpush.bf16.msrb.mxu1 %v5579_v37  ;;  %v5819_v37 = vor.u32 %v7954_v31, %v5816_v12  ;;  %v5648_v31 = vld [vmem:[%s12379_s5 + $0x18] sm:$0xf0]  ;;  %v7928_v12 = vld [vmem:[%s12379_s5 + $0x94] sm:$0xf] }
  0xba   : > { %1321 = vmatpush.bf16.msrb.mxu2 %v5639_v38  ;;  %v7920_v38 = vld [vmem:[%s12379_s5 + $0x54] sm:$0xf] }
 0x11b   : > { %v607_v45 = vpop.xlane.xlu0 %606 }
 0x11c   : > { %v608_v46 = vmul.f32 %v607_v45, %v8853_v25  ;;  %v7952_v45 = vld [vmem:[%s12379_s5 + $0x154] sm:$0xf] }
 0x11e   : > { %v609_v47 = vadd.f32 1e-05, %v608_v46  ;;  %v5808_v46 = vld [vmem:[%s12379_s5 + $0x158] sm:$0xf0] }
 0x11f   : > { %v5811_v52 = vor.u32 %v7952_v45, %v5808_v46  ;;  %v7926_v46 = vld [vmem:[%s12379_s5 + $0x84] sm:$0xf] }
 0x120   : > { %8459 = vrsqrt.f32 %v609_v47  ;;  %vm616_vm2 = vweird.f32 %v609_v47 }
 0x126   : > { %v8460_v48 = vpop.eup %8459 }
 0x127   : > { %v611_v49 = vmul.f32 %v8460_v48, %v609_v47  ;;  %vm617_vm1 = vweird.f32 %v8460_v48  ;;  %v5807_v47 = vor.u32 %v7953_v35, %v5806_v34  ;;  %v5776_v34 = vld [vmem:[%s12379_s5 + $0x118] sm:$0xf0]  ;;  %v5766_v35 = vld [vmem:[%s12379_s5 + $0x100] sm:$0xf] }
 0x128   : > { %vm618_vm3 = vmor %vm616_vm2, %vm617_vm1 }
 0x129   : > { %v612_v50 = vmul.f32 %v8460_v48, %v611_v49  ;;  %v5798_v49 = vld [vmem:[%s12379_s5 + $0x140] sm:$0xf] }
 0x12b   : > { %v613_v51 = vmul.f32 0.5, %v612_v50  ;;  %v7951_v50 = vld [vmem:[%s12379_s5 + $0x144] sm:$0xf0] }
 0x12d   : > { %v614_v53 = vsub.f32 1.5, %v613_v51  ;;  %v5747_v51 = vor.u32 %v7936_v40, %v5744_v41  ;;  %v5640_v40 = vld [vmem:[%s12379_s5 + $0x8] sm:$0xf0] }
 0x12f   : > { %v615_v55 = vmul.f32 %v8460_v48, %v614_v53  ;;  %v7918_v53 = vld [vmem:[%s12379_s5 + $0x44] sm:$0xf] }
 0x131   : > { %v619_v61 = vsel %vm618_vm3, %v8460_v48, %v615_v55  ;;  %v5683_v48 = vor.u32 %v7920_v38, %v5680_v39  ;;  %v7934_v55 = vld [vmem:[%s12379_s5 + $0xc4] sm:$0xf]  ;;  %v7943_v38 = vld [vmem:[%s12379_s5 + $0x104] sm:$0xf0] }
 0x132   : > { %v620_v63 = vmul.f32 %v619_v61, %v8881_v42  ;;  %v621_v0 = vmul.f32 %v619_v61, %v8884_v43  ;;  %v622_v1 = vmul.f32 %v619_v61, %v8887_v44  ;;  %v5696_v42 = vld [vmem:[%s12379_s5 + $0x78] sm:$0xf0]  ;;  %v7940_v43 = vld [vmem:[%s12379_s5 + $0xf4] sm:$0xf]  ;;  %v5790_v61 = vld [vmem:[%s12379_s5 + $0x130] sm:$0xf] }
 0x133   : > { %v5699_v21 = vor.u32 %v7924_v10, %v5696_v42  ;;  %v5763_v24 = vor.u32 %v7940_v43, %v5760_v14  ;;  %v5782_v43 = vld [vmem:[%s12379_s5 + $0x120] sm:$0xf]  ;;  %v7914_v14 = vld [vmem:[%s12379_s5 + $0x24] sm:$0xf] }
 0x134   : > { %v630_v2 = vmul.f32 %v624_v56, %v620_v63  ;;  %v631_v3 = vmul.f32 %v625_v57, %v621_v0  ;;  %v632_v4 = vmul.f32 %v626_v58, %v622_v1  ;;  %v5736_v56 = vld [vmem:[%s12379_s5 + $0xc8] sm:$0xf0]  ;;  %v7950_v57 = vld [vmem:[%s12379_s5 + $0x144] sm:$0xf]  ;;  %v7916_v1 = vld [vmem:[%s12379_s5 + $0x34] sm:$0xf] }
 0x135   : > { %v5800_v58 = vld [vmem:[%s12379_s5 + $0x148] sm:$0xf0]  ;;  %v5739_v63 = vor.u32 %v7934_v55, %v5736_v56  ;;  %v7910_v39 = vld [vmem:[%s12379_s5 + $0x4] sm:$0xf]  ;;  %v5767_v55 = vor.u32 %v7943_v38, %v5766_v35  ;;  %v7999_v35 = vld [vmem:[%s12380_s6 + $0x144] sm:$0xf0] }
 0x136   : > { %v640_v44 = vadd.f32 %v634_v59, %v630_v2  ;;  %v641_v11 = vadd.f32 %v635_v60, %v631_v3  ;;  %v642_v13 = vadd.f32 %v636_v62, %v632_v4  ;;  %v5799_v59 = vor.u32 %v7951_v50, %v5798_v49  ;;  %v7949_v62 = vld [vmem:[%s12379_s5 + $0x134] sm:$0xf0]  ;;  %v5664_v2 = vld [vmem:[%s12379_s5 + $0x38] sm:$0xf0]  ;;  %v7932_v3 = vld [vmem:[%s12379_s5 + $0xb4] sm:$0xf] }
 0x137   : > { %v5675_v60 = vor.u32 %v7918_v53, %v5672_v54  ;;  %v5803_v0 = vor.u32 %v7950_v57, %v5800_v58  ;;  %v5728_v4 = vld [vmem:[%s12379_s5 + $0xb8] sm:$0xf0]  ;;  %v5791_v10 = vor.u32 %v7949_v62, %v5790_v61  ;;  %v5667_v42 = vor.u32 %v7916_v1, %v5664_v2  ;;  %v5768_v49 = vld [vmem:[%s12379_s5 + $0x108] sm:$0xf0]  ;;  %v5886_v50 = vld [vmem:[%s12380_s6 + $0x70] sm:$0xf] }
 0x138   : > { %v9145_v18 = vpack.c.bf16 %v640_v44, %v640_v44  ;;  %v9147_v19 = vpack.c.bf16 %v641_v11, %v641_v11  ;;  %v9149_v20 = vpack.c.bf16 %v642_v13, %v642_v13  ;;  %v7947_v44 = vld [vmem:[%s12379_s5 + $0x124] sm:$0xf0]  ;;  %v5731_v11 = vor.u32 %v7932_v3, %v5728_v4  ;;  %v7989_v53 = vld [vmem:[%s12380_s6 + $0xf4] sm:$0xf0]  ;;  %v6014_v54 = vld [vmem:[%s12380_s6 + $0x170] sm:$0xf] }
 0x139   : > { %v5795_v13 = vor.u32 %v7948_v5, %v5792_v9  ;;  %v5783_v23 = vor.u32 %v7947_v44, %v5782_v43  ;;  %v5643_v56 = vor.u32 %v7910_v39, %v5640_v40  ;;  %v8005_v57 = vld [vmem:[%s12380_s6 + $0x174] sm:$0xf0]  ;;  %v7972_v58 = vld [vmem:[%s12380_s6 + $0x74] sm:$0xf]  ;;  %v7971_v1 = vld [vmem:[%s12380_s6 + $0x64] sm:$0xf0] }
 0x13a   : > { %948 = vmatmul.bf16.vlgmr.msra.gmra.mxu0 %v9145_v18  ;;  %961 = vmatmul.bf16.vlgmr.msra.gmra.mxu1 %v9147_v19  ;;  %v6015_v2 = vor.u32 %v8005_v57, %v6014_v54  ;;  %v5942_v4 = vld [vmem:[%s12380_s6 + $0xe0] sm:$0xf]  ;;  %v7987_v5 = vld [vmem:[%s12380_s6 + $0xe4] sm:$0xf0]  ;;  %v5880_v43 = vld [vmem:[%s12380_s6 + $0x68] sm:$0xf0] }
 0x13b   : > { %974 = vmatmul.bf16.vlgmr.msra.gmra.mxu2 %v9149_v20  ;;  %987 = vmatmul.bf16.vlgmr.msra.gmra.mxu3 %v9145_v18  ;;  %v6006_v9 = vld [vmem:[%s12380_s6 + $0x160] sm:$0xf]  ;;  %v5854_v40 = vld [vmem:[%s12380_s6 + $0x30] sm:$0xf] }
 0x13c   : > { %1340 = vmatpush.bf16.msra.mxu0 %v5823_v17  ;;  %1353 = vmatpush.bf16.msra.mxu1 %v5699_v21  ;;  %v5720_v17 = vld [vmem:[%s12379_s5 + $0xa8] sm:$0xf0]  ;;  %v7946_v21 = vld [vmem:[%s12379_s5 + $0x124] sm:$0xf] }
 0x13d   : > { %1366 = vmatpush.bf16.msra.mxu2 %v5763_v24  ;;  %1379 = vmatpush.bf16.msra.mxu3 %v5827_v26  ;;  %v5659_v24 = vor.u32 %v7914_v14, %v5656_v15  ;;  %v5774_v26 = vld [vmem:[%s12379_s5 + $0x110] sm:$0xf]  ;;  %v5723_v28 = vor.u32 %v7930_v16, %v5720_v17  ;;  %v5787_v29 = vor.u32 %v7946_v21, %v5784_v22  ;;  %v7969_v14 = vld [vmem:[%s12380_s6 + $0x54] sm:$0xf0] }
 0x13e   : > { %v5934_v17 = vld [vmem:[%s12380_s6 + $0xd0] sm:$0xf]  ;;  %v7985_v21 = vld [vmem:[%s12380_s6 + $0xd4] sm:$0xf0] }
 0x13f   : > { %v5998_v22 = vld [vmem:[%s12380_s6 + $0x150] sm:$0xf] }
 0x140   : > { %1341 = vmatpush.bf16.msra.mxu0 %v5815_v32  ;;  %1354 = vmatpush.bf16.msra.mxu1 %v5691_v33  ;;  %v5712_v32 = vld [vmem:[%s12379_s5 + $0x98] sm:$0xf0]  ;;  %v7944_v33 = vld [vmem:[%s12379_s5 + $0x114] sm:$0xf] }
 0x141   : > { %1367 = vmatpush.bf16.msra.mxu2 %v5755_v36  ;;  %1380 = vmatpush.bf16.msra.mxu3 %v5819_v37  ;;  %v5775_v36 = vor.u32 %v7945_v27, %v5774_v26  ;;  %v5651_v37 = vor.u32 %v7912_v30, %v5648_v31  ;;  %v5715_v41 = vor.u32 %v7928_v12, %v5712_v32  ;;  %v5872_v26 = vld [vmem:[%s12380_s6 + $0x58] sm:$0xf0]  ;;  %v7967_v30 = vld [vmem:[%s12380_s6 + $0x44] sm:$0xf0]  ;;  %v5926_v32 = vld [vmem:[%s12380_s6 + $0xc0] sm:$0xf] }
 0x142   : > { %v5779_v45 = vor.u32 %v7944_v33, %v5776_v34  ;;  %v7983_v33 = vld [vmem:[%s12380_s6 + $0xc4] sm:$0xf0]  ;;  %v5990_v34 = vld [vmem:[%s12380_s6 + $0x140] sm:$0xf] }
 0x143   : > { %v5927_v39 = vor.u32 %v7983_v33, %v5926_v32  ;;  %v6016_v32 = vld [vmem:[%s12380_s6 + $0x178] sm:$0xf0] }
 0x144   : > { %1342 = vmatpush.bf16.msra.mxu0 %v5807_v47  ;;  %1355 = vmatpush.bf16.msra.mxu1 %v5683_v48  ;;  %v5704_v47 = vld [vmem:[%s12379_s5 + $0x88] sm:$0xf0]  ;;  %v7942_v48 = vld [vmem:[%s12379_s5 + $0x104] sm:$0xf] }
 0x145   : > { %1368 = vmatpush.bf16.msra.mxu2 %v5747_v51  ;;  %1381 = vmatpush.bf16.msra.mxu3 %v5811_v52  ;;  %v7973_v51 = vld [vmem:[%s12380_s6 + $0x74] sm:$0xf0]  ;;  %v5950_v52 = vld [vmem:[%s12380_s6 + $0xf0] sm:$0xf]  ;;  %v5771_v61 = vor.u32 %v7942_v48, %v5768_v49 }
 0x146   : > { %v5887_v62 = vor.u32 %v7973_v51, %v5886_v50  ;;  %v7981_v48 = vld [vmem:[%s12380_s6 + $0xb4] sm:$0xf0]  ;;  %v5982_v49 = vld [vmem:[%s12380_s6 + $0x130] sm:$0xf]  ;;  %v7964_v51 = vld [vmem:[%s12380_s6 + $0x34] sm:$0xf] }
 0x147   : > { %v7997_v50 = vld [vmem:[%s12380_s6 + $0x134] sm:$0xf0] }
 0x148   : > { %1343 = vmatpush.bf16.msra.mxu0 %v5799_v59  ;;  %1356 = vmatpush.bf16.msra.mxu1 %v5675_v60  ;;  %v5888_v59 = vld [vmem:[%s12380_s6 + $0x78] sm:$0xf0]  ;;  %v5707_v60 = vor.u32 %v7926_v46, %v5704_v47  ;;  %v5918_v47 = vld [vmem:[%s12380_s6 + $0xb0] sm:$0xf]  ;;  %v5983_v57 = vor.u32 %v7997_v50, %v5982_v49  ;;  %v8000_v50 = vld [vmem:[%s12380_s6 + $0x154] sm:$0xf] }
 0x149   : > { %1369 = vmatpush.bf16.msra.mxu2 %v5739_v63  ;;  %1382 = vmatpush.bf16.msra.mxu3 %v5803_v0  ;;  %v5951_v63 = vor.u32 %v7989_v53, %v5950_v52  ;;  %v5878_v0 = vld [vmem:[%s12380_s6 + $0x60] sm:$0xf]  ;;  %v5891_v3 = vor.u32 %v7972_v58, %v5888_v59  ;;  %v5856_v52 = vld [vmem:[%s12380_s6 + $0x38] sm:$0xf0]  ;;  %v5919_v54 = vor.u32 %v7981_v48, %v5918_v47  ;;  %v7984_v48 = vld [vmem:[%s12380_s6 + $0xd4] sm:$0xf] }
 0x14a   : > { %1000 = vmatmul.bf16.vlgmr.msrb.gmra.mxu0 %v9147_v19  ;;  %1013 = vmatmul.bf16.vlgmr.msrb.gmra.mxu1 %v9149_v20  ;;  %v5879_v44 = vor.u32 %v7971_v1, %v5878_v0  ;;  %v5859_v58 = vor.u32 %v7964_v51, %v5856_v52  ;;  %v5910_v59 = vld [vmem:[%s12380_s6 + $0xa0] sm:$0xf]  ;;  %v5848_v0 = vld [vmem:[%s12380_s6 + $0x28] sm:$0xf0]  ;;  %v5936_v49 = vld [vmem:[%s12380_s6 + $0xd8] sm:$0xf0] }
 0x14b   : > { %1322 = vmatmul.bf16.vlgmr.msrb.gmra.mxu2 %v9145_v18  ;;  %1335 = vmatmul.bf16.vlgmr.msrb.gmra.mxu3 %v9147_v19  ;;  %v6000_v51 = vld [vmem:[%s12380_s6 + $0x158] sm:$0xf0]  ;;  %v5939_v52 = vor.u32 %v7984_v48, %v5936_v49  ;;  %v8067_v48 = vld [vmem:[%s12418_s4 + $0x244] sm:$0xf0] }
 0x14c   : > { %1344 = vmatpush.bf16.msra.mxu0 %v5791_v10  ;;  %1357 = vmatpush.bf16.msra.mxu1 %v5667_v42  ;;  %v8003_v10 = vld [vmem:[%s12380_s6 + $0x164] sm:$0xf0]  ;;  %v7970_v42 = vld [vmem:[%s12380_s6 + $0x64] sm:$0xf] }
 0x14d   : > { %1370 = vmatpush.bf16.msra.mxu2 %v5731_v11  ;;  %1383 = vmatpush.bf16.msra.mxu3 %v5795_v13  ;;  %v5943_v11 = vor.u32 %v7987_v5, %v5942_v4  ;;  %v5870_v13 = vld [vmem:[%s12380_s6 + $0x50] sm:$0xf]  ;;  %v6007_v15 = vor.u32 %v8003_v10, %v6006_v9  ;;  %v5883_v16 = vor.u32 %v7970_v42, %v5880_v43  ;;  %v7961_v4 = vld [vmem:[%s12380_s6 + $0x14] sm:$0xf0] }
 0x14e   : > { %v5871_v27 = vor.u32 %v7969_v14, %v5870_v13  ;;  %v5902_v10 = vld [vmem:[%s12380_s6 + $0x90] sm:$0xf]  ;;  %v7977_v42 = vld [vmem:[%s12380_s6 + $0x94] sm:$0xf0]  ;;  %v5840_v13 = vld [vmem:[%s12380_s6 + $0x18] sm:$0xf0] }
 0x14f   : > { %v5966_v43 = vld [vmem:[%s12380_s6 + $0x110] sm:$0xf] }
 0x150   : > { %1345 = vmatpush.bf16.msra.mxu0 %v5783_v23  ;;  %1358 = vmatpush.bf16.msra.mxu1 %v5659_v24  ;;  %v8001_v23 = vld [vmem:[%s12380_s6 + $0x154] sm:$0xf0]  ;;  %v7968_v24 = vld [vmem:[%s12380_s6 + $0x54] sm:$0xf] }
 0x151   : > { %1371 = vmatpush.bf16.msra.mxu2 %v5723_v28  ;;  %1384 = vmatpush.bf16.msra.mxu3 %v5787_v29  ;;  %v5935_v28 = vor.u32 %v7985_v21, %v5934_v17  ;;  %v5862_v29 = vld [vmem:[%s12380_s6 + $0x40] sm:$0xf]  ;;  %v5999_v31 = vor.u32 %v8001_v23, %v5998_v22  ;;  %v5875_v12 = vor.u32 %v7968_v24, %v5872_v26  ;;  %v7959_v17 = vld [vmem:[%s12380_s6 + $0x4] sm:$0xf0] }
 0x152   : > { %v5863_v38 = vor.u32 %v7967_v30, %v5862_v29  ;;  %v5894_v21 = vld [vmem:[%s12380_s6 + $0x80] sm:$0xf]  ;;  %v7975_v24 = vld [vmem:[%s12380_s6 + $0x84] sm:$0xf0]  ;;  %v5832_v29 = vld [vmem:[%s12380_s6 + $0x8] sm:$0xf0] }
 0x153   : > { %v5958_v26 = vld [vmem:[%s12380_s6 + $0x100] sm:$0xf]  ;;  %v7988_v30 = vld [vmem:[%s12380_s6 + $0xf4] sm:$0xf] }
 0x154   : > { %1346 = vmatpush.bf16.msra.mxu0 %v5775_v36  ;;  %1359 = vmatpush.bf16.msra.mxu1 %v5651_v37  ;;  %v7966_v36 = vld [vmem:[%s12380_s6 + $0x44] sm:$0xf]  ;;  %v5864_v37 = vld [vmem:[%s12380_s6 + $0x48] sm:$0xf0] }
 0x155   : > { %1372 = vmatpush.bf16.msra.mxu2 %v5715_v41  ;;  %1385 = vmatpush.bf16.msra.mxu3 %v5779_v45  ;;  %v7965_v41 = vld [vmem:[%s12380_s6 + $0x34] sm:$0xf0]  ;;  %v5991_v45 = vor.u32 %v7999_v35, %v5990_v34  ;;  %v5867_v46 = vor.u32 %v7966_v36, %v5864_v37  ;;  %v5895_v34 = vor.u32 %v7975_v24, %v5894_v21  ;;  %v5960_v21 = vld [vmem:[%s12380_s6 + $0x108] sm:$0xf0]  ;;  %v6194_v24 = vld [vmem:[%s12418_s4 + $0x270] sm:$0xf] }
 0x156   : > { %v5855_v53 = vor.u32 %v7965_v41, %v5854_v40  ;;  %v5944_v40 = vld [vmem:[%s12380_s6 + $0xe8] sm:$0xf0]  ;;  %v8002_v41 = vld [vmem:[%s12380_s6 + $0x164] sm:$0xf] }
 0x158   : > { %1347 = vmatpush.bf16.msra.mxu0 %v5767_v55  ;;  %1360 = vmatpush.bf16.msra.mxu1 %v5643_v56  ;;  %v5846_v55 = vld [vmem:[%s12380_s6 + $0x20] sm:$0xf]  ;;  %v7963_v56 = vld [vmem:[%s12380_s6 + $0x24] sm:$0xf0] }
 0x159   : > { %1373 = vmatpush.bf16.msra.mxu2 %v5707_v60  ;;  %1386 = vmatpush.bf16.msra.mxu3 %v5771_v61  ;;  %v7979_v60 = vld [vmem:[%s12380_s6 + $0xa4] sm:$0xf0]  ;;  %v5974_v61 = vld [vmem:[%s12380_s6 + $0x120] sm:$0xf]  ;;  %v5847_v1 = vor.u32 %v7963_v56, %v5846_v55  ;;  %v5928_v55 = vld [vmem:[%s12380_s6 + $0xc8] sm:$0xf0] }
 0x15a   : > { %v7998_v56 = vld [vmem:[%s12380_s6 + $0x144] sm:$0xf] }
 0x15b   : > { %1348 = vmatmul.bf16.vlgmr.msra.gmra.mxu0 %v9149_v20  ;;  %1361 = vmatmul.bf16.vlgmr.msra.gmra.mxu1 %v9145_v18 }
 0x15c   : > { %1688 = vmatpush.bf16.msrb.mxu0 %v5887_v62  ;;  %1701 = vmatpush.bf16.msrb.mxu1 %v5951_v63  ;;  %v7995_v62 = vld [vmem:[%s12380_s6 + $0x124] sm:$0xf0]  ;;  %v7962_v63 = vld [vmem:[%s12380_s6 + $0x24] sm:$0xf] }
 0x15d   : > { %1714 = vmatpush.bf16.msrb.mxu2 %v6015_v2  ;;  %1727 = vmatpush.bf16.msrb.mxu3 %v5891_v3  ;;  %v5911_v2 = vor.u32 %v7979_v60, %v5910_v59  ;;  %v5838_v3 = vld [vmem:[%s12380_s6 + $0x10] sm:$0xf]  ;;  %v5975_v5 = vor.u32 %v7995_v62, %v5974_v61  ;;  %v5851_v9 = vor.u32 %v7962_v63, %v5848_v0  ;;  %v7980_v60 = vld [vmem:[%s12380_s6 + $0xb4] sm:$0xf]  ;;  %v5920_v61 = vld [vmem:[%s12380_s6 + $0xb8] sm:$0xf0] }
 0x15e   : > { %1374 = vmatmul.bf16.vlgmr.msra.gmra.mxu2 %v9147_v19  ;;  %1387 = vmatmul.bf16.vlgmr.msra.gmra.mxu3 %v9149_v20  ;;  %v5839_v14 = vor.u32 %v7961_v4, %v5838_v3  ;;  %v7996_v62 = vld [vmem:[%s12380_s6 + $0x134] sm:$0xf]  ;;  %v5984_v63 = vld [vmem:[%s12380_s6 + $0x138] sm:$0xf0]  ;;  %v5923_v0 = vor.u32 %v7980_v60, %v5920_v61  ;;  %v5912_v3 = vld [vmem:[%s12380_s6 + $0xa8] sm:$0xf0] }
 0x15f   : > { %v7994_v4 = vld [vmem:[%s12380_s6 + $0x124] sm:$0xf]  ;;  %v8063_v60 = vld [vmem:[%s12418_s4 + $0x224] sm:$0xf0] }
 0x160   : > { %1689 = vmatpush.bf16.msrb.mxu0 %v5879_v44  ;;  %1702 = vmatpush.bf16.msrb.mxu1 %v5943_v11  ;;  %v7993_v44 = vld [vmem:[%s12380_s6 + $0x114] sm:$0xf0]  ;;  %v7960_v11 = vld [vmem:[%s12380_s6 + $0x14] sm:$0xf] }
 0x161   : > { %1715 = vmatpush.bf16.msrb.mxu2 %v6007_v15  ;;  %1728 = vmatpush.bf16.msrb.mxu3 %v5883_v16  ;;  %v5903_v15 = vor.u32 %v7977_v42, %v5902_v10  ;;  %v5830_v16 = vld [vmem:[%s12380_s6] sm:$0xf]  ;;  %v5967_v22 = vor.u32 %v7993_v44, %v5966_v43  ;;  %v5843_v23 = vor.u32 %v7960_v11, %v5840_v13  ;;  %v7976_v42 = vld [vmem:[%s12380_s6 + $0x94] sm:$0xf]  ;;  %v5904_v43 = vld [vmem:[%s12380_s6 + $0x98] sm:$0xf0] }
 0x162   : > { %v5831_v33 = vor.u32 %v7959_v17, %v5830_v16  ;;  %v7992_v44 = vld [vmem:[%s12380_s6 + $0x114] sm:$0xf]  ;;  %v5968_v11 = vld [vmem:[%s12380_s6 + $0x118] sm:$0xf0]  ;;  %v5907_v13 = vor.u32 %v7976_v42, %v5904_v43  ;;  %v5896_v16 = vld [vmem:[%s12380_s6 + $0x88] sm:$0xf0] }
 0x163   : > { %v7990_v17 = vld [vmem:[%s12380_s6 + $0x104] sm:$0xf]  ;;  %v8059_v42 = vld [vmem:[%s12418_s4 + $0x204] sm:$0xf0]  ;;  %v8072_v43 = vld [vmem:[%s12418_s4 + $0x274] sm:$0xf] }
 0x164   : > { %1690 = vmatpush.bf16.msrb.mxu0 %v5871_v27  ;;  %1703 = vmatpush.bf16.msrb.mxu1 %v5935_v28  ;;  %v7991_v27 = vld [vmem:[%s12380_s6 + $0x104] sm:$0xf0]  ;;  %v7958_v28 = vld [vmem:[%s12380_s6 + $0x4] sm:$0xf] }
 0x165   : > { %1716 = vmatpush.bf16.msrb.mxu2 %v5999_v31  ;;  %1729 = vmatpush.bf16.msrb.mxu3 %v5875_v12  ;;  %v5952_v31 = vld [vmem:[%s12380_s6 + $0xf8] sm:$0xf0]  ;;  %v8004_v12 = vld [vmem:[%s12380_s6 + $0x174] sm:$0xf]  ;;  %v5959_v35 = vor.u32 %v7991_v27, %v5958_v26  ;;  %v5835_v36 = vor.u32 %v7958_v28, %v5832_v29  ;;  %v8073_v26 = vld [vmem:[%s12418_s4 + $0x274] sm:$0xf0]  ;;  %v5963_v28 = vor.u32 %v7990_v17, %v5960_v21 }
 0x166   : > { %v5955_v37 = vor.u32 %v7988_v30, %v5952_v31  ;;  %v6195_v30 = vor.u32 %v8073_v26, %v6194_v24  ;;  %v6122_v31 = vld [vmem:[%s12418_s4 + $0x1e0] sm:$0xf]  ;;  %v8070_v21 = vld [vmem:[%s12418_s4 + $0x264] sm:$0xf]  ;;  %v6252_v24 = vld [vmem:[%s12418_s4 + $0x2e8] sm:$0xf0] }
 0x168   : > { %1691 = vmatpush.bf16.msrb.mxu0 %v5863_v38  ;;  %1704 = vmatpush.bf16.msrb.mxu1 %v5927_v39  ;;  %v6019_v38 = vor.u32 %v8004_v12, %v6016_v32  ;;  %v7986_v39 = vld [vmem:[%s12380_s6 + $0xe4] sm:$0xf]  ;;  %v8055_v12 = vld [vmem:[%s12418_s4 + $0x1e4] sm:$0xf0]  ;;  %v6186_v32 = vld [vmem:[%s12418_s4 + $0x260] sm:$0xf] }
 0x169   : > { %1717 = vmatpush.bf16.msrb.mxu2 %v5991_v45  ;;  %1730 = vmatpush.bf16.msrb.mxu3 %v5867_v46  ;;  %v6008_v45 = vld [vmem:[%s12380_s6 + $0x168] sm:$0xf0]  ;;  %v5947_v46 = vor.u32 %v7986_v39, %v5944_v40  ;;  %v8069_v39 = vld [vmem:[%s12418_s4 + $0x254] sm:$0xf0] }
 0x16a   : > { %v6011_v47 = vor.u32 %v8002_v41, %v6008_v45  ;;  %v6106_v45 = vld [vmem:[%s12418_s4 + $0x1c0] sm:$0xf] }
 0x16c   : > { %1692 = vmatpush.bf16.msrb.mxu0 %v5855_v53  ;;  %1705 = vmatpush.bf16.msrb.mxu1 %v5919_v54  ;;  %v6003_v53 = vor.u32 %v8000_v50, %v6000_v51  ;;  %v7982_v54 = vld [vmem:[%s12380_s6 + $0xc4] sm:$0xf]  ;;  %v6098_v51 = vld [vmem:[%s12418_s4 + $0x1b0] sm:$0xf] }
 0x16d   : > { %1718 = vmatpush.bf16.msrb.mxu2 %v5983_v57  ;;  %1731 = vmatpush.bf16.msrb.mxu3 %v5859_v58  ;;  %v5992_v57 = vld [vmem:[%s12380_s6 + $0x148] sm:$0xf0]  ;;  %v5931_v58 = vor.u32 %v7982_v54, %v5928_v55  ;;  %v8065_v54 = vld [vmem:[%s12418_s4 + $0x234] sm:$0xf0] }
 0x16e   : > { %v5995_v59 = vor.u32 %v7998_v56, %v5992_v57  ;;  %v6090_v57 = vld [vmem:[%s12418_s4 + $0x1a0] sm:$0xf] }
 0x170   : > { %1693 = vmatpush.bf16.msrb.mxu0 %v5847_v1  ;;  %1706 = vmatpush.bf16.msrb.mxu1 %v5911_v2  ;;  %v5987_v1 = vor.u32 %v7996_v62, %v5984_v63  ;;  %v7978_v2 = vld [vmem:[%s12380_s6 + $0xa4] sm:$0xf]  ;;  %v6082_v63 = vld [vmem:[%s12418_s4 + $0x190] sm:$0xf] }
 0x171   : > { %1719 = vmatpush.bf16.msrb.mxu2 %v5975_v5  ;;  %1732 = vmatpush.bf16.msrb.mxu3 %v5851_v9  ;;  %v5976_v5 = vld [vmem:[%s12380_s6 + $0x128] sm:$0xf0]  ;;  %v5915_v9 = vor.u32 %v7978_v2, %v5912_v3  ;;  %v8061_v2 = vld [vmem:[%s12418_s4 + $0x214] sm:$0xf0] }
 0x172   : > { %v5979_v10 = vor.u32 %v7994_v4, %v5976_v5  ;;  %v6074_v5 = vld [vmem:[%s12418_s4 + $0x180] sm:$0xf] }
 0x174   : > { %1694 = vmatpush.bf16.msrb.mxu0 %v5839_v14  ;;  %1707 = vmatpush.bf16.msrb.mxu1 %v5903_v15  ;;  %v5971_v14 = vor.u32 %v7992_v44, %v5968_v11  ;;  %v7974_v15 = vld [vmem:[%s12380_s6 + $0x84] sm:$0xf]  ;;  %v6196_v44 = vld [vmem:[%s12418_s4 + $0x278] sm:$0xf0]  ;;  %v8088_v11 = vld [vmem:[%s12418_s4 + $0x2f4] sm:$0xf] }
 0x175   : > { %1720 = vmatpush.bf16.msrb.mxu2 %v5967_v22  ;;  %1733 = vmatpush.bf16.msrb.mxu3 %v5843_v23  ;;  %v6130_v22 = vld [vmem:[%s12418_s4 + $0x1f0] sm:$0xf]  ;;  %v8057_v23 = vld [vmem:[%s12418_s4 + $0x1f4] sm:$0xf0]  ;;  %v5899_v27 = vor.u32 %v7974_v15, %v5896_v16  ;;  %v6199_v16 = vor.u32 %v8072_v43, %v6196_v44  ;;  %v6204_v43 = vld [vmem:[%s12418_s4 + $0x288] sm:$0xf0] }
 0x176   : > { %v6131_v29 = vor.u32 %v8057_v23, %v6130_v22  ;;  %v6188_v22 = vld [vmem:[%s12418_s4 + $0x268] sm:$0xf0]  ;;  %v8086_v23 = vld [vmem:[%s12418_s4 + $0x2e4] sm:$0xf]  ;;  %v6499_v44 = vld [vmem:[%s12379_s5 + $0x2f0] sm:$0xf] }
 0x177   : > { %v6191_v26 = vor.u32 %v8070_v21, %v6188_v22  ;;  %v9846_v22 = vld [vmem:[%s12382_s8] sm:$0x3] }
 0x178   : > { %1695 = vmatpush.bf16.msrb.mxu0 %v5831_v33  ;;  %1708 = vmatpush.bf16.msrb.mxu1 %v5895_v34  ;;  %v8071_v33 = vld [vmem:[%s12418_s4 + $0x264] sm:$0xf0]  ;;  %v6123_v34 = vor.u32 %v8055_v12, %v6122_v31  ;;  %v6244_v31 = vld [vmem:[%s12418_s4 + $0x2d8] sm:$0xf0] }
 0x179   : > { %1721 = vmatpush.bf16.msrb.mxu2 %v5959_v35  ;;  %1734 = vmatpush.bf16.msrb.mxu3 %v5835_v36  ;;  %v6187_v35 = vor.u32 %v8071_v33, %v6186_v32  ;;  %v6114_v36 = vld [vmem:[%s12418_s4 + $0x1d0] sm:$0xf]  ;;  %v8066_v33 = vld [vmem:[%s12418_s4 + $0x244] sm:$0xf] }
 0x17b   : > { %1696 = vmatmul.bf16.vlgmr.msrb.gmra.mxu0 %v9145_v18  ;;  %1709 = vmatmul.bf16.vlgmr.msrb.gmra.mxu1 %v9147_v19 }
 0x17c   : > { %1740 = vmatpush.bf16.msra.mxu0 %v5955_v37  ;;  %1753 = vmatpush.bf16.msra.mxu1 %v6019_v38  ;;  %v8053_v37 = vld [vmem:[%s12418_s4 + $0x1d4] sm:$0xf0]  ;;  %v6178_v38 = vld [vmem:[%s12418_s4 + $0x250] sm:$0xf] }
 0x17d   : > { %1722 = vmatmul.bf16.vlgmr.msrb.gmra.mxu2 %v9149_v20  ;;  %1735 = vmatmul.bf16.vlgmr.msrb.gmra.mxu3 %v9145_v18  ;;  %v6115_v40 = vor.u32 %v8053_v37, %v6114_v36  ;;  %v6179_v41 = vor.u32 %v8069_v39, %v6178_v38  ;;  %v6172_v36 = vld [vmem:[%s12418_s4 + $0x248] sm:$0xf0]  ;;  %v8082_v37 = vld [vmem:[%s12418_s4 + $0x2c4] sm:$0xf] }
 0x17e   : > { %v6236_v38 = vld [vmem:[%s12418_s4 + $0x2c8] sm:$0xf0]  ;;  %v6175_v39 = vor.u32 %v8066_v33, %v6172_v36 }
 0x180   : > { %1741 = vmatpush.bf16.msra.mxu0 %v5947_v46  ;;  %1754 = vmatpush.bf16.msra.mxu1 %v6011_v47  ;;  %v8051_v46 = vld [vmem:[%s12418_s4 + $0x1c4] sm:$0xf0]  ;;  %v6170_v47 = vld [vmem:[%s12418_s4 + $0x240] sm:$0xf] }
 0x181   : > { %v6107_v49 = vor.u32 %v8051_v46, %v6106_v45  ;;  %v6171_v50 = vor.u32 %v8067_v48, %v6170_v47  ;;  %v6164_v45 = vld [vmem:[%s12418_s4 + $0x238] sm:$0xf0]  ;;  %v8080_v46 = vld [vmem:[%s12418_s4 + $0x2b4] sm:$0xf] }
 0x182   : > { %v6228_v47 = vld [vmem:[%s12418_s4 + $0x2b8] sm:$0xf0] }
 0x184   : > { %1742 = vmatpush.bf16.msra.mxu0 %v5939_v52  ;;  %1755 = vmatpush.bf16.msra.mxu1 %v6003_v53  ;;  %v8049_v52 = vld [vmem:[%s12418_s4 + $0x1b4] sm:$0xf0]  ;;  %v6162_v53 = vld [vmem:[%s12418_s4 + $0x230] sm:$0xf] }
 0x185   : > { %v6099_v55 = vor.u32 %v8049_v52, %v6098_v51  ;;  %v6163_v56 = vor.u32 %v8065_v54, %v6162_v53  ;;  %v6231_v51 = vor.u32 %v8080_v46, %v6228_v47  ;;  %v8062_v52 = vld [vmem:[%s12418_s4 + $0x224] sm:$0xf]  ;;  %v6475_v47 = vld [vmem:[%s12379_s5 + $0x2c0] sm:$0xf] }
 0x188   : > { %1743 = vmatpush.bf16.msra.mxu0 %v5931_v58  ;;  %1756 = vmatpush.bf16.msra.mxu1 %v5995_v59  ;;  %v8047_v58 = vld [vmem:[%s12418_s4 + $0x1a4] sm:$0xf0]  ;;  %v6154_v59 = vld [vmem:[%s12418_s4 + $0x220] sm:$0xf] }
 0x189   : > { %v6091_v61 = vor.u32 %v8047_v58, %v6090_v57  ;;  %v6155_v62 = vor.u32 %v8063_v60, %v6154_v59  ;;  %v6220_v57 = vld [vmem:[%s12418_s4 + $0x2a8] sm:$0xf0]  ;;  %v8060_v60 = vld [vmem:[%s12418_s4 + $0x214] sm:$0xf] }
 0x18c   : > { %1744 = vmatpush.bf16.msra.mxu0 %v5923_v0  ;;  %1757 = vmatpush.bf16.msra.mxu1 %v5987_v1  ;;  %v8045_v0 = vld [vmem:[%s12418_s4 + $0x194] sm:$0xf0]  ;;  %v6146_v1 = vld [vmem:[%s12418_s4 + $0x210] sm:$0xf] }
 0x18d   : > { %v6083_v3 = vor.u32 %v8045_v0, %v6082_v63  ;;  %v6147_v4 = vor.u32 %v8061_v2, %v6146_v1  ;;  %v6212_v63 = vld [vmem:[%s12418_s4 + $0x298] sm:$0xf0] }
 0x190   : > { %1745 = vmatpush.bf16.msra.mxu0 %v5915_v9  ;;  %1758 = vmatpush.bf16.msra.mxu1 %v5979_v10  ;;  %v8043_v9 = vld [vmem:[%s12418_s4 + $0x184] sm:$0xf0]  ;;  %v6138_v10 = vld [vmem:[%s12418_s4 + $0x200] sm:$0xf] }
 0x191   : > { %v6139_v15 = vor.u32 %v8059_v42, %v6138_v10  ;;  %v8074_v42 = vld [vmem:[%s12418_s4 + $0x284] sm:$0xf] }
 0x194   : > { %1746 = vmatpush.bf16.msra.mxu0 %v5907_v13  ;;  %1759 = vmatpush.bf16.msra.mxu1 %v5971_v14  ;;  %v6260_v13 = vld [vmem:[%s12418_s4 + $0x2f8] sm:$0xf0]  ;;  %v6075_v14 = vor.u32 %v8043_v9, %v6074_v5  ;;  %v6140_v5 = vld [vmem:[%s12418_s4 + $0x208] sm:$0xf0] }
 0x195   : > { %v6263_v17 = vor.u32 %v8088_v11, %v6260_v13  ;;  %v8137_v11 = vld [vmem:[%s12379_s5 + $0x2f4] sm:$0xf0]  ;;  %v8104_v13 = vld [vmem:[%s12379_s5 + $0x1f4] sm:$0xf] }
 0x198   : > { %1747 = vmatpush.bf16.msra.mxu0 %v5899_v27  ;;  %1760 = vmatpush.bf16.msra.mxu1 %v5963_v28  ;;  %v6255_v27 = vor.u32 %v8086_v23, %v6252_v24  ;;  %v8068_v28 = vld [vmem:[%s12418_s4 + $0x254] sm:$0xf]  ;;  %v6491_v23 = vld [vmem:[%s12379_s5 + $0x2e0] sm:$0xf]  ;;  %v8135_v24 = vld [vmem:[%s12379_s5 + $0x2e4] sm:$0xf0] }
 0x199   : > { %v6492_v33 = vor.u32 %v8135_v24, %v6491_v23  ;;  %v8125_v24 = vld [vmem:[%s12379_s5 + $0x294] sm:$0xf0] }
 0x19b   : > { %1748 = vmatmul.bf16.vlgmr.msra.gmra.mxu0 %v9147_v19  ;;  %1761 = vmatmul.bf16.vlgmr.msra.gmra.mxu1 %v9149_v20 }
 0x19c   : > { %2211 = vmatpush.bf16.msrb.mxu0 %v6131_v29  ;;  %2224 = vmatpush.bf16.msrb.mxu1 %v6195_v30  ;;  %v6180_v29 = vld [vmem:[%s12418_s4 + $0x258] sm:$0xf0]  ;;  %v8084_v30 = vld [vmem:[%s12418_s4 + $0x2d4] sm:$0xf] }
 0x19d   : > { %v6183_v12 = vor.u32 %v8068_v28, %v6180_v29  ;;  %v6247_v32 = vor.u32 %v8084_v30, %v6244_v31  ;;  %v9863_v30 = vld [vmem:[%s12381_s7] sm:$0x3]  ;;  %v1070_v31 = vperm.slane %v9846_v22, 0 }
 0x1a0   : > { %2212 = vmatpush.bf16.msrb.mxu0 %v6123_v34  ;;  %2225 = vmatpush.bf16.msrb.mxu1 %v6187_v35 }
 0x1a4   : > { %2213 = vmatpush.bf16.msrb.mxu0 %v6115_v40  ;;  %2226 = vmatpush.bf16.msrb.mxu1 %v6179_v41  ;;  %v6239_v40 = vor.u32 %v8082_v37, %v6236_v38  ;;  %v8064_v41 = vld [vmem:[%s12418_s4 + $0x234] sm:$0xf]  ;;  %v6483_v37 = vld [vmem:[%s12379_s5 + $0x2d0] sm:$0xf]  ;;  %v8133_v38 = vld [vmem:[%s12379_s5 + $0x2d4] sm:$0xf0] }
 0x1a8   : > { %2214 = vmatpush.bf16.msrb.mxu0 %v6107_v49  ;;  %2227 = vmatpush.bf16.msrb.mxu1 %v6171_v50  ;;  %v6167_v50 = vor.u32 %v8064_v41, %v6164_v45  ;;  %v696_v41 = vperm.slane %v9863_v30, 0  ;;  %v6484_v45 = vor.u32 %v8133_v38, %v6483_v37  ;;  %v8123_v37 = vld [vmem:[%s12379_s5 + $0x284] sm:$0xf0]  ;;  %v8090_v38 = vld [vmem:[%s12379_s5 + $0x184] sm:$0xf] }
 0x1ac   : > { %2215 = vmatpush.bf16.msrb.mxu0 %v6099_v55  ;;  %2228 = vmatpush.bf16.msrb.mxu1 %v6163_v56  ;;  %v6156_v55 = vld [vmem:[%s12418_s4 + $0x228] sm:$0xf0]  ;;  %v8078_v56 = vld [vmem:[%s12418_s4 + $0x2a4] sm:$0xf] }
 0x1ad   : > { %v6159_v58 = vor.u32 %v8062_v52, %v6156_v55  ;;  %v6223_v59 = vor.u32 %v8078_v56, %v6220_v57  ;;  %v8098_v52 = vld [vmem:[%s12379_s5 + $0x1c4] sm:$0xf] }
 0x1b0   : > { %2216 = vmatpush.bf16.msrb.mxu0 %v6091_v61  ;;  %2229 = vmatpush.bf16.msrb.mxu1 %v6155_v62  ;;  %v6148_v61 = vld [vmem:[%s12418_s4 + $0x218] sm:$0xf0]  ;;  %v8076_v62 = vld [vmem:[%s12418_s4 + $0x294] sm:$0xf] }
 0x1b1   : > { %v6151_v2 = vor.u32 %v8060_v60, %v6148_v61  ;;  %v8129_v61 = vld [vmem:[%s12379_s5 + $0x2b4] sm:$0xf0] }
 0x1b4   : > { %2217 = vmatpush.bf16.msrb.mxu0 %v6083_v3  ;;  %2230 = vmatpush.bf16.msrb.mxu1 %v6147_v4  ;;  %v6215_v3 = vor.u32 %v8076_v62, %v6212_v63  ;;  %v8058_v4 = vld [vmem:[%s12418_s4 + $0x204] sm:$0xf]  ;;  %v8096_v62 = vld [vmem:[%s12379_s5 + $0x1b4] sm:$0xf]  ;;  %v6341_v63 = vld [vmem:[%s12379_s5 + $0x1b8] sm:$0xf0] }
 0x1b7   : > { %v9762_v34 = vpop.f32.mrf.mxu0  ;;  %v9764_v35 = vpop.f32.mrf.mxu1 }
 0x1b8   : > { %2218 = vmatpush.bf16.msrb.mxu0 %v6075_v14  ;;  %2231 = vmatpush.bf16.msrb.mxu1 %v6139_v15  ;;  %v6373_v14 = vld [vmem:[%s12379_s5 + $0x1f8] sm:$0xf0]  ;;  %v6143_v15 = vor.u32 %v8058_v4, %v6140_v5  ;;  %v6344_v4 = vor.u32 %v8096_v62, %v6341_v63  ;;  %v6459_v5 = vld [vmem:[%s12379_s5 + $0x2a0] sm:$0xf] }
 0x1b9   : > { %v6376_v21 = vor.u32 %v8104_v13, %v6373_v14  ;;  %v6333_v13 = vld [vmem:[%s12379_s5 + $0x1a8] sm:$0xf0] }
 0x1bb   : > { %2219 = vmatmul.bf16.vlgmr.msrb.gmra.mxu0 %v9145_v18  ;;  %2232 = vmatmul.bf16.vlgmr.msrb.gmra.mxu1 %v9147_v19 }
 0x1bc   : > { %2263 = vmatpush.bf16.msra.mxu0 %v6199_v16  ;;  %2276 = vmatpush.bf16.msra.mxu1 %v6263_v17  ;;  %v6207_v16 = vor.u32 %v8074_v42, %v6204_v43  ;;  %v6500_v17 = vor.u32 %v8137_v11, %v6499_v44  ;;  %v8127_v44 = vld [vmem:[%s12379_s5 + $0x2a4] sm:$0xf0]  ;;  %v8094_v11 = vld [vmem:[%s12379_s5 + $0x1a4] sm:$0xf] }
 0x1be   : > { %v9787_v48 = vpop.f32.mrf.mxu2  ;;  %v9789_v49 = vpop.f32.mrf.mxu3 }
 0x1bf   : > { %v951_v53 = vpop.f32.mrf.mxu0  ;;  %v964_v54 = vpop.f32.mrf.mxu1 }
 0x1c0   : > { %2264 = vmatpush.bf16.msra.mxu0 %v6191_v26  ;;  %2277 = vmatpush.bf16.msra.mxu1 %v6255_v27  ;;  %v8102_v26 = vld [vmem:[%s12379_s5 + $0x1e4] sm:$0xf]  ;;  %v6365_v27 = vld [vmem:[%s12379_s5 + $0x1e8] sm:$0xf0] }
 0x1c1   : > { %v6368_v36 = vor.u32 %v8102_v26, %v6365_v27  ;;  %v6349_v53 = vld [vmem:[%s12379_s5 + $0x1c8] sm:$0xf0]  ;;  %v6325_v26 = vld [vmem:[%s12379_s5 + $0x198] sm:$0xf0] }
 0x1c2   : > { %v6352_v57 = vor.u32 %v8098_v52, %v6349_v53 }
 0x1c4   : > { %2265 = vmatpush.bf16.msra.mxu0 %v6183_v12  ;;  %2278 = vmatpush.bf16.msra.mxu1 %v6247_v32 }
 0x1c6   : > { %v977_v0 = vpop.f32.mrf.mxu2  ;;  %v990_v1 = vpop.f32.mrf.mxu3 }
 0x1c7   : > { %v9821_v9 = vpop.f32.mrf.mxu0  ;;  %v9823_v10 = vpop.f32.mrf.mxu1 }
 0x1c8   : > { %2266 = vmatpush.bf16.msra.mxu0 %v6175_v39  ;;  %2279 = vmatpush.bf16.msra.mxu1 %v6239_v40  ;;  %v8100_v39 = vld [vmem:[%s12379_s5 + $0x1d4] sm:$0xf]  ;;  %v6357_v40 = vld [vmem:[%s12379_s5 + $0x1d8] sm:$0xf0] }
 0x1c9   : > { %v6360_v46 = vor.u32 %v8100_v39, %v6357_v40  ;;  %v6612_v39 = vld [vmem:[%s12380_s6 + $0x1f0] sm:$0xf] }
 0x1cc   : > { %2267 = vmatpush.bf16.msra.mxu0 %v6167_v50  ;;  %2280 = vmatpush.bf16.msra.mxu1 %v6231_v51  ;;  %v8131_v51 = vld [vmem:[%s12379_s5 + $0x2c4] sm:$0xf0] }
 0x1cd   : > { %v6476_v56 = vor.u32 %v8131_v51, %v6475_v47  ;;  %v8169_v47 = vld [vmem:[%s12380_s6 + $0x274] sm:$0xf0] }
 0x1ce   : > { %v1323_v28 = vpop.f32.mrf.mxu2  ;;  %v1336_v29 = vpop.f32.mrf.mxu3 }
 0x1cf   : > { %v1003_v12 = vpop.f32.mrf.mxu0  ;;  %v1016_v32 = vpop.f32.mrf.mxu1  ;;  %v1324_v50 = vadd.f32 %v1323_v28, %v1070_v31 }
 0x1d0   : > { %2268 = vmatpush.bf16.msra.mxu0 %v6159_v58  ;;  %2281 = vmatpush.bf16.msra.mxu1 %v6223_v59  ;;  %v6467_v58 = vld [vmem:[%s12379_s5 + $0x2b0] sm:$0xf]  ;;  %v950_v59 = vadd.f32 %v9762_v34, %v696_v41 }
 0x1d1   : > { %v1337_v60 = vadd.f32 %v1336_v29, %v1324_v50  ;;  %v6468_v34 = vor.u32 %v8129_v61, %v6467_v58  ;;  %v8151_v58 = vld [vmem:[%s12380_s6 + $0x1e4] sm:$0xf0] }
 0x1d2   : > { %v963_v42 = vadd.f32 %v9764_v35, %v950_v59  ;;  %v6460_v35 = vor.u32 %v8127_v44, %v6459_v5  ;;  %v6668_v59 = vld [vmem:[%s12380_s6 + $0x260] sm:$0xf]  ;;  %v8163_v44 = vld [vmem:[%s12380_s6 + $0x244] sm:$0xf0] }
 0x1d3   : > { %v6588_v5 = vld [vmem:[%s12380_s6 + $0x1c0] sm:$0xf] }
 0x1d4   : > { %2269 = vmatpush.bf16.msra.mxu0 %v6151_v2  ;;  %2282 = vmatpush.bf16.msra.mxu1 %v6215_v3  ;;  %v1071_v3 = vperm.slane %v9846_v22, 1  ;;  %v976_v14 = vadd.f32 %v9787_v48, %v963_v42  ;;  %v8092_v48 = vld [vmem:[%s12379_s5 + $0x194] sm:$0xf]  ;;  %v8147_v42 = vld [vmem:[%s12380_s6 + $0x1c4] sm:$0xf0] }
 0x1d6   : > { %v1325_v54 = vpop.f32.mrf.mxu2  ;;  %v1338_v55 = vpop.f32.mrf.mxu3 }
 0x1d8   : > { %2270 = vmatpush.bf16.msra.mxu0 %v6143_v15  ;;  %2283 = vmatpush.bf16.msra.mxu1 %v6207_v16  ;;  %v1349_v0 = vpop.f32.mrf.mxu0  ;;  %v1362_v1 = vpop.f32.mrf.mxu1  ;;  %v697_v15 = vperm.slane %v9863_v30, 1  ;;  %v1018_v30 = vpack.c.bf16 %v976_v14, %v976_v14 }
 0x1d9   : > { %v1350_v2 = vadd.f32 %v1349_v0, %v1337_v60  ;;  %v1363_v16 = vadd.f32 %v1362_v1, %v1071_v3  ;;  %v8167_v60 = vld [vmem:[%s12380_s6 + $0x264] sm:$0xf0]  ;;  %v8149_v0 = vld [vmem:[%s12380_s6 + $0x1d4] sm:$0xf0]  ;;  %v6660_v1 = vld [vmem:[%s12380_s6 + $0x250] sm:$0xf] }
 0x1da   : > { %v989_v31 = vadd.f32 %v9789_v49, %v697_v15  ;;  %v6317_v49 = vld [vmem:[%s12379_s5 + $0x188] sm:$0xf0]  ;;  %v6669_v62 = vor.u32 %v8167_v60, %v6668_v59  ;;  %v6580_v15 = vld [vmem:[%s12380_s6 + $0x1b0] sm:$0xf] }
 0x1db   : > { %2271 = vmatmul.bf16.vlgmr.msra.gmra.mxu0 %v9147_v19  ;;  %2284 = vmatmul.bf16.vlgmr.msra.gmra.mxu1 %v9149_v20  ;;  %v1392_v43 = vpack.c.bf16 %v1350_v2, %v1350_v2  ;;  %v8165_v2 = vld [vmem:[%s12380_s6 + $0x254] sm:$0xf0] }
 0x1dc   : > { %2613 = vmatpush.bf16.msrb.mxu0 %v6500_v17  ;;  %2626 = vmatpush.bf16.msrb.mxu1 %v6376_v21  ;;  %v6336_v17 = vor.u32 %v8094_v11, %v6333_v13  ;;  %v6451_v21 = vld [vmem:[%s12379_s5 + $0x290] sm:$0xf]  ;;  %v1002_v40 = vadd.f32 %v9821_v9, %v989_v31  ;;  %v6320_v9 = vor.u32 %v8090_v38, %v6317_v49  ;;  %v8157_v49 = vld [vmem:[%s12380_s6 + $0x214] sm:$0xf0] }
 0x1dd   : > { %1830 = vmatpush.bf16.xpose.msra.mxu2 %v1392_v43  ;;  %v6452_v32 = vor.u32 %v8125_v24, %v6451_v21  ;;  %v6652_v43 = vld [vmem:[%s12380_s6 + $0x240] sm:$0xf]  ;;  %v6589_v13 = vor.u32 %v8147_v42, %v6588_v5  ;;  %v6628_v38 = vld [vmem:[%s12380_s6 + $0x210] sm:$0xf]  ;;  %v8164_v5 = vld [vmem:[%s12380_s6 + $0x254] sm:$0xf] }
 0x1de   : > { %v6653_v14 = vor.u32 %v8163_v44, %v6652_v43  ;;  %v6662_v42 = vld [vmem:[%s12380_s6 + $0x258] sm:$0xf0]  ;;  %v8180_v43 = vld [vmem:[%s12380_s6 + $0x2d4] sm:$0xf] }
 0x1df   : > { %v6726_v44 = vld [vmem:[%s12380_s6 + $0x2d8] sm:$0xf0] }
 0x1e0   : > { %2614 = vmatpush.bf16.msrb.mxu0 %v6492_v33  ;;  %2627 = vmatpush.bf16.msrb.mxu1 %v6368_v36  ;;  %v1351_v28 = vpop.f32.mrf.mxu0  ;;  %v1364_v29 = vpop.f32.mrf.mxu1  ;;  %v6328_v33 = vor.u32 %v8092_v48, %v6325_v26  ;;  %v6443_v36 = vld [vmem:[%s12379_s5 + $0x280] sm:$0xf] }
 0x1e1   : > { %v1375_v22 = vpop.f32.mrf.mxu2  ;;  %v1388_v23 = vpop.f32.mrf.mxu3  ;;  %v6444_v51 = vor.u32 %v8123_v37, %v6443_v36  ;;  %v6572_v26 = vld [vmem:[%s12380_s6 + $0x1a0] sm:$0xf]  ;;  %v8159_v29 = vld [vmem:[%s12380_s6 + $0x224] sm:$0xf0]  ;;  %v8141_v37 = vld [vmem:[%s12380_s6 + $0x194] sm:$0xf0] }
 0x1e2   : > { %v1376_v27 = vadd.f32 %v1375_v22, %v1363_v16  ;;  %v8145_v16 = vld [vmem:[%s12380_s6 + $0x1b4] sm:$0xf0]  ;;  %v6636_v28 = vld [vmem:[%s12380_s6 + $0x220] sm:$0xf] }
 0x1e3   : > { %v6581_v24 = vor.u32 %v8145_v16, %v6580_v15  ;;  %v6654_v15 = vld [vmem:[%s12380_s6 + $0x248] sm:$0xf0]  ;;  %v8178_v16 = vld [vmem:[%s12380_s6 + $0x2c4] sm:$0xf] }
 0x1e4   : > { %2615 = vmatpush.bf16.msrb.mxu0 %v6484_v45  ;;  %2628 = vmatpush.bf16.msrb.mxu1 %v6360_v46  ;;  %v1389_v12 = vadd.f32 %v1388_v23, %v1376_v27  ;;  %v8153_v45 = vld [vmem:[%s12380_s6 + $0x1f4] sm:$0xf0]  ;;  %v6676_v46 = vld [vmem:[%s12380_s6 + $0x270] sm:$0xf]  ;;  %v8143_v27 = vld [vmem:[%s12380_s6 + $0x1a4] sm:$0xf0] }
 0x1e5   : > { %1831 = vmatmul.bf16.vlgmr.msra.gmra.mxu2 %v1018_v30  ;;  %v6613_v54 = vor.u32 %v8153_v45, %v6612_v39  ;;  %v6677_v55 = vor.u32 %v8169_v47, %v6676_v46  ;;  %v6573_v31 = vor.u32 %v8143_v27, %v6572_v26  ;;  %v6629_v47 = vor.u32 %v8157_v49, %v6628_v38 }
 0x1e6   : > { %v1393_v41 = vpack.c.bf16 %v1389_v12, %v1389_v12  ;;  %v6637_v12 = vor.u32 %v8159_v29, %v6636_v28 }
 0x1e8   : > { %2616 = vmatpush.bf16.msrb.mxu0 %v6476_v56  ;;  %2629 = vmatpush.bf16.msrb.mxu1 %v6352_v57  ;;  %v1821_v50 = vsel %vm1816_vm4, %v1393_v41, 0  ;;  %v6604_v56 = vld [vmem:[%s12380_s6 + $0x1e0] sm:$0xf]  ;;  %v1015_v57 = vadd.f32 %v9823_v10, %v1002_v40  ;;  %v6596_v10 = vld [vmem:[%s12380_s6 + $0x1d0] sm:$0xf] }
 0x1e9   : > { %v1377_v52 = vpop.f32.mrf.mxu2  ;;  %v1390_v53 = vpop.f32.mrf.mxu3  ;;  %1843 = vmatpush.bf16.xpose.msra.mxu3 %v1821_v50  ;;  %v6605_v61 = vor.u32 %v8151_v58, %v6604_v56  ;;  %v6597_v3 = vor.u32 %v8149_v0, %v6596_v10  ;;  %v6556_v50 = vld [vmem:[%s12380_s6 + $0x180] sm:$0xf]  ;;  %v8184_v56 = vld [vmem:[%s12380_s6 + $0x2f4] sm:$0xf]  ;;  %v6670_v0 = vld [vmem:[%s12380_s6 + $0x268] sm:$0xf0] }
 0x1ea   : > { %v1019_v63 = vpack.c.bf16 %v1015_v57, %v1015_v57  ;;  %v8155_v52 = vld [vmem:[%s12380_s6 + $0x204] sm:$0xf0]  ;;  %v8168_v53 = vld [vmem:[%s12380_s6 + $0x274] sm:$0xf]  ;;  %v6742_v57 = vld [vmem:[%s12380_s6 + $0x2f8] sm:$0xf0] }
 0x1eb   : > { %v6745_v10 = vor.u32 %v8184_v56, %v6742_v57  ;;  %v6686_v56 = vld [vmem:[%s12380_s6 + $0x288] sm:$0xf0] }
 0x1ec   : > { %2617 = vmatpush.bf16.msrb.mxu0 %v6468_v34  ;;  %2630 = vmatpush.bf16.msrb.mxu1 %v6344_v4  ;;  %v6661_v34 = vor.u32 %v8165_v2, %v6660_v1  ;;  %v9992_v4 = vld [vmem:[%s12383_s9] sm:$0x3]  ;;  %v8182_v1 = vld [vmem:[%s12380_s6 + $0x2e4] sm:$0xf]  ;;  %v6734_v2 = vld [vmem:[%s12380_s6 + $0x2e8] sm:$0xf0] }
 0x1ed   : > { %v1444_v11 = vperm.slane %v9992_v4, 0 }
 0x1f0   : > { %2618 = vmatpush.bf16.msrb.mxu0 %v6460_v35  ;;  %2631 = vmatpush.bf16.msrb.mxu1 %v6336_v17  ;;  %v6644_v35 = vld [vmem:[%s12380_s6 + $0x230] sm:$0xf]  ;;  %v8161_v17 = vld [vmem:[%s12380_s6 + $0x234] sm:$0xf0] }
 0x1f1   : > { %6020 = vmatmul.msk.bf16.vlgmr.msra.gmra.mxu3 %vm1816_vm4, %v1019_v63  ;;  %v6645_v48 = vor.u32 %v8161_v17, %v6644_v35  ;;  %v8166_v63 = vld [vmem:[%s12380_s6 + $0x264] sm:$0xf]  ;;  %v6718_v35 = vld [vmem:[%s12380_s6 + $0x2c8] sm:$0xf0]  ;;  %v1445_v17 = vperm.slane %v9992_v4, 1 }
 0x1f2   : > { %v6710_v4 = vld [vmem:[%s12380_s6 + $0x2b8] sm:$0xf0] }
 0x1f4   : > { %2619 = vmatpush.bf16.msrb.mxu0 %v6452_v32  ;;  %2632 = vmatpush.bf16.msrb.mxu1 %v6328_v33  ;;  %v6564_v32 = vld [vmem:[%s12380_s6 + $0x190] sm:$0xf] }
 0x1f5   : > { %v6565_v46 = vor.u32 %v8141_v37, %v6564_v32  ;;  %v6638_v32 = vld [vmem:[%s12380_s6 + $0x228] sm:$0xf0] }
 0x1f8   : > { %2620 = vmatpush.bf16.msrb.mxu0 %v6444_v51  ;;  %2633 = vmatpush.bf16.msrb.mxu1 %v6320_v9  ;;  %v1697_v21 = vpop.f32.mrf.mxu0  ;;  %v1710_v22 = vpop.f32.mrf.mxu1  ;;  %v8139_v51 = vld [vmem:[%s12380_s6 + $0x184] sm:$0xf0]  ;;  %v6620_v9 = vld [vmem:[%s12380_s6 + $0x200] sm:$0xf] }
 0x1f9   : > { %v1698_v23 = vadd.f32 %v1697_v21, %v1444_v11  ;;  %v6557_v58 = vor.u32 %v8139_v51, %v6556_v50  ;;  %v6621_v59 = vor.u32 %v8155_v52, %v6620_v9  ;;  %v6665_v11 = vor.u32 %v8164_v5, %v6662_v42 }
 0x1fb   : > { %2621 = vmatmul.bf16.vlgmr.msrb.gmra.mxu0 %v9149_v20  ;;  %2634 = vmatmul.bf16.vlgmr.msrb.gmra.mxu1 %v9145_v18  ;;  %v1711_v30 = vadd.f32 %v1710_v22, %v1698_v23  ;;  %v6721_v22 = vor.u32 %v8178_v16, %v6718_v35  ;;  %v8160_v23 = vld [vmem:[%s12380_s6 + $0x234] sm:$0xf] }
 0x1fc   : > { %2963 = vmatpush.bf16.msra.mxu0 %v6613_v54  ;;  %2976 = vmatpush.bf16.msra.mxu1 %v6677_v55  ;;  %v6678_v54 = vld [vmem:[%s12380_s6 + $0x278] sm:$0xf0] }
 0x200   : > { %2964 = vmatpush.bf16.msra.mxu0 %v6605_v61  ;;  %2977 = vmatpush.bf16.msra.mxu1 %v6669_v62  ;;  %v1723_v33 = vpop.f32.mrf.mxu2  ;;  %v10034_v36 = vpop.f32.mrf.mxu3  ;;  %v6681_v62 = vor.u32 %v8168_v53, %v6678_v54  ;;  %v8154_v53 = vld [vmem:[%s12380_s6 + $0x204] sm:$0xf]  ;;  %v6622_v54 = vld [vmem:[%s12380_s6 + $0x208] sm:$0xf0] }
 0x201   : > { %v1724_v39 = vadd.f32 %v1723_v33, %v1711_v30  ;;  %v1699_v40 = vpop.f32.mrf.mxu0  ;;  %v1712_v41 = vpop.f32.mrf.mxu1  ;;  %v1737_v26 = vadd.f32 %v10034_v36, %v1445_v17  ;;  %v8174_v33 = vld [vmem:[%s12380_s6 + $0x2a4] sm:$0xf]  ;;  %v6702_v36 = vld [vmem:[%s12380_s6 + $0x2a8] sm:$0xf0]  ;;  %v6625_v57 = vor.u32 %v8154_v53, %v6622_v54 }
 0x202   : > { %v8156_v40 = vld [vmem:[%s12380_s6 + $0x214] sm:$0xf]  ;;  %v6630_v41 = vld [vmem:[%s12380_s6 + $0x218] sm:$0xf0]  ;;  %v8050_v53 = vld [vmem:[%s12418_s4 + $0x1c4] sm:$0xf] }
 0x203   : > { %v1766_v45 = vpack.c.bf16 %v1724_v39, %v1724_v39  ;;  %v6705_v39 = vor.u32 %v8174_v33, %v6702_v36  ;;  %v6633_v9 = vor.u32 %v8156_v40, %v6630_v41  ;;  %v8054_v36 = vld [vmem:[%s12418_s4 + $0x1e4] sm:$0xf]  ;;  %v6242_v41 = vld [vmem:[%s12418_s4 + $0x2d0] sm:$0xf]  ;;  %v6108_v54 = vld [vmem:[%s12418_s4 + $0x1c8] sm:$0xf0] }
 0x204   : > { %2965 = vmatpush.bf16.msra.mxu0 %v6597_v3  ;;  %2978 = vmatpush.bf16.msra.mxu1 %v6661_v34  ;;  %v6673_v3 = vor.u32 %v8166_v63, %v6670_v0  ;;  %v6737_v34 = vor.u32 %v8182_v1, %v6734_v2 }
 0x205   : > { %v1866_v55 = vsel %vm1864_vm5, %v1766_v45, 0  ;;  %v8172_v45 = vld [vmem:[%s12380_s6 + $0x294] sm:$0xf] }
 0x206   : > { %1878 = vmatpush.bf16.msrb.mxu2 %v1866_v55  ;;  %v8170_v55 = vld [vmem:[%s12380_s6 + $0x284] sm:$0xf] }
 0x208   : > { %2966 = vmatpush.bf16.msra.mxu0 %v6589_v13  ;;  %2979 = vmatpush.bf16.msra.mxu1 %v6653_v14  ;;  %v1725_v60 = vpop.f32.mrf.mxu2  ;;  %v1738_v61 = vpop.f32.mrf.mxu3  ;;  %v6729_v13 = vor.u32 %v8180_v43, %v6726_v44  ;;  %v8162_v14 = vld [vmem:[%s12380_s6 + $0x244] sm:$0xf] }
 0x209   : > { %v6657_v21 = vor.u32 %v8162_v14, %v6654_v15 }
 0x20c   : > { %2967 = vmatpush.bf16.msra.mxu0 %v6581_v24  ;;  %2980 = vmatpush.bf16.msra.mxu1 %v6645_v48  ;;  %v6646_v24 = vld [vmem:[%s12380_s6 + $0x238] sm:$0xf0]  ;;  %v8176_v48 = vld [vmem:[%s12380_s6 + $0x2b4] sm:$0xf] }
 0x20d   : > { %v6649_v30 = vor.u32 %v8160_v23, %v6646_v24 }
 0x210   : > { %2968 = vmatpush.bf16.msra.mxu0 %v6573_v31  ;;  %2981 = vmatpush.bf16.msra.mxu1 %v6637_v12  ;;  %v6713_v31 = vor.u32 %v8176_v48, %v6710_v4  ;;  %v8158_v12 = vld [vmem:[%s12380_s6 + $0x224] sm:$0xf] }
 0x211   : > { %v6641_v49 = vor.u32 %v8158_v12, %v6638_v32  ;;  %v6250_v12 = vld [vmem:[%s12418_s4 + $0x2e0] sm:$0xf]  ;;  %v8087_v32 = vld [vmem:[%s12418_s4 + $0x2e4] sm:$0xf0] }
 0x214   : > { %2969 = vmatpush.bf16.msra.mxu0 %v6565_v46  ;;  %2982 = vmatpush.bf16.msra.mxu1 %v6629_v47  ;;  %v6694_v46 = vld [vmem:[%s12380_s6 + $0x298] sm:$0xf0] }
 0x215   : > { %v6697_v52 = vor.u32 %v8172_v45, %v6694_v46  ;;  %v8085_v45 = vld [vmem:[%s12418_s4 + $0x2d4] sm:$0xf0]  ;;  %v8052_v46 = vld [vmem:[%s12418_s4 + $0x1d4] sm:$0xf] }
 0x218   : > { %2970 = vmatpush.bf16.msra.mxu0 %v6557_v58  ;;  %2983 = vmatpush.bf16.msra.mxu1 %v6621_v59  ;;  %v1749_v27 = vpop.f32.mrf.mxu0  ;;  %v1762_v28 = vpop.f32.mrf.mxu1  ;;  %v6689_v58 = vor.u32 %v8170_v55, %v6686_v56  ;;  %v10164_v59 = vld [vmem:[%s12381_s7 + $0x2] sm:$0x3]  ;;  %v6111_v56 = vor.u32 %v8050_v53, %v6108_v54  ;;  %v6355_v53 = vld [vmem:[%s12379_s5 + $0x1d0] sm:$0xf]  ;;  %v8101_v54 = vld [vmem:[%s12379_s5 + $0x1d4] sm:$0xf0] }
 0x219   : > { %v1750_v29 = vadd.f32 %v1749_v27, %v1737_v26  ;;  %v1967_v60 = vperm.slane %v10164_v59, 0  ;;  %v6258_v27 = vld [vmem:[%s12418_s4 + $0x2f0] sm:$0xf] }
 0x21b   : > { %2971 = vmatmul.bf16.vlgmr.msra.gmra.mxu0 %v9145_v18  ;;  %2984 = vmatmul.bf16.vlgmr.msra.gmra.mxu1 %v9147_v19  ;;  %v1763_v37 = vadd.f32 %v1762_v28, %v1750_v29  ;;  %v8089_v28 = vld [vmem:[%s12418_s4 + $0x2f4] sm:$0xf0]  ;;  %v8056_v29 = vld [vmem:[%s12418_s4 + $0x1f4] sm:$0xf] }
 0x21c   : > { %3015 = vmatpush.bf16.msrb.mxu0 %v6681_v62  ;;  %3028 = vmatpush.bf16.msrb.mxu1 %v6745_v10 }
 0x21d   : > { %v1767_v38 = vpack.c.bf16 %v1763_v37, %v1763_v37  ;;  %v6124_v37 = vld [vmem:[%s12418_s4 + $0x1e8] sm:$0xf0] }
 0x21e   : > { %v6127_v40 = vor.u32 %v8054_v36, %v6124_v37  ;;  %v6371_v37 = vld [vmem:[%s12379_s5 + $0x1f0] sm:$0xf] }
 0x21f   : > { %v1869_v47 = vsel %vm1864_vm5, %v1767_v38, 0 }
 0x220   : > { %3016 = vmatpush.bf16.msrb.mxu0 %v6673_v3  ;;  %3029 = vmatpush.bf16.msrb.mxu1 %v6737_v34  ;;  %v1751_v50 = vpop.f32.mrf.mxu0  ;;  %v1764_v51 = vpop.f32.mrf.mxu1 }
 0x221   : > { %1891 = vmatpush.bf16.msrb.mxu3 %v1869_v47  ;;  %v6116_v47 = vld [vmem:[%s12418_s4 + $0x1d8] sm:$0xf0]  ;;  %v6243_v50 = vor.u32 %v8085_v45, %v6242_v41  ;;  %v6363_v45 = vld [vmem:[%s12379_s5 + $0x1e0] sm:$0xf] }
 0x222   : > { %v6119_v51 = vor.u32 %v8052_v46, %v6116_v47  ;;  %v8103_v47 = vld [vmem:[%s12379_s5 + $0x1e4] sm:$0xf0] }
 0x224   : > { %3017 = vmatpush.bf16.msrb.mxu0 %v6665_v11  ;;  %3030 = vmatpush.bf16.msrb.mxu1 %v6729_v13 }
 0x228   : > { %3018 = vmatpush.bf16.msrb.mxu0 %v6657_v21  ;;  %3031 = vmatpush.bf16.msrb.mxu1 %v6721_v22  ;;  %v10184_v22 = vld [vmem:[%s12383_s9 + $0x2] sm:$0x3] }
 0x229   : > { %v2719_v23 = vperm.slane %v10184_v22, 0 }
 0x22c   : > { %3019 = vmatpush.bf16.msrb.mxu0 %v6649_v30  ;;  %3032 = vmatpush.bf16.msrb.mxu1 %v6713_v31  ;;  %v6259_v30 = vor.u32 %v8089_v28, %v6258_v27  ;;  %v6132_v31 = vld [vmem:[%s12418_s4 + $0x1f8] sm:$0xf0]  ;;  %v6202_v27 = vld [vmem:[%s12418_s4 + $0x280] sm:$0xf]  ;;  %v8075_v28 = vld [vmem:[%s12418_s4 + $0x284] sm:$0xf0] }
 0x22d   : > { %v6135_v33 = vor.u32 %v8056_v29, %v6132_v31  ;;  %v8042_v29 = vld [vmem:[%s12418_s4 + $0x184] sm:$0xf]  ;;  %v6076_v31 = vld [vmem:[%s12418_s4 + $0x188] sm:$0xf0] }
 0x22e   : > { %2237 = vmatpush.bf16.msra.mxu2 %v6259_v30  ;;  %v6203_v30 = vor.u32 %v8075_v28, %v6202_v27  ;;  %v6323_v27 = vld [vmem:[%s12379_s5 + $0x190] sm:$0xf]  ;;  %v8093_v28 = vld [vmem:[%s12379_s5 + $0x194] sm:$0xf0] }
 0x22f   : > { %2250 = vmatpush.bf16.msra.mxu3 %v6135_v33 }
 0x230   : > { %3020 = vmatpush.bf16.msrb.mxu0 %v6641_v49  ;;  %3033 = vmatpush.bf16.msrb.mxu1 %v6705_v39  ;;  %v6251_v39 = vor.u32 %v8087_v32, %v6250_v12  ;;  %v6079_v12 = vor.u32 %v8042_v29, %v6076_v31  ;;  %v6387_v29 = vld [vmem:[%s12379_s5 + $0x210] sm:$0xf]  ;;  %v6324_v31 = vor.u32 %v8093_v28, %v6323_v27 }
 0x232   : > { %2238 = vmatpush.bf16.msra.mxu2 %v6251_v39  ;;  %v8121_v39 = vld [vmem:[%s12379_s5 + $0x274] sm:$0xf0] }
 0x233   : > { %2251 = vmatpush.bf16.msra.mxu3 %v6127_v40 }
 0x234   : > { %3021 = vmatpush.bf16.msrb.mxu0 %v6633_v9  ;;  %3034 = vmatpush.bf16.msrb.mxu1 %v6697_v52  ;;  %v6234_v9 = vld [vmem:[%s12418_s4 + $0x2c0] sm:$0xf]  ;;  %v8083_v52 = vld [vmem:[%s12418_s4 + $0x2c4] sm:$0xf0] }
 0x235   : > { %v6235_v55 = vor.u32 %v8083_v52, %v6234_v9  ;;  %v6364_v9 = vor.u32 %v8103_v47, %v6363_v45 }
 0x236   : > { %2239 = vmatpush.bf16.msra.mxu2 %v6243_v50  ;;  %v6427_v50 = vld [vmem:[%s12379_s5 + $0x260] sm:$0xf] }
 0x237   : > { %2252 = vmatpush.bf16.msra.mxu3 %v6119_v51  ;;  %v8119_v51 = vld [vmem:[%s12379_s5 + $0x264] sm:$0xf0] }
 0x238   : > { %3022 = vmatpush.bf16.msrb.mxu0 %v6625_v57  ;;  %3035 = vmatpush.bf16.msrb.mxu1 %v6689_v58  ;;  %v2220_v61 = vpop.f32.mrf.mxu0  ;;  %v2233_v62 = vpop.f32.mrf.mxu1  ;;  %v6428_v52 = vor.u32 %v8119_v51, %v6427_v50  ;;  %v8118_v50 = vld [vmem:[%s12379_s5 + $0x264] sm:$0xf]  ;;  %v6429_v51 = vld [vmem:[%s12379_s5 + $0x268] sm:$0xf0] }
 0x239   : > { %v2221_v10 = vadd.f32 %v2220_v61, %v1967_v60 }
 0x23a   : > { %2240 = vmatpush.bf16.msra.mxu2 %v6235_v55  ;;  %v6419_v55 = vld [vmem:[%s12379_s5 + $0x250] sm:$0xf] }
 0x23b   : > { %3023 = vmatmul.bf16.vlgmr.msrb.gmra.mxu0 %v9147_v19  ;;  %3036 = vmatmul.bf16.vlgmr.msrb.gmra.mxu1 %v9149_v20  ;;  %v10167_v63 = vadd.f32 %v2233_v62, %v2221_v10  ;;  %v6226_v62 = vld [vmem:[%s12418_s4 + $0x2b0] sm:$0xf]  ;;  %v8081_v10 = vld [vmem:[%s12418_s4 + $0x2b4] sm:$0xf0] }
 0x23c   : > { %2253 = vmatpush.bf16.msra.mxu3 %v6111_v56  ;;  %v8117_v56 = vld [vmem:[%s12379_s5 + $0x254] sm:$0xf0] }
 0x240   : > { %v2222_v0 = vpop.f32.mrf.mxu0  ;;  %v2235_v1 = vpop.f32.mrf.mxu1 }
 0x241   : > { %v8048_v0 = vld [vmem:[%s12418_s4 + $0x1b4] sm:$0xf]  ;;  %v6227_v1 = vor.u32 %v8081_v10, %v6226_v62  ;;  %v6347_v62 = vld [vmem:[%s12379_s5 + $0x1c0] sm:$0xf]  ;;  %v8099_v10 = vld [vmem:[%s12379_s5 + $0x1c4] sm:$0xf0] }
 0x243   : > { %2241 = vmatpush.bf16.msra.mxu2 %v6227_v1  ;;  %v8115_v1 = vld [vmem:[%s12379_s5 + $0x244] sm:$0xf0] }
 0x258   : > { %v10169_v2 = vpop.f32.mrf.mxu0  ;;  %v10171_v3 = vpop.f32.mrf.mxu1 }
 0x260   : > { %v2274_v34 = vpop.f32.mrf.mxu0  ;;  %v2287_v5 = vpop.f32.mrf.mxu1 }
 0x261   : > { %v6100_v34 = vld [vmem:[%s12418_s4 + $0x1b8] sm:$0xf0] }
 0x262   : > { %v6103_v5 = vor.u32 %v8048_v0, %v6100_v34  ;;  %v6411_v0 = vld [vmem:[%s12379_s5 + $0x240] sm:$0xf]  ;;  %v6348_v34 = vor.u32 %v8099_v10, %v6347_v62 }
 0x264   : > { %2254 = vmatpush.bf16.msra.mxu3 %v6103_v5  ;;  %v6412_v5 = vor.u32 %v8115_v1, %v6411_v0  ;;  %v8114_v0 = vld [vmem:[%s12379_s5 + $0x244] sm:$0xf]  ;;  %v6413_v1 = vld [vmem:[%s12379_s5 + $0x248] sm:$0xf0] }
 0x268   : > { %v1832_v42 = vpop.f32.mrf.mxu2 }
 0x270   : > { %v1834_v11 = vpop.f32.mrf.mxu2 }
 0x271   : > { %v8079_v11 = vld [vmem:[%s12418_s4 + $0x2a4] sm:$0xf0] }
 0x274   : > { %v1845_v13 = vpop.f32.mrf.mxu3 }
 0x275   : > { %v1846_v14 = vadd.f32 %v1845_v13, %v1832_v42  ;;  %v6218_v42 = vld [vmem:[%s12418_s4 + $0x2a0] sm:$0xf]  ;;  %v8046_v13 = vld [vmem:[%s12418_s4 + $0x1a4] sm:$0xf] }
 0x277   : > { %v10177_v35 = vmul.f32 0.07216878, %v1846_v14  ;;  %v6219_v14 = vor.u32 %v8079_v11, %v6218_v42  ;;  %v6339_v42 = vld [vmem:[%s12379_s5 + $0x1b0] sm:$0xf]  ;;  %v8097_v11 = vld [vmem:[%s12379_s5 + $0x1b4] sm:$0xf0] }
 0x278   : > { %v10173_v43 = vpop.f32.mrf.mxu0  ;;  %v10175_v44 = vpop.f32.mrf.mxu1 }
 0x279   : > { %v1851_v17 = vsel %vm1850_vm6, %v10177_v35, -inf  ;;  %2242 = vmatpush.bf16.msra.mxu2 %v6219_v14  ;;  %v8113_v14 = vld [vmem:[%s12379_s5 + $0x234] sm:$0xf0] }
 0x27a   : > { %1852 = vmax.xlane.f32.xlu1 %v1851_v17  ;;  %v6210_v17 = vld [vmem:[%s12418_s4 + $0x290] sm:$0xf] }
 0x27c   : > { %v1847_v21 = vpop.f32.mrf.mxu3 }
 0x27d   : > { %v8077_v21 = vld [vmem:[%s12418_s4 + $0x294] sm:$0xf0] }
 0x280   : > { %v2624_v15 = vpop.f32.mrf.mxu0  ;;  %v2637_v16 = vpop.f32.mrf.mxu1 }
 0x281   : > { %v6092_v15 = vld [vmem:[%s12418_s4 + $0x1a8] sm:$0xf0] }
 0x282   : > { %v6095_v16 = vor.u32 %v8046_v13, %v6092_v15  ;;  %v6403_v13 = vld [vmem:[%s12379_s5 + $0x230] sm:$0xf]  ;;  %v6340_v15 = vor.u32 %v8097_v11, %v6339_v42  ;;  %v6416_v42 = vor.u32 %v8114_v0, %v6413_v1 }
 0x284   : > { %2255 = vmatpush.bf16.msra.mxu3 %v6095_v16  ;;  %v6404_v16 = vor.u32 %v8113_v14, %v6403_v13  ;;  %v8112_v13 = vld [vmem:[%s12379_s5 + $0x234] sm:$0xf]  ;;  %v6405_v14 = vld [vmem:[%s12379_s5 + $0x238] sm:$0xf0] }
 0x298   : > { %v2972_v24 = vpop.f32.mrf.mxu0  ;;  %v2985_v48 = vpop.f32.mrf.mxu1 }
 0x299   : > { %v2973_v4 = vadd.f32 %v2972_v24, %v2719_v23  ;;  %v8044_v23 = vld [vmem:[%s12418_s4 + $0x194] sm:$0xf]  ;;  %v6211_v24 = vor.u32 %v8077_v21, %v6210_v17  ;;  %v6331_v17 = vld [vmem:[%s12379_s5 + $0x1a0] sm:$0xf]  ;;  %v8095_v21 = vld [vmem:[%s12379_s5 + $0x1a4] sm:$0xf0] }
 0x29b   : > { %v10187_v26 = vadd.f32 %v2985_v48, %v2973_v4  ;;  %v6084_v48 = vld [vmem:[%s12418_s4 + $0x198] sm:$0xf0]  ;;  %2243 = vmatpush.bf16.msra.mxu2 %v6211_v24  ;;  %v8111_v24 = vld [vmem:[%s12379_s5 + $0x224] sm:$0xf0] }
 0x29c   : > { %v6087_v4 = vor.u32 %v8044_v23, %v6084_v48  ;;  %v6395_v23 = vld [vmem:[%s12379_s5 + $0x220] sm:$0xf]  ;;  %v6332_v48 = vor.u32 %v8095_v21, %v6331_v17  ;;  %v6408_v17 = vor.u32 %v8112_v13, %v6405_v14  ;;  %v6708_v14 = vld [vmem:[%s12380_s6 + $0x2b0] sm:$0xf] }
 0x29e   : > { %2256 = vmatpush.bf16.msra.mxu3 %v6087_v4  ;;  %v6396_v4 = vor.u32 %v8111_v24, %v6395_v23  ;;  %v8110_v23 = vld [vmem:[%s12379_s5 + $0x224] sm:$0xf]  ;;  %v6397_v24 = vld [vmem:[%s12379_s5 + $0x228] sm:$0xf0] }
 0x29f   : > { %2244 = vmatpush.bf16.msra.mxu2 %v6203_v30  ;;  %v8109_v30 = vld [vmem:[%s12379_s5 + $0x214] sm:$0xf0]  ;;  %v6400_v27 = vor.u32 %v8110_v23, %v6397_v24  ;;  %v6700_v24 = vld [vmem:[%s12380_s6 + $0x2a0] sm:$0xf] }
 0x2a0   : > { %v2974_v38 = vpop.f32.mrf.mxu0  ;;  %v2987_v49 = vpop.f32.mrf.mxu1 }
 0x2a1   : > { %v8105_v38 = vld [vmem:[%s12379_s5 + $0x1f4] sm:$0xf0]  ;;  %v6435_v49 = vld [vmem:[%s12379_s5 + $0x270] sm:$0xf] }
 0x2a2   : > { %2257 = vmatpush.bf16.msra.mxu3 %v6079_v12  ;;  %v6436_v41 = vor.u32 %v8121_v39, %v6435_v49  ;;  %v6388_v12 = vor.u32 %v8109_v30, %v6387_v29  ;;  %v6437_v49 = vld [vmem:[%s12379_s5 + $0x278] sm:$0xf0]  ;;  %v8136_v39 = vld [vmem:[%s12379_s5 + $0x2f4] sm:$0xf] }
 0x2a3   : > { %v8108_v29 = vld [vmem:[%s12379_s5 + $0x214] sm:$0xf]  ;;  %v6389_v30 = vld [vmem:[%s12379_s5 + $0x218] sm:$0xf0] }
 0x2b8   : > { %v10237_v57 = vpop.f32.mrf.mxu0  ;;  %v10239_v58 = vpop.f32.mrf.mxu1 }
 0x2c0   : > { %v3026_v60 = vpop.f32.mrf.mxu0  ;;  %v3039_v61 = vpop.f32.mrf.mxu1 }
 0x2c1   : > { %v6356_v60 = vor.u32 %v8101_v54, %v6355_v53  ;;  %v6420_v61 = vor.u32 %v8117_v56, %v6419_v55  ;;  %v6432_v53 = vor.u32 %v8118_v50, %v6429_v51  ;;  %v8116_v55 = vld [vmem:[%s12379_s5 + $0x254] sm:$0xf]  ;;  %v6421_v56 = vld [vmem:[%s12379_s5 + $0x258] sm:$0xf0] }
 0x2c2   : > { %v6424_v62 = vor.u32 %v8116_v55, %v6421_v56 }
 0x2ed   : > { %v1853_v32 = vpop.xlane.xlu1 %1852 }
 0x2ee   : > { %v1854_v33 = vsub.f32 %v10177_v35, %v1853_v32  ;;  %v6372_v35 = vor.u32 %v8105_v38, %v6371_v37  ;;  %v6315_v32 = vld [vmem:[%s12379_s5 + $0x180] sm:$0xf]  ;;  %v8107_v37 = vld [vmem:[%s12379_s5 + $0x204] sm:$0xf0]  ;;  %v8120_v38 = vld [vmem:[%s12379_s5 + $0x274] sm:$0xf] }
 0x2f0   : > { %v1855_v36 = vmul.f32 1.442695, %v1854_v33  ;;  %v8091_v33 = vld [vmem:[%s12379_s5 + $0x184] sm:$0xf0] }
 0x2f2   : > { %8461 = vpow2.f32 %v1855_v36  ;;  %v6379_v36 = vld [vmem:[%s12379_s5 + $0x200] sm:$0xf] }
 0x2f3   : > { %v6380_v45 = vor.u32 %v8107_v37, %v6379_v36  ;;  %v8106_v36 = vld [vmem:[%s12379_s5 + $0x204] sm:$0xf]  ;;  %v6381_v37 = vld [vmem:[%s12379_s5 + $0x208] sm:$0xf0] }
 0x2f8   : > { %v10302_v40 = vpop.eup %8461 }
 0x2f9   : > { %v1860_v46 = vpack.c.bf16 %v10302_v40, %v10302_v40 }
 0x2fb   : > { %6021 = vmatmul.msk.bf16.vlgmr.msrb.gmra.mxu2 %vm1850_vm6, %v1860_v46  ;;  %6022 = vmatmul.msk.bf16.vlgmr.msrb.gmra.mxu3 %vm1850_vm6, %v1860_v46  ;;  %v6440_v46 = vor.u32 %v8120_v38, %v6437_v49  ;;  %v8122_v38 = vld [vmem:[%s12379_s5 + $0x284] sm:$0xf]  ;;  %v6445_v49 = vld [vmem:[%s12379_s5 + $0x288] sm:$0xf0] }
 0x2fc   : > { %2587 = vmatpush.bf16.msrb.mxu2 %v6372_v35  ;;  %2600 = vmatpush.bf16.msrb.mxu3 %v6436_v41  ;;  %v6501_v35 = vld [vmem:[%s12379_s5 + $0x2f8] sm:$0xf0]  ;;  %v6316_v41 = vor.u32 %v8091_v33, %v6315_v32  ;;  %v6392_v32 = vor.u32 %v8108_v29, %v6389_v30  ;;  %v6692_v30 = vld [vmem:[%s12380_s6 + $0x290] sm:$0xf] }
 0x2fd   : > { %v6504_v47 = vor.u32 %v8136_v39, %v6501_v35  ;;  %v6740_v39 = vld [vmem:[%s12380_s6 + $0x2f0] sm:$0xf]  ;;  %v8185_v35 = vld [vmem:[%s12380_s6 + $0x2f4] sm:$0xf0] }
 0x2fe   : > { %v6741_v50 = vor.u32 %v8185_v35, %v6740_v39  ;;  %v6558_v39 = vld [vmem:[%s12380_s6 + $0x188] sm:$0xf0] }
 0x300   : > { %2588 = vmatpush.bf16.msrb.mxu2 %v6364_v9  ;;  %2601 = vmatpush.bf16.msrb.mxu3 %v6428_v52  ;;  %v8134_v9 = vld [vmem:[%s12379_s5 + $0x2e4] sm:$0xf]  ;;  %v6493_v52 = vld [vmem:[%s12379_s5 + $0x2e8] sm:$0xf0] }
 0x301   : > { %v6496_v54 = vor.u32 %v8134_v9, %v6493_v52  ;;  %v6732_v9 = vld [vmem:[%s12380_s6 + $0x2e0] sm:$0xf]  ;;  %v8183_v52 = vld [vmem:[%s12380_s6 + $0x2e4] sm:$0xf0] }
 0x302   : > { %v6733_v55 = vor.u32 %v8183_v52, %v6732_v9 }
 0x304   : > { %2589 = vmatpush.bf16.msrb.mxu2 %v6356_v60  ;;  %2602 = vmatpush.bf16.msrb.mxu3 %v6420_v61  ;;  %v8132_v60 = vld [vmem:[%s12379_s5 + $0x2d4] sm:$0xf]  ;;  %v6485_v61 = vld [vmem:[%s12379_s5 + $0x2d8] sm:$0xf0] }
 0x305   : > { %v6488_v10 = vor.u32 %v8132_v60, %v6485_v61  ;;  %v6724_v60 = vld [vmem:[%s12380_s6 + $0x2d0] sm:$0xf]  ;;  %v8181_v61 = vld [vmem:[%s12380_s6 + $0x2d4] sm:$0xf0] }
 0x306   : > { %v6725_v0 = vor.u32 %v8181_v61, %v6724_v60 }
 0x308   : > { %2590 = vmatpush.bf16.msrb.mxu2 %v6348_v34  ;;  %2603 = vmatpush.bf16.msrb.mxu3 %v6412_v5  ;;  %v8130_v34 = vld [vmem:[%s12379_s5 + $0x2c4] sm:$0xf]  ;;  %v6477_v5 = vld [vmem:[%s12379_s5 + $0x2c8] sm:$0xf0] }
 0x309   : > { %v6480_v11 = vor.u32 %v8130_v34, %v6477_v5  ;;  %v6716_v34 = vld [vmem:[%s12380_s6 + $0x2c0] sm:$0xf]  ;;  %v8179_v5 = vld [vmem:[%s12380_s6 + $0x2c4] sm:$0xf0] }
 0x30b   : > { %2245 = vmatmul.bf16.vlgmr.msra.gmra.mxu2 %v9149_v20  ;;  %2258 = vmatmul.bf16.vlgmr.msra.gmra.mxu3 %v9145_v18 }
 0x30c   : > { %2591 = vmatpush.bf16.msrb.mxu2 %v6340_v15  ;;  %2604 = vmatpush.bf16.msrb.mxu3 %v6404_v16  ;;  %v8128_v15 = vld [vmem:[%s12379_s5 + $0x2b4] sm:$0xf]  ;;  %v6469_v16 = vld [vmem:[%s12379_s5 + $0x2b8] sm:$0xf0] }
 0x30d   : > { %v6472_v21 = vor.u32 %v8128_v15, %v6469_v16  ;;  %v8177_v15 = vld [vmem:[%s12380_s6 + $0x2b4] sm:$0xf0]  ;;  %v8144_v16 = vld [vmem:[%s12380_s6 + $0x1b4] sm:$0xf] }
 0x310   : > { %2592 = vmatpush.bf16.msrb.mxu2 %v6332_v48  ;;  %2605 = vmatpush.bf16.msrb.mxu3 %v6396_v4  ;;  %v8126_v48 = vld [vmem:[%s12379_s5 + $0x2a4] sm:$0xf]  ;;  %v6461_v4 = vld [vmem:[%s12379_s5 + $0x2a8] sm:$0xf0] }
 0x311   : > { %v6464_v28 = vor.u32 %v8126_v48, %v6461_v4  ;;  %v8175_v48 = vld [vmem:[%s12380_s6 + $0x2a4] sm:$0xf0]  ;;  %v8142_v4 = vld [vmem:[%s12380_s6 + $0x1a4] sm:$0xf] }
 0x314   : > { %2593 = vmatpush.bf16.msrb.mxu2 %v6324_v31  ;;  %2606 = vmatpush.bf16.msrb.mxu3 %v6388_v12  ;;  %v8124_v31 = vld [vmem:[%s12379_s5 + $0x294] sm:$0xf]  ;;  %v6453_v12 = vld [vmem:[%s12379_s5 + $0x298] sm:$0xf0] }
 0x315   : > { %v6456_v33 = vor.u32 %v8124_v31, %v6453_v12  ;;  %v8173_v31 = vld [vmem:[%s12380_s6 + $0x294] sm:$0xf0]  ;;  %v8140_v12 = vld [vmem:[%s12380_s6 + $0x194] sm:$0xf] }
 0x318   : > { %2594 = vmatpush.bf16.msrb.mxu2 %v6316_v41  ;;  %2607 = vmatpush.bf16.msrb.mxu3 %v6380_v45  ;;  %v8152_v41 = vld [vmem:[%s12380_s6 + $0x1f4] sm:$0xf]  ;;  %v6614_v45 = vld [vmem:[%s12380_s6 + $0x1f8] sm:$0xf0] }
 0x319   : > { %v6617_v51 = vor.u32 %v8152_v41, %v6614_v45 }
 0x31b   : > { %2595 = vmatmul.bf16.vlgmr.msrb.gmra.mxu2 %v9145_v18  ;;  %2608 = vmatmul.bf16.vlgmr.msrb.gmra.mxu3 %v9147_v19 }
 0x31c   : > { %2639 = vmatpush.bf16.msra.mxu2 %v6440_v46  ;;  %2652 = vmatpush.bf16.msra.mxu3 %v6504_v47  ;;  %v6384_v46 = vor.u32 %v8106_v36, %v6381_v37  ;;  %v6448_v47 = vor.u32 %v8122_v38, %v6445_v49  ;;  %v6684_v37 = vld [vmem:[%s12380_s6 + $0x280] sm:$0xf]  ;;  %v8171_v38 = vld [vmem:[%s12380_s6 + $0x284] sm:$0xf0]  ;;  %v8138_v49 = vld [vmem:[%s12380_s6 + $0x184] sm:$0xf] }
 0x31d   : > { %v6685_v35 = vor.u32 %v8171_v38, %v6684_v37  ;;  %v6561_v41 = vor.u32 %v8138_v49, %v6558_v39  ;;  %v8208_v39 = vld [vmem:[%s12384_s10 + $0x1d0] sm:$0xf0] }
 0x320   : > { %2640 = vmatpush.bf16.msra.mxu2 %v6432_v53  ;;  %2653 = vmatpush.bf16.msra.mxu3 %v6496_v54  ;;  %v8150_v53 = vld [vmem:[%s12380_s6 + $0x1e4] sm:$0xf]  ;;  %v6606_v54 = vld [vmem:[%s12380_s6 + $0x1e8] sm:$0xf0] }
 0x321   : > { %v6609_v56 = vor.u32 %v8150_v53, %v6606_v54  ;;  %v6312_v54 = vld [vmem:[%s12382_s8 + $0x2] sm:$0x3] }
 0x324   : > { %2641 = vmatpush.bf16.msra.mxu2 %v6424_v62  ;;  %2654 = vmatpush.bf16.msra.mxu3 %v6488_v10  ;;  %v8148_v62 = vld [vmem:[%s12380_s6 + $0x1d4] sm:$0xf]  ;;  %v6598_v10 = vld [vmem:[%s12380_s6 + $0x1d8] sm:$0xf0] }
 0x325   : > { %v6601_v1 = vor.u32 %v8148_v62, %v6598_v10 }
 0x328   : > { %2642 = vmatpush.bf16.msra.mxu2 %v6416_v42  ;;  %2655 = vmatpush.bf16.msra.mxu3 %v6480_v11  ;;  %v8146_v42 = vld [vmem:[%s12380_s6 + $0x1c4] sm:$0xf]  ;;  %v6717_v11 = vor.u32 %v8179_v5, %v6716_v34  ;;  %v2344_v5 = vperm.slane %v6312_v54, 1 }
 0x32c   : > { %2643 = vmatpush.bf16.msra.mxu2 %v6408_v17  ;;  %2656 = vmatpush.bf16.msra.mxu3 %v6472_v21  ;;  %v6582_v17 = vld [vmem:[%s12380_s6 + $0x1b8] sm:$0xf0]  ;;  %v6709_v21 = vor.u32 %v8177_v15, %v6708_v14 }
 0x32d   : > { %v6585_v23 = vor.u32 %v8144_v16, %v6582_v17 }
 0x330   : > { %2644 = vmatpush.bf16.msra.mxu2 %v6400_v27  ;;  %2657 = vmatpush.bf16.msra.mxu3 %v6464_v28  ;;  %v6574_v27 = vld [vmem:[%s12380_s6 + $0x1a8] sm:$0xf0]  ;;  %v6701_v28 = vor.u32 %v8175_v48, %v6700_v24 }
 0x331   : > { %v6577_v29 = vor.u32 %v8142_v4, %v6574_v27 }
 0x334   : > { %2645 = vmatpush.bf16.msra.mxu2 %v6392_v32  ;;  %2658 = vmatpush.bf16.msra.mxu3 %v6456_v33  ;;  %v6566_v32 = vld [vmem:[%s12380_s6 + $0x198] sm:$0xf0]  ;;  %v6693_v33 = vor.u32 %v8173_v31, %v6692_v30 }
 0x335   : > { %v6569_v36 = vor.u32 %v8140_v12, %v6566_v32 }
 0x338   : > { %2646 = vmatpush.bf16.msra.mxu2 %v6384_v46  ;;  %2659 = vmatpush.bf16.msra.mxu3 %v6448_v47 }
 0x33b   : > { %2647 = vmatmul.bf16.vlgmr.msra.gmra.mxu2 %v9147_v19  ;;  %2660 = vmatmul.bf16.vlgmr.msra.gmra.mxu3 %v9149_v20  ;;  %v6590_v19 = vld [vmem:[%s12380_s6 + $0x1c8] sm:$0xf0] }
 0x33c   : > { %2989 = vmatpush.bf16.msrb.mxu2 %v6741_v50  ;;  %3002 = vmatpush.bf16.msrb.mxu3 %v6617_v51  ;;  %v6593_v13 = vor.u32 %v8146_v42, %v6590_v19  ;;  %v1968_v42 = vperm.slane %v10164_v59, 1  ;;  %v2636_v19 = vadd.f32 %v10175_v44, %v2344_v5  ;;  %v2720_v59 = vperm.slane %v10184_v22, 1 }
 0x340   : > { %2990 = vmatpush.bf16.msrb.mxu2 %v6733_v55  ;;  %3003 = vmatpush.bf16.msrb.mxu3 %v6609_v56  ;;  %v2343_v55 = vperm.slane %v6312_v54, 0 }
 0x344   : > { %2991 = vmatpush.bf16.msrb.mxu2 %v6725_v0  ;;  %3004 = vmatpush.bf16.msrb.mxu3 %v6601_v1 }
 0x348   : > { %2992 = vmatpush.bf16.msrb.mxu2 %v6717_v11  ;;  %3005 = vmatpush.bf16.msrb.mxu3 %v6593_v13 }
 0x34c   : > { %2993 = vmatpush.bf16.msrb.mxu2 %v6709_v21  ;;  %3006 = vmatpush.bf16.msrb.mxu3 %v6585_v23 }
 0x350   : > { %2994 = vmatpush.bf16.msrb.mxu2 %v6701_v28  ;;  %3007 = vmatpush.bf16.msrb.mxu3 %v6577_v29 }
 0x354   : > { %2995 = vmatpush.bf16.msrb.mxu2 %v6693_v33  ;;  %3008 = vmatpush.bf16.msrb.mxu3 %v6569_v36 }
 0x358   : > { %2996 = vmatpush.bf16.msrb.mxu2 %v6685_v35  ;;  %3009 = vmatpush.bf16.msrb.mxu3 %v6561_v41  ;;  %v8207_v35 = vld [vmem:[%s12384_s10 + $0x1cc] sm:$0xf] }
 0x35b   : > { %2997 = vmatmul.bf16.vlgmr.msrb.gmra.mxu2 %v9149_v20  ;;  %3010 = vmatmul.bf16.vlgmr.msrb.gmra.mxu3 %v9145_v18 }
 0x37e   : > { %v10592_v45 = vpop.f32.mrf.mxu2  ;;  %v10594_v46 = vpop.f32.mrf.mxu3 }
 0x386   : > { %v1882_v47 = vpop.f32.mrf.mxu2  ;;  %v1895_v50 = vpop.f32.mrf.mxu3 }
 0x387   : > { %v6885_v47 = vld [vmem:[%s12384_s10 + $0x1d4] sm:$0xf0]  ;;  %v6871_v50 = vld [vmem:[%s12384_s10 + $0x1b0] sm:$0xf] }
 0x38e   : > { %v2246_v51 = vpop.f32.mrf.mxu2  ;;  %v2259_v9 = vpop.f32.mrf.mxu3 }
 0x38f   : > { %v2247_v1 = vadd.f32 %v2246_v51, %v10167_v63  ;;  %v2260_v14 = vadd.f32 %v2259_v9, %v1968_v42  ;;  %v8205_v51 = vld [vmem:[%s12384_s10 + $0x1b8] sm:$0xf0]  ;;  %v6888_v9 = vor.u32 %v8207_v35, %v6885_v47  ;;  %v6847_v42 = vld [vmem:[%s12384_s10 + $0x180] sm:$0xf]  ;;  %v6813_v47 = vld [vmem:[%s12384_s10 + $0x144] sm:$0xf0] }
 0x390   : > { %v6872_v54 = vor.u32 %v8205_v51, %v6871_v50  ;;  %v8213_v50 = vld [vmem:[%s12384_s10 + $0x1fc] sm:$0xf] }
 0x391   : > { %v2289_v34 = vpack.c.bf16 %v2247_v1, %v2247_v1  ;;  %v8219_v1 = vld [vmem:[%s12384_s10 + $0x22c] sm:$0xf] }
 0x396   : > { %v2248_v52 = vpop.f32.mrf.mxu2  ;;  %v2261_v53 = vpop.f32.mrf.mxu3 }
 0x397   : > { %v8204_v52 = vld [vmem:[%s12384_s10 + $0x1b4] sm:$0xf]  ;;  %v6873_v53 = vld [vmem:[%s12384_s10 + $0x1bc] sm:$0xf0] }
 0x39e   : > { %v2596_v56 = vpop.f32.mrf.mxu2  ;;  %v2609_v60 = vpop.f32.mrf.mxu3 }
 0x39f   : > { %v2597_v20 = vadd.f32 %v2596_v56, %v2343_v55  ;;  %v6876_v55 = vor.u32 %v8204_v52, %v6873_v53  ;;  %v6859_v56 = vld [vmem:[%s12384_s10 + $0x198] sm:$0xf]  ;;  %v6799_v52 = vld [vmem:[%s12384_s10 + $0x120] sm:$0xf]  ;;  %v8187_v53 = vld [vmem:[%s12384_s10 + $0x128] sm:$0xf0] }
 0x3a1   : > { %v2610_v61 = vadd.f32 %v2609_v60, %v2597_v20  ;;  %v8202_v60 = vld [vmem:[%s12384_s10 + $0x1a0] sm:$0xf0]  ;;  %v8201_v20 = vld [vmem:[%s12384_s10 + $0x19c] sm:$0xf] }
 0x3a3   : > { %v2623_v18 = vadd.f32 %v10173_v43, %v2610_v61  ;;  %v2273_v43 = vadd.f32 %v10169_v2, %v2260_v14  ;;  %v6861_v61 = vld [vmem:[%s12384_s10 + $0x1a4] sm:$0xf0]  ;;  %v8198_v14 = vld [vmem:[%s12384_s10 + $0x184] sm:$0xf] }
 0x3a4   : > { %v6864_v5 = vor.u32 %v8201_v20, %v6861_v61  ;;  %v6891_v20 = vld [vmem:[%s12384_s10 + $0x1d0] sm:$0xf] }
 0x3a5   : > { %v2665_v62 = vpack.c.bf16 %v2623_v18, %v2623_v18  ;;  %v2286_v63 = vadd.f32 %v10171_v3, %v2273_v43  ;;  %v6931_v18 = vld [vmem:[%s12384_s10 + $0x228] sm:$0xf] }
 0x3a6   : > { %v2598_v10 = vpop.f32.mrf.mxu2  ;;  %v2611_v0 = vpop.f32.mrf.mxu3 }
 0x3a7   : > { %3105 = vmatpush.bf16.xpose.msra.mxu2 %v2665_v62  ;;  %v2290_v48 = vpack.c.bf16 %v2286_v63, %v2286_v63  ;;  %v8220_v62 = vld [vmem:[%s12384_s10 + $0x230] sm:$0xf0]  ;;  %v6860_v10 = vor.u32 %v8202_v60, %v6859_v56  ;;  %v6835_v63 = vld [vmem:[%s12384_s10 + $0x168] sm:$0xf]  ;;  %v6895_v56 = vld [vmem:[%s12384_s10 + $0x1e0] sm:$0xf] }
 0x3a8   : > { %v6932_v0 = vor.u32 %v8220_v62, %v6931_v18  ;;  %v8211_v60 = vld [vmem:[%s12384_s10 + $0x1e8] sm:$0xf0]  ;;  %v8209_v18 = vld [vmem:[%s12384_s10 + $0x1d8] sm:$0xf0]  ;;  %v7030_v62 = vld [vmem:[%s12384_s10 + $0xa8] sm:$0xf] }
 0x3a9   : > { %v6896_v61 = vor.u32 %v8211_v60, %v6895_v56 }
 0x3aa   : > { %3400 = vmatpush.bf16.msra.mxu1 %v6932_v0  ;;  %v6892_v0 = vor.u32 %v8209_v18, %v6891_v20  ;;  %v6982_v20 = vld [vmem:[%s12384_s10 + $0x48] sm:$0xf] }
 0x3ae   : > { %3106 = vmatmul.bf16.vlgmr.msra.gmra.mxu2 %v2289_v34  ;;  %v6933_v34 = vld [vmem:[%s12384_s10 + $0x234] sm:$0xf0] }
 0x3be   : > { %v2648_v11 = vpop.f32.mrf.mxu2  ;;  %v2661_v13 = vpop.f32.mrf.mxu3 }
 0x3bf   : > { %v2649_v15 = vadd.f32 %v2648_v11, %v2636_v19  ;;  %v8199_v19 = vld [vmem:[%s12384_s10 + $0x188] sm:$0xf0]  ;;  %v6936_v11 = vor.u32 %v8219_v1, %v6933_v34  ;;  %v8186_v34 = vld [vmem:[%s12384_s10 + $0x124] sm:$0xf] }
 0x3c1   : > { %v2662_v16 = vadd.f32 %v2661_v13, %v2649_v15  ;;  %v6919_v13 = vld [vmem:[%s12384_s10 + $0x210] sm:$0xf] }
 0x3c2   : > { %v6849_v15 = vld [vmem:[%s12384_s10 + $0x18c] sm:$0xf0] }
 0x3c3   : > { %v2666_v17 = vpack.c.bf16 %v2662_v16, %v2662_v16  ;;  %v8217_v16 = vld [vmem:[%s12384_s10 + $0x218] sm:$0xf0] }
 0x3c4   : > { %v6920_v43 = vor.u32 %v8217_v16, %v6919_v13  ;;  %v6939_v13 = vld [vmem:[%s12384_s10 + $0x230] sm:$0xf] }
 0x3c5   : > { %v3096_v21 = vsel %vm1816_vm4, %v2666_v17, 0 }
 0x3c6   : > { %v2650_v23 = vpop.f32.mrf.mxu2  ;;  %v2663_v24 = vpop.f32.mrf.mxu3  ;;  %3118 = vmatpush.bf16.xpose.msra.mxu3 %v3096_v21  ;;  %v6848_v21 = vor.u32 %v8199_v19, %v6847_v42  ;;  %3401 = vmatpush.bf16.msra.mxu1 %v6920_v43  ;;  %v8210_v42 = vld [vmem:[%s12384_s10 + $0x1e4] sm:$0xf]  ;;  %v7078_v43 = vld [vmem:[%s12384_s10 + $0x108] sm:$0xf] }
 0x3c7   : > { %v6852_v24 = vor.u32 %v8198_v14, %v6849_v15  ;;  %v8221_v14 = vld [vmem:[%s12384_s10 + $0x238] sm:$0xf0] }
 0x3c8   : > { %v6940_v16 = vor.u32 %v8221_v14, %v6939_v13  ;;  %v8010_v14 = vld [vmem:[%s12384_s10 + $0x20] sm:$0xf0] }
 0x3cd   : > { %6794 = vmatmul.msk.bf16.vlgmr.msra.gmra.mxu3 %vm1816_vm4, %v2290_v48  ;;  %v8196_v48 = vld [vmem:[%s12384_s10 + $0x170] sm:$0xf0] }
 0x3de   : > { %v2998_v44 = vpop.f32.mrf.mxu2  ;;  %v3011_v4 = vpop.f32.mrf.mxu3 }
 0x3df   : > { %v2999_v27 = vadd.f32 %v2998_v44, %v10187_v26  ;;  %v3012_v28 = vadd.f32 %v3011_v4, %v2720_v59  ;;  %v8195_v59 = vld [vmem:[%s12384_s10 + $0x16c] sm:$0xf]  ;;  %v6837_v44 = vld [vmem:[%s12384_s10 + $0x174] sm:$0xf0] }
 0x3e1   : > { %v3041_v29 = vpack.c.bf16 %v2999_v27, %v2999_v27  ;;  %v3025_v2 = vadd.f32 %v10237_v57, %v3012_v28  ;;  %v6836_v27 = vor.u32 %v8196_v48, %v6835_v63  ;;  %v6840_v28 = vor.u32 %v8195_v59, %v6837_v44  ;;  %v7018_v63 = vld [vmem:[%s12384_s10 + $0x90] sm:$0xf]  ;;  %v8025_v48 = vld [vmem:[%s12384_s10 + $0x98] sm:$0xf0] }
 0x3e2   : > { %v7019_v44 = vor.u32 %v8025_v48, %v7018_v63 }
 0x3e3   : > { %v3139_v30 = vsel %vm1864_vm5, %v3041_v29, 0  ;;  %v3038_v31 = vadd.f32 %v10239_v58, %v3025_v2  ;;  %v6883_v58 = vld [vmem:[%s12384_s10 + $0x1c8] sm:$0xf]  ;;  %v6823_v29 = vld [vmem:[%s12384_s10 + $0x150] sm:$0xf] }
 0x3e4   : > { %3151 = vmatpush.bf16.msrb.mxu2 %v3139_v30  ;;  %v6884_v41 = vor.u32 %v8208_v39, %v6883_v58  ;;  %v8193_v2 = vld [vmem:[%s12384_s10 + $0x158] sm:$0xf0]  ;;  %v6907_v58 = vld [vmem:[%s12384_s10 + $0x1f8] sm:$0xf]  ;;  %v8214_v39 = vld [vmem:[%s12384_s10 + $0x200] sm:$0xf0] }
 0x3e5   : > { %v3042_v12 = vpack.c.bf16 %v3038_v31, %v3038_v31  ;;  %v6824_v30 = vor.u32 %v8193_v2, %v6823_v29  ;;  %v6908_v35 = vor.u32 %v8214_v39, %v6907_v58  ;;  %v8037_v2 = vld [vmem:[%s12384_s10 + $0xf8] sm:$0xf0] }
 0x3e6   : > { %v3000_v3 = vpop.f32.mrf.mxu2  ;;  %v3013_v32 = vpop.f32.mrf.mxu3  ;;  %3383 = vmatpush.bf16.msra.mxu0 %v6884_v41  ;;  %v8189_v41 = vld [vmem:[%s12384_s10 + $0x13c] sm:$0xf] }
 0x3e7   : > { %v3142_v33 = vsel %vm1864_vm5, %v3042_v12, 0  ;;  %v1857_v32 = vsel %vm1850_vm6, %v10302_v40, 0.0  ;;  %v6811_v40 = vld [vmem:[%s12384_s10 + $0x138] sm:$0xf]  ;;  %3402 = vmatpush.bf16.msra.mxu1 %v6908_v35  ;;  %v6816_v51 = vor.u32 %v8189_v41, %v6813_v47  ;;  %v6994_v35 = vld [vmem:[%s12384_s10 + $0x60] sm:$0xf] }
 0x3e8   : > { %3164 = vmatpush.bf16.msrb.mxu3 %v3142_v33  ;;  %3409 = vmatpush.bf16.msra.mxu2 %v6888_v9  ;;  %v8192_v33 = vld [vmem:[%s12384_s10 + $0x154] sm:$0xf]  ;;  %v6909_v9 = vld [vmem:[%s12384_s10 + $0x204] sm:$0xf0]  ;;  %v8019_v41 = vld [vmem:[%s12384_s10 + $0x68] sm:$0xf0] }
 0x3e9   : > { %v6995_v47 = vor.u32 %v8019_v41, %v6994_v35  ;;  %v7086_v35 = vld [vmem:[%s12384_s10 + $0x110] sm:$0xf]  ;;  %v8041_v41 = vld [vmem:[%s12384_s10 + $0x118] sm:$0xf0] }
 0x3ea   : > { %3384 = vmatpush.bf16.msra.mxu0 %v6872_v54  ;;  %v6912_v54 = vor.u32 %v8213_v50, %v6909_v9  ;;  %v6903_v50 = vld [vmem:[%s12384_s10 + $0x1e8] sm:$0xf]  ;;  %v7042_v9 = vld [vmem:[%s12384_s10 + $0xc0] sm:$0xf] }
 0x3eb   : > { %3403 = vmatpush.bf16.msra.mxu1 %v6896_v61  ;;  %v8016_v61 = vld [vmem:[%s12384_s10 + $0x50] sm:$0xf0] }
 0x3ec   : > { %3410 = vmatpush.bf16.msra.mxu2 %v6876_v55  ;;  %3426 = vmatpush.bf16.msra.mxu3 %v6936_v11  ;;  %v6800_v55 = vor.u32 %v8187_v53, %v6799_v52  ;;  %v6897_v11 = vld [vmem:[%s12384_s10 + $0x1ec] sm:$0xf0]  ;;  %v8031_v53 = vld [vmem:[%s12384_s10 + $0xc8] sm:$0xf0]  ;;  %v6983_v18 = vor.u32 %v8016_v61, %v6982_v20  ;;  %v7087_v20 = vor.u32 %v8041_v41, %v7086_v35  ;;  %v8036_v61 = vld [vmem:[%s12384_s10 + $0xf4] sm:$0xf] }
 0x3ed   : > { %v6900_v15 = vor.u32 %v8210_v42, %v6897_v11  ;;  %v7043_v56 = vor.u32 %v8031_v53, %v7042_v9  ;;  %v6819_v42 = vld [vmem:[%s12384_s10 + $0x140] sm:$0xf]  ;;  %v6958_v11 = vld [vmem:[%s12384_s10 + $0x18] sm:$0xf]  ;;  %v8024_v53 = vld [vmem:[%s12384_s10 + $0x94] sm:$0xf] }
 0x3ee   : > { %3385 = vmatpush.bf16.msra.mxu0 %v6860_v10  ;;  %v8028_v10 = vld [vmem:[%s12384_s10 + $0xb0] sm:$0xf0] }
 0x3ef   : > { %v7031_v1 = vor.u32 %v8028_v10, %v7030_v62  ;;  %3435 = vmatpush.bf16.msrb.mxu1 %v6892_v0  ;;  %v6831_v62 = vld [vmem:[%s12384_s10 + $0x158] sm:$0xf]  ;;  %v8194_v10 = vld [vmem:[%s12384_s10 + $0x160] sm:$0xf0]  ;;  %v6970_v0 = vld [vmem:[%s12384_s10 + $0x30] sm:$0xf] }
 0x3f0   : > { %3411 = vmatpush.bf16.msra.mxu2 %v6864_v5  ;;  %v6801_v5 = vld [vmem:[%s12384_s10 + $0x12c] sm:$0xf0] }
 0x3f1   : > { %v6804_v19 = vor.u32 %v8186_v34, %v6801_v5  ;;  %v8013_v34 = vld [vmem:[%s12384_s10 + $0x38] sm:$0xf0] }
 0x3f2   : > { %3386 = vmatpush.bf16.msra.mxu0 %v6848_v21  ;;  %v6879_v21 = vld [vmem:[%s12384_s10 + $0x1b8] sm:$0xf]  ;;  %v6971_v5 = vor.u32 %v8013_v34, %v6970_v0  ;;  %v8038_v0 = vld [vmem:[%s12384_s10 + $0x100] sm:$0xf0]  ;;  %v8021_v34 = vld [vmem:[%s12384_s10 + $0x7c] sm:$0xf] }
 0x3f4   : > { %3412 = vmatpush.bf16.msra.mxu2 %v6852_v24  ;;  %v8206_v24 = vld [vmem:[%s12384_s10 + $0x1c0] sm:$0xf0] }
 0x3f5   : > { %v6880_v59 = vor.u32 %v8206_v24, %v6879_v21  ;;  %v6946_v21 = vld [vmem:[%s12384_s10] sm:$0xf] }
 0x3f6   : > { %3387 = vmatpush.bf16.msra.mxu0 %v6836_v27  ;;  %v8218_v27 = vld [vmem:[%s12384_s10 + $0x220] sm:$0xf0] }
 0x3f7   : > { %3436 = vmatpush.bf16.msrb.mxu1 %v6880_v59 }
 0x3f8   : > { %3413 = vmatpush.bf16.msra.mxu2 %v6840_v28  ;;  %v7066_v28 = vld [vmem:[%s12384_s10 + $0xf0] sm:$0xf] }
 0x3fa   : > { %3388 = vmatpush.bf16.msra.mxu0 %v6824_v30  ;;  %v6867_v30 = vld [vmem:[%s12384_s10 + $0x1a0] sm:$0xf] }
 0x431   : > { %v3107_v22 = vpop.f32.mrf.mxu2 }
 0x439   : > { %v3109_v36 = vpop.f32.mrf.mxu2 }
 0x43a   : > { %v8216_v36 = vld [vmem:[%s12384_s10 + $0x214] sm:$0xf] }
 0x450   : > { %v3120_v37 = vpop.f32.mrf.mxu3 }
 0x451   : > { %v3121_v38 = vadd.f32 %v3120_v37, %v3107_v22  ;;  %v6825_v22 = vld [vmem:[%s12384_s10 + $0x15c] sm:$0xf0] }
 0x452   : > { %v6828_v37 = vor.u32 %v8192_v33, %v6825_v22  ;;  %v8022_v33 = vld [vmem:[%s12384_s10 + $0x80] sm:$0xf0] }
 0x453   : > { %v3124_v26 = vmul.f32 0.07216878, %v3121_v38  ;;  %v6921_v38 = vld [vmem:[%s12384_s10 + $0x21c] sm:$0xf0] }
 0x454   : > { %3414 = vmatpush.bf16.msra.mxu2 %v6828_v37  ;;  %v8215_v37 = vld [vmem:[%s12384_s10 + $0x208] sm:$0xf0] }
 0x455   : > { %v3125_v49 = vsel %vm1850_vm6, %v3124_v26, -inf }
 0x456   : > { %3126 = vmax.xlane.f32.xlu1 %v3125_v49  ;;  %v6924_v49 = vor.u32 %v8216_v36, %v6921_v38  ;;  %v6915_v36 = vld [vmem:[%s12384_s10 + $0x200] sm:$0xf]  ;;  %v7054_v38 = vld [vmem:[%s12384_s10 + $0xd8] sm:$0xf] }
 0x458   : > { %v3122_v57 = vpop.f32.mrf.mxu3  ;;  %3427 = vmatpush.bf16.msra.mxu3 %v6924_v49  ;;  %3415 = vmatpush.bf16.msra.mxu2 %v6816_v51  ;;  %v6855_v49 = vld [vmem:[%s12384_s10 + $0x188] sm:$0xf]  ;;  %v8212_v51 = vld [vmem:[%s12384_s10 + $0x1f0] sm:$0xf0] }
 0x459   : > { %v6904_v52 = vor.u32 %v8212_v51, %v6903_v50 }
 0x45c   : > { %3428 = vmatpush.bf16.msra.mxu3 %v6912_v54  ;;  %3416 = vmatpush.bf16.msra.mxu2 %v6804_v19  ;;  %v6843_v54 = vld [vmem:[%s12384_s10 + $0x170] sm:$0xf]  ;;  %v8191_v19 = vld [vmem:[%s12384_s10 + $0x148] sm:$0xf0] }
 0x45d   : > { %v6820_v13 = vor.u32 %v8191_v19, %v6819_v42 }
 0x460   : > { %3429 = vmatpush.bf16.msra.mxu3 %v6900_v15  ;;  %v6959_v15 = vor.u32 %v8010_v14, %v6958_v11  ;;  %v7008_v11 = vld [vmem:[%s12384_s10 + $0x84] sm:$0xf0] }
 0x4c9   : > { %v3127_v17 = vpop.xlane.xlu1 %3126 }
 0x4ca   : > { %v3128_v23 = vsub.f32 %v3124_v26, %v3127_v17  ;;  %v8190_v26 = vld [vmem:[%s12384_s10 + $0x140] sm:$0xf0]  ;;  %v8040_v17 = vld [vmem:[%s12384_s10 + $0x110] sm:$0xf0] }
 0x4cb   : > { %v6812_v57 = vor.u32 %v8190_v26, %v6811_v40  ;;  %v6916_v40 = vor.u32 %v8215_v37, %v6915_v36  ;;  %v8034_v26 = vld [vmem:[%s12384_s10 + $0xe0] sm:$0xf0] }
 0x4cc   : > { %v3129_v4 = vmul.f32 1.442695, %v3128_v23  ;;  %v7079_v23 = vor.u32 %v8040_v17, %v7078_v43  ;;  %v7055_v58 = vor.u32 %v8034_v26, %v7054_v38  ;;  %v6807_v43 = vld [vmem:[%s12384_s10 + $0x128] sm:$0xf]  ;;  %v8188_v17 = vld [vmem:[%s12384_s10 + $0x130] sm:$0xf0] }
 0x4cd   : > { %3389 = vmatpush.bf16.msra.mxu0 %v6812_v57  ;;  %v8200_v57 = vld [vmem:[%s12384_s10 + $0x190] sm:$0xf0]  ;;  %v6808_v24 = vor.u32 %v8188_v17, %v6807_v43  ;;  %v8039_v26 = vld [vmem:[%s12384_s10 + $0x10c] sm:$0xf] }
 0x4ce   : > { %8463 = vpow2.f32 %v3129_v4  ;;  %v6927_v4 = vld [vmem:[%s12384_s10 + $0x218] sm:$0xf]  ;;  %v6856_v39 = vor.u32 %v8200_v57, %v6855_v49  ;;  %v8023_v43 = vld [vmem:[%s12384_s10 + $0x88] sm:$0xf0] }
 0x4cf   : > { %v6928_v29 = vor.u32 %v8218_v27, %v6927_v4  ;;  %v7080_v49 = vld [vmem:[%s12384_s10 + $0x114] sm:$0xf0] }
 0x4d1   : > { %3390 = vmatpush.bf16.msra.mxu0 %v6800_v55  ;;  %v8197_v55 = vld [vmem:[%s12384_s10 + $0x178] sm:$0xf0] }
 0x4d2   : > { %v6844_v60 = vor.u32 %v8197_v55, %v6843_v54  ;;  %v7020_v54 = vld [vmem:[%s12384_s10 + $0x9c] sm:$0xf0]  ;;  %v7026_v55 = vld [vmem:[%s12384_s10 + $0x98] sm:$0xf] }
 0x4d3   : > { %v7023_v42 = vor.u32 %v8024_v53, %v7020_v54  ;;  %v6972_v53 = vld [vmem:[%s12384_s10 + $0x3c] sm:$0xf0]  ;;  %v6978_v54 = vld [vmem:[%s12384_s10 + $0x38] sm:$0xf] }
 0x4d4   : > { %v8464_v31 = vpop.eup %8463 }
 0x4d5   : > { %v3134_v12 = vpack.c.bf16 %v8464_v31, %v8464_v31  ;;  %v3131_v3 = vsel %vm1850_vm6, %v8464_v31, 0.0  ;;  %3656 = vmatpush.bf16.msrb.mxu0 %v7031_v1  ;;  %v8203_v31 = vld [vmem:[%s12384_s10 + $0x1a8] sm:$0xf0]  ;;  %v6832_v1 = vor.u32 %v8194_v10, %v6831_v62  ;;  %v7068_v62 = vld [vmem:[%s12384_s10 + $0xfc] sm:$0xf0] }
 0x4d6   : > { %3132 = vadd.xlane.f32.xlu2 %v3131_v3  ;;  %v6868_v3 = vor.u32 %v8203_v31, %v6867_v30  ;;  %v7074_v10 = vld [vmem:[%s12384_s10 + $0xf8] sm:$0xf]  ;;  %v7071_v17 = vor.u32 %v8036_v61, %v7068_v62  ;;  %v6960_v61 = vld [vmem:[%s12384_s10 + $0x24] sm:$0xf0] }
 0x4d7   : > { %6795 = vmatmul.msk.bf16.vlgmr.msrb.gmra.mxu2 %vm1850_vm6, %v3134_v12  ;;  %6796 = vmatmul.msk.bf16.vlgmr.msrb.gmra.mxu3 %vm1850_vm6, %v3134_v12  ;;  %v7067_v12 = vor.u32 %v8037_v2, %v7066_v28 }
 0x4d8   : > { %3452 = vmatpush.bf16.msrb.mxu3 %v6940_v16  ;;  %3673 = vmatpush.bf16.msrb.mxu2 %v7079_v23  ;;  %v8007_v23 = vld [vmem:[%s12384_s10 + $0x8] sm:$0xf0] }
 0x4d9   : > { %3657 = vmatpush.bf16.msrb.mxu0 %v7019_v44  ;;  %3437 = vmatpush.bf16.msrb.mxu1 %v6868_v3  ;;  %v6947_v63 = vor.u32 %v8007_v23, %v6946_v21  ;;  %v7075_v21 = vor.u32 %v8038_v0, %v7074_v10  ;;  %v8033_v23 = vld [vmem:[%s12384_s10 + $0xdc] sm:$0xf]  ;;  %v8006_v10 = vld [vmem:[%s12384_s10 + $0x4] sm:$0xf]  ;;  %v6948_v0 = vld [vmem:[%s12384_s10 + $0xc] sm:$0xf0] }
 0x4dc   : > { %3453 = vmatpush.bf16.msrb.mxu3 %v6928_v29  ;;  %3674 = vmatpush.bf16.msrb.mxu2 %v7067_v12  ;;  %v8027_v12 = vld [vmem:[%s12384_s10 + $0xac] sm:$0xf] }
 0x4dd   : > { %3438 = vmatpush.bf16.msrb.mxu1 %v6856_v39 }
 0x4de   : > { %1858 = vadd.xlane.f32.xlu2 %v1857_v32  ;;  %v7006_v32 = vld [vmem:[%s12384_s10 + $0x78] sm:$0xf] }
 0x4df   : > { %v7007_v22 = vor.u32 %v8022_v33, %v7006_v32  ;;  %v7032_v33 = vld [vmem:[%s12384_s10 + $0xb4] sm:$0xf0] }
 0x4e0   : > { %3454 = vmatpush.bf16.msrb.mxu3 %v6916_v40  ;;  %3675 = vmatpush.bf16.msrb.mxu2 %v7055_v58  ;;  %v8029_v40 = vld [vmem:[%s12384_s10 + $0xb8] sm:$0xf0] }
 0x4e1   : > { %3658 = vmatpush.bf16.msrb.mxu0 %v7007_v22  ;;  %3439 = vmatpush.bf16.msrb.mxu1 %v6844_v60  ;;  %v7038_v22 = vld [vmem:[%s12384_s10 + $0xb0] sm:$0xf]  ;;  %v7083_v60 = vor.u32 %v8039_v26, %v7080_v49  ;;  %v8015_v26 = vld [vmem:[%s12384_s10 + $0x4c] sm:$0xf] }
 0x4e4   : > { %3455 = vmatpush.bf16.msrb.mxu3 %v6904_v52  ;;  %3676 = vmatpush.bf16.msrb.mxu2 %v7043_v56  ;;  %v7039_v52 = vor.u32 %v8029_v40, %v7038_v22  ;;  %v8026_v56 = vld [vmem:[%s12384_s10 + $0xa0] sm:$0xf0]  ;;  %v7050_v22 = vld [vmem:[%s12384_s10 + $0xc8] sm:$0xf] }
 0x4e5   : > { %3659 = vmatpush.bf16.msrb.mxu0 %v6995_v47  ;;  %3440 = vmatpush.bf16.msrb.mxu1 %v6832_v1  ;;  %v7035_v47 = vor.u32 %v8027_v12, %v7032_v33  ;;  %v7027_v19 = vor.u32 %v8026_v56, %v7026_v55  ;;  %v7044_v33 = vld [vmem:[%s12384_s10 + $0xcc] sm:$0xf0]  ;;  %v8014_v55 = vld [vmem:[%s12384_s10 + $0x40] sm:$0xf0] }
 0x4e9   : > { %3660 = vmatpush.bf16.msrb.mxu0 %v6983_v18  ;;  %3441 = vmatpush.bf16.msrb.mxu1 %v6820_v13  ;;  %v7014_v13 = vld [vmem:[%s12384_s10 + $0x80] sm:$0xf] }
 0x4ed   : > { %3661 = vmatpush.bf16.msrb.mxu0 %v6971_v5  ;;  %3442 = vmatpush.bf16.msrb.mxu1 %v6808_v24 }
 0x4f1   : > { %3662 = vmatpush.bf16.msrb.mxu0 %v6959_v15 }
 0x4f5   : > { %3663 = vmatpush.bf16.msrb.mxu0 %v6947_v63  ;;  %v7056_v63 = vld [vmem:[%s12384_s10 + $0xe4] sm:$0xf0] }
 0x4f6   : > { %v7059_v12 = vor.u32 %v8033_v23, %v7056_v63 }
 0x549   : > { %v3133_v16 = vpop.xlane.xlu2 %3132 }
 0x54a   : > { %8465 = vrcp.f32 %v3133_v16  ;;  %v3181_v27 = vand.u32 2147483648, %v3133_v16  ;;  %v3179_v29 = vand.u32 2147483647, %v3133_v16  ;;  %vm3175_vm8 = vweird.f32 %v3133_v16 }
 0x54c   : > { %v3182_v31 = vor.u32 1.1754944e-38, %v3181_v27  ;;  %vm3180_vm10 = vcmp.eq.f32.partialorder %v3179_v29, 8.507059e+37  ;;  %v7015_v27 = vor.u32 %v8023_v43, %v7014_v13  ;;  %v6996_v29 = vld [vmem:[%s12384_s10 + $0x6c] sm:$0xf0] }
 0x550   : > { %v8466_v48 = vpop.eup %8465 }
 0x551   : > { %v3171_v59 = vmul.f32 %v8466_v48, %v3133_v16  ;;  %v10907_v44 = vpop.xlane.xlu2 %1858  ;;  %vm3176_vm7 = vweird.f32 %v8466_v48 }
 0x552   : > { %8467 = vrcp.f32 %v10907_v44  ;;  %vm3177_vm9 = vmor %vm3175_vm8, %vm3176_vm7  ;;  %v1908_v1 = vand.u32 2147483648, %v10907_v44  ;;  %vm1902_vm12 = vweird.f32 %v10907_v44  ;;  %v1906_v5 = vand.u32 2147483647, %v10907_v44 }
 0x553   : > { %v3172_v4 = vsub.f32 1.0, %v3171_v59  ;;  %v8035_v59 = vld [vmem:[%s12384_s10 + $0xe8] sm:$0xf0] }
 0x554   : > { %vm1907_vm14 = vcmp.eq.f32.partialorder %v1906_v5, 8.507059e+37  ;;  %v6951_v5 = vor.u32 %v8006_v10, %v6948_v0  ;;  %v8248_v0 = vld [vmem:[%s12388_s14 + $0xcc] sm:$0xf0] }
 0x555   : > { %v3173_v28 = vmul.f32 %v8466_v48, %v3172_v4  ;;  %v7011_v4 = vor.u32 %v8021_v34, %v7008_v11  ;;  %v8008_v34 = vld [vmem:[%s12384_s10 + $0x10] sm:$0xf0] }
 0x557   : > { %v3174_v2 = vadd.f32 %v8466_v48, %v3173_v28  ;;  %v8018_v28 = vld [vmem:[%s12384_s10 + $0x64] sm:$0xf] }
 0x558   : > { %v10910_v30 = vpop.eup %8467 }
 0x559   : > { %v1898_v3 = vmul.f32 %v10910_v30, %v10907_v44  ;;  %v3178_v32 = vsel %vm3177_vm9, %v8466_v48, %v3174_v2  ;;  %vm1903_vm11 = vweird.f32 %v10910_v30  ;;  %v7062_v48 = vld [vmem:[%s12384_s10 + $0xe0] sm:$0xf]  ;;  %v1909_v44 = vor.u32 1.1754944e-38, %v1908_v1  ;;  %v6954_v1 = vld [vmem:[%s12384_s10 + $0x8] sm:$0xf] }
 0x55a   : > { %v3153_v36 = vpop.f32.mrf.mxu2  ;;  %v3183_v37 = vsel %vm3180_vm10, %v3182_v31, %v3178_v32  ;;  %v3166_v38 = vpop.f32.mrf.mxu3  ;;  %vm10989_vm13 = vmor %vm1902_vm12, %vm1903_vm11  ;;  %v8020_v31 = vld [vmem:[%s12384_s10 + $0x70] sm:$0xf0]  ;;  %v8030_v32 = vld [vmem:[%s12384_s10 + $0xc4] sm:$0xf] }
 0x55b   : > { %v1899_v57 = vsub.f32 1.0, %v1898_v3  ;;  %v3184_v58 = vmul.f32 %v3183_v37, %v3153_v36  ;;  %v3185_v39 = vmul.f32 %v3183_v37, %v3166_v38  ;;  %v7063_v3 = vor.u32 %v8035_v59, %v7062_v48  ;;  %v8032_v36 = vld [vmem:[%s12384_s10 + $0xd0] sm:$0xf0] }
 0x55c   : > { %v6999_v37 = vor.u32 %v8018_v28, %v6996_v29  ;;  %v7051_v35 = vor.u32 %v8032_v36, %v7050_v22 }
 0x55d   : > { %v1900_v50 = vmul.f32 %v10910_v30, %v1899_v57  ;;  %v10939_v51 = vpack.c.bf16 %v3184_v58, %v3184_v58  ;;  %v10941_v9 = vpack.c.bf16 %v3185_v39, %v3185_v39  ;;  %v6984_v57 = vld [vmem:[%s12384_s10 + $0x54] sm:$0xf0]  ;;  %v6990_v58 = vld [vmem:[%s12384_s10 + $0x50] sm:$0xf]  ;;  %v8017_v39 = vld [vmem:[%s12384_s10 + $0x58] sm:$0xf0] }
 0x55f   : > { %v1901_v18 = vadd.f32 %v10910_v30, %v1900_v50  ;;  %3391 = vmatmul.bf16.vlgmr.msra.gmra.mxu0 %v10939_v51  ;;  %6941 = vmatmul.msk.bf16.vlgmr.msra.gmra.mxu1 %vm1816_vm4, %v10941_v9  ;;  %v8012_v50 = vld [vmem:[%s12384_s10 + $0x34] sm:$0xf] }
 0x560   : > { %3417 = vmatmul.bf16.vlgmr.msra.gmra.mxu2 %v10939_v51  ;;  %6942 = vmatmul.msk.bf16.vlgmr.msra.gmra.mxu3 %vm1816_vm4, %v10941_v9  ;;  %v6975_v56 = vor.u32 %v8012_v50, %v6972_v53 }
 0x561   : > { %3682 = vmatpush.bf16.msra.mxu3 %v7035_v47  ;;  %3708 = vmatpush.bf16.msra.mxu2 %v7039_v52  ;;  %v1905_v24 = vsel %vm10989_vm13, %v10910_v30, %v1901_v18  ;;  %v7002_v30 = vld [vmem:[%s12384_s10 + $0x68] sm:$0xf]  ;;  %v6991_v47 = vor.u32 %v8017_v39, %v6990_v58 }
 0x562   : > { %v3155_v15 = vpop.f32.mrf.mxu2  ;;  %v3168_v16 = vpop.f32.mrf.mxu3  ;;  %3699 = vmatpush.bf16.msra.mxu1 %v7083_v60  ;;  %3725 = vmatpush.bf16.msra.mxu0 %v7087_v20  ;;  %v1910_v2 = vsel %vm1907_vm14, %v1909_v44, %v1905_v24  ;;  %v7003_v38 = vor.u32 %v8020_v31, %v7002_v30  ;;  %v6979_v60 = vor.u32 %v8014_v55, %v6978_v54  ;;  %v8009_v20 = vld [vmem:[%s12384_s10 + $0x1c] sm:$0xf]  ;;  %v7333_v54 = vld [vmem:[%s12388_s14 + $0x1e0] sm:$0xf] }
 0x563   : > { %v1911_v40 = vmul.f32 %v1910_v2, %v10592_v45  ;;  %v1912_v49 = vmul.f32 %v1910_v2, %v10594_v46  ;;  %v7047_v45 = vor.u32 %v8030_v32, %v7044_v33  ;;  %v6987_v46 = vor.u32 %v8015_v26, %v6984_v57 }
 0x564   : > { %v6963_v18 = vor.u32 %v8009_v20, %v6960_v61  ;;  %v8316_v20 = vld [vmem:[%s12388_s14 + $0x2ec] sm:$0xf0] }
 0x565   : > { %3683 = vmatpush.bf16.msra.mxu3 %v7023_v42  ;;  %3709 = vmatpush.bf16.msra.mxu2 %v7027_v19  ;;  %v1913_v41 = vpack.c.bf16 %v1911_v40, %v1911_v40  ;;  %v1914_v52 = vpack.c.bf16 %v1912_v49, %v1912_v49  ;;  %v6955_v42 = vor.u32 %v8008_v34, %v6954_v1  ;;  %v7317_v1 = vld [vmem:[%s12388_s14 + $0x1c0] sm:$0xf]  ;;  %v8280_v34 = vld [vmem:[%s12388_s14 + $0x1cc] sm:$0xf0] }
 0x566   : > { %3700 = vmatpush.bf16.msra.mxu1 %v7071_v17  ;;  %3726 = vmatpush.bf16.msra.mxu0 %v7075_v21 }
 0x569   : > { %3684 = vmatpush.bf16.msra.mxu3 %v7011_v4  ;;  %3710 = vmatpush.bf16.msra.mxu2 %v7015_v27 }
 0x56a   : > { %3701 = vmatpush.bf16.msra.mxu1 %v7059_v12  ;;  %3727 = vmatpush.bf16.msra.mxu0 %v7063_v3  ;;  %v3737_v3 = vld [vmem:[%s12385_s11] sm:$0x7] }
 0x56b   : > { %v3739_v40 = vperm.slane %v3737_v3, 0  ;;  %v3740_v57 = vperm.slane %v3737_v3, 1 }
 0x56d   : > { %3685 = vmatpush.bf16.msra.mxu3 %v6999_v37  ;;  %3711 = vmatpush.bf16.msra.mxu2 %v7003_v38 }
 0x56e   : > { %3702 = vmatpush.bf16.msra.mxu1 %v7047_v45  ;;  %3728 = vmatpush.bf16.msra.mxu0 %v7051_v35  ;;  %v3741_v35 = vperm.slane %v3737_v3, 2  ;;  %v8304_v3 = vld [vmem:[%s12388_s14 + $0x28c] sm:$0xf0] }
 0x56f   : > { %3443 = vmatmul.bf16.vlgmr.msrb.gmra.mxu1 %v10939_v51  ;;  %3664 = vmatmul.bf16.vlgmr.msrb.gmra.mxu0 %v1913_v41  ;;  %v6966_v51 = vld [vmem:[%s12384_s10 + $0x20] sm:$0xf] }
 0x570   : > { %6943 = vmatmul.msk.bf16.vlgmr.msrb.gmra.mxu3 %vm1816_vm4, %v10941_v9  ;;  %7088 = vmatmul.msk.bf16.vlgmr.msrb.gmra.mxu2 %vm1816_vm4, %v1914_v52  ;;  %v8011_v9 = vld [vmem:[%s12384_s10 + $0x28] sm:$0xf0] }
 0x571   : > { %3686 = vmatpush.bf16.msra.mxu3 %v6987_v46  ;;  %3712 = vmatpush.bf16.msra.mxu2 %v6991_v47  ;;  %v6967_v62 = vor.u32 %v8011_v9, %v6966_v51  ;;  %v8250_v9 = vld [vmem:[%s12388_s14 + $0xe4] sm:$0xf] }
 0x575   : > { %3687 = vmatpush.bf16.msra.mxu3 %v6975_v56  ;;  %3713 = vmatpush.bf16.msra.mxu2 %v6979_v60  ;;  %v8284_v56 = vld [vmem:[%s12388_s14 + $0x1ec] sm:$0xf0]  ;;  %v7461_v60 = vld [vmem:[%s12388_s14 + $0x2e0] sm:$0xf] }
 0x576   : > { %v7334_v61 = vor.u32 %v8284_v56, %v7333_v54  ;;  %v7462_v51 = vor.u32 %v8316_v20, %v7461_v60  ;;  %v7381_v56 = vld [vmem:[%s12388_s14 + $0x240] sm:$0xf]  ;;  %v8296_v60 = vld [vmem:[%s12388_s14 + $0x24c] sm:$0xf0]  ;;  %v8230_v20 = vld [vmem:[%s12388_s14 + $0x44] sm:$0xf] }
 0x578   : > { %4544 = vmatpush.bf16.msrb.mxu0 %v7462_v51 }
 0x579   : > { %3688 = vmatpush.bf16.msra.mxu3 %v6963_v18  ;;  %3714 = vmatpush.bf16.msra.mxu2 %v6967_v62  ;;  %v7207_v18 = vld [vmem:[%s12388_s14 + $0xf0] sm:$0xf0]  ;;  %v7189_v62 = vld [vmem:[%s12388_s14 + $0xc0] sm:$0xf] }
 0x57a   : > { %v7210_v10 = vor.u32 %v8250_v9, %v7207_v18  ;;  %v7109_v9 = vld [vmem:[%s12388_s14 + $0x20] sm:$0xf]  ;;  %v8228_v18 = vld [vmem:[%s12388_s14 + $0x2c] sm:$0xf0] }
 0x57d   : > { %3689 = vmatpush.bf16.msra.mxu3 %v6951_v5  ;;  %3715 = vmatpush.bf16.msra.mxu2 %v6955_v42  ;;  %v7190_v5 = vor.u32 %v8248_v0, %v7189_v62  ;;  %v7318_v42 = vor.u32 %v8280_v34, %v7317_v1  ;;  %v7237_v62 = vld [vmem:[%s12388_s14 + $0x120] sm:$0xf]  ;;  %v7382_v0 = vor.u32 %v8296_v60, %v7381_v56  ;;  %v8260_v1 = vld [vmem:[%s12388_s14 + $0x12c] sm:$0xf0]  ;;  %v8249_v60 = vld [vmem:[%s12388_s14 + $0xd4] sm:$0xf0] }
 0x57e   : > { %v7365_v34 = vld [vmem:[%s12388_s14 + $0x220] sm:$0xf] }
 0x57f   : > { %7089 = vmatmul.msk.bf16.vlgmr.msra.gmra.mxu1 %vm1816_vm4, %v1914_v52  ;;  %7090 = vmatmul.msk.bf16.vlgmr.msra.gmra.mxu0 %vm1816_vm4, %v1914_v52 }
 0x580   : > { %3690 = vmatmul.bf16.vlgmr.msra.gmra.mxu3 %v1913_v41  ;;  %3716 = vmatmul.bf16.vlgmr.msra.gmra.mxu2 %v1913_v41 }
 0x581   : > { %4531 = vmatpush.bf16.msrb.mxu3 %v7334_v61  ;;  %4557 = vmatpush.bf16.msrb.mxu2 %v7210_v10  ;;  %v7127_v61 = vld [vmem:[%s12388_s14 + $0x50] sm:$0xf0] }
 0x585   : > { %4532 = vmatpush.bf16.msrb.mxu3 %v7318_v42 }
 0x5dc   : > { %v3392_v19 = vpop.f32.mrf.mxu0  ;;  %v3405_v11 = vpop.f32.mrf.mxu1 }
 0x5dd   : > { %v3406_v29 = vadd.f32 %v3405_v11, %v3392_v19  ;;  %v7445_v19 = vld [vmem:[%s12388_s14 + $0x2c0] sm:$0xf]  ;;  %v8312_v11 = vld [vmem:[%s12388_s14 + $0x2cc] sm:$0xf0] }
 0x5e3   : > { %v3418_v13 = vpop.f32.mrf.mxu2  ;;  %v3431_v14 = vpop.f32.mrf.mxu3 }
 0x5e4   : > { %v3394_v15 = vpop.f32.mrf.mxu0  ;;  %v3407_v16 = vpop.f32.mrf.mxu1  ;;  %v3432_v30 = vadd.f32 %v3431_v14, %v3418_v13  ;;  %v8246_v13 = vld [vmem:[%s12388_s14 + $0xc4] sm:$0xf]  ;;  %v7446_v14 = vor.u32 %v8312_v11, %v7445_v19  ;;  %v7130_v19 = vor.u32 %v8230_v20, %v7127_v61  ;;  %v7325_v20 = vld [vmem:[%s12388_s14 + $0x1c8] sm:$0xf]  ;;  %v8281_v61 = vld [vmem:[%s12388_s14 + $0x1d4] sm:$0xf0] }
 0x5e5   : > { %v7191_v15 = vld [vmem:[%s12388_s14 + $0xd0] sm:$0xf0]  ;;  %v7173_v16 = vld [vmem:[%s12388_s14 + $0xa0] sm:$0xf] }
 0x5e6   : > { %4545 = vmatpush.bf16.msrb.mxu0 %v7446_v14  ;;  %v7111_v14 = vld [vmem:[%s12388_s14 + $0x30] sm:$0xf0] }
 0x5eb   : > { %v3420_v43 = vpop.f32.mrf.mxu2  ;;  %v3433_v17 = vpop.f32.mrf.mxu3 }
 0x5ec   : > { %v3444_v21 = vpop.f32.mrf.mxu1  ;;  %v3665_v23 = vpop.f32.mrf.mxu0  ;;  %v8244_v43 = vld [vmem:[%s12388_s14 + $0xac] sm:$0xf0]  ;;  %v7194_v17 = vor.u32 %v8246_v13, %v7191_v15  ;;  %v8226_v13 = vld [vmem:[%s12388_s14 + $0x24] sm:$0xf]  ;;  %v7110_v15 = vor.u32 %v8228_v18, %v7109_v9  ;;  %v7326_v9 = vor.u32 %v8281_v61, %v7325_v20  ;;  %v7117_v20 = vld [vmem:[%s12388_s14 + $0x28] sm:$0xf] }
 0x5ed   : > { %v3666_v2 = vadd.f32 %v3665_v23, %v3406_v29  ;;  %v8276_v23 = vld [vmem:[%s12388_s14 + $0x1ac] sm:$0xf0]  ;;  %v8274_v18 = vld [vmem:[%s12388_s14 + $0x1a4] sm:$0xf]  ;;  %v8229_v61 = vld [vmem:[%s12388_s14 + $0x34] sm:$0xf0] }
 0x5ee   : > { %v8240_v29 = vld [vmem:[%s12388_s14 + $0x8c] sm:$0xf0]  ;;  %4558 = vmatpush.bf16.msrb.mxu2 %v7194_v17 }
 0x5f3   : > { %v3457_v24 = vpop.f32.mrf.mxu3  ;;  %v3678_v63 = vpop.f32.mrf.mxu2 }
 0x5f4   : > { %v3446_v48 = vpop.f32.mrf.mxu1  ;;  %v3667_v59 = vpop.f32.mrf.mxu0  ;;  %v3458_v31 = vadd.f32 %v3457_v24, %v3444_v21  ;;  %v3679_v12 = vadd.f32 %v3678_v63, %v3666_v2  ;;  %v7301_v21 = vld [vmem:[%s12388_s14 + $0x1a0] sm:$0xf]  ;;  %v7174_v63 = vor.u32 %v8244_v43, %v7173_v16  ;;  %v7238_v16 = vor.u32 %v8260_v1, %v7237_v62  ;;  %v7303_v62 = vld [vmem:[%s12388_s14 + $0x1b0] sm:$0xf0] }
 0x5f5   : > { %v7429_v24 = vld [vmem:[%s12388_s14 + $0x2a0] sm:$0xf]  ;;  %v8308_v48 = vld [vmem:[%s12388_s14 + $0x2ac] sm:$0xf0]  ;;  %v8242_v59 = vld [vmem:[%s12388_s14 + $0xa4] sm:$0xf] }
 0x5f6   : > { %v3734_v26 = vadd.f32 %v3679_v12, %v8693_v6  ;;  %v7285_v2 = vld [vmem:[%s12388_s14 + $0x180] sm:$0xf]  ;;  %v7431_v1 = vld [vmem:[%s12388_s14 + $0x2b0] sm:$0xf0] }
 0x5f7   : > { %v7413_v12 = vld [vmem:[%s12388_s14 + $0x280] sm:$0xf] }
 0x5f8   : > { %v11097_v41 = vadd.f32 %v3739_v40, %v3734_v26  ;;  %v8236_v40 = vld [vmem:[%s12388_s14 + $0x6c] sm:$0xf0]  ;;  %v7269_v26 = vld [vmem:[%s12388_s14 + $0x160] sm:$0xf] }
 0x5fb   : > { %v3459_v44 = vpop.f32.mrf.mxu3  ;;  %v3680_v4 = vpop.f32.mrf.mxu2 }
 0x5fc   : > { %v3704_v27 = vpop.f32.mrf.mxu1  ;;  %v3730_v28 = vpop.f32.mrf.mxu0  ;;  %v7175_v44 = vld [vmem:[%s12388_s14 + $0xb0] sm:$0xf0]  ;;  %v7302_v4 = vor.u32 %v8276_v23, %v7301_v21 }
 0x5fe   : > { %4533 = vmatpush.bf16.msrb.mxu3 %v7302_v4 }
 0x603   : > { %v3691_v32 = vpop.f32.mrf.mxu3  ;;  %v3717_v33 = vpop.f32.mrf.mxu2 }
 0x604   : > { %v3692_v22 = vadd.f32 %v3691_v32, %v3432_v30  ;;  %v3718_v36 = vadd.f32 %v3717_v33, %v3458_v31  ;;  %v3706_v37 = vpop.f32.mrf.mxu1  ;;  %v3732_v38 = vpop.f32.mrf.mxu0  ;;  %v7178_v30 = vor.u32 %v8242_v59, %v7175_v44  ;;  %v8272_v31 = vld [vmem:[%s12388_s14 + $0x18c] sm:$0xf0]  ;;  %v8238_v32 = vld [vmem:[%s12388_s14 + $0x84] sm:$0xf]  ;;  %v7159_v33 = vld [vmem:[%s12388_s14 + $0x90] sm:$0xf0] }
 0x605   : > { %v7414_v37 = vor.u32 %v8304_v3, %v7413_v12  ;;  %v7141_v38 = vld [vmem:[%s12388_s14 + $0x60] sm:$0xf]  ;;  %v8288_v12 = vld [vmem:[%s12388_s14 + $0x20c] sm:$0xf0] }
 0x606   : > { %v3705_v49 = vadd.f32 %v3704_v27, %v3692_v22  ;;  %v3731_v58 = vadd.f32 %v3730_v28, %v3718_v36  ;;  %v7430_v27 = vor.u32 %v8308_v48, %v7429_v24  ;;  %v7157_v28 = vld [vmem:[%s12388_s14 + $0x80] sm:$0xf]  ;;  %v7286_v36 = vor.u32 %v8272_v31, %v7285_v2  ;;  %4559 = vmatpush.bf16.msrb.mxu2 %v7178_v30  ;;  %v8256_v30 = vld [vmem:[%s12388_s14 + $0x10c] sm:$0xf0] }
 0x607   : > { %v7158_v22 = vor.u32 %v8240_v29, %v7157_v28  ;;  %v7114_v24 = vor.u32 %v8226_v13, %v7111_v14  ;;  %v8224_v28 = vld [vmem:[%s12388_s14 + $0xc] sm:$0xf0]  ;;  %v7221_v29 = vld [vmem:[%s12388_s14 + $0x100] sm:$0xf]  ;;  %v8277_v13 = vld [vmem:[%s12388_s14 + $0x1b4] sm:$0xf0] }
 0x608   : > { %v3735_v39 = vadd.f32 %v3705_v49, %v8695_v7  ;;  %v3736_v45 = vadd.f32 %v3731_v58, %v8697_v8  ;;  %v7205_v7 = vld [vmem:[%s12388_s14 + $0xe0] sm:$0xf]  ;;  %v8252_v8 = vld [vmem:[%s12388_s14 + $0xec] sm:$0xf0]  ;;  %4546 = vmatpush.bf16.msrb.mxu0 %v7430_v27  ;;  %v7162_v49 = vor.u32 %v8238_v32, %v7159_v33  ;;  %4534 = vmatpush.bf16.msrb.mxu3 %v7286_v36  ;;  %v8222_v33 = vld [vmem:[%s12388_s14 + $0x4] sm:$0xf] }
 0x609   : > { %v7206_v55 = vor.u32 %v8252_v8, %v7205_v7  ;;  %v7397_v58 = vld [vmem:[%s12388_s14 + $0x260] sm:$0xf]  ;;  %v8232_v7 = vld [vmem:[%s12388_s14 + $0x4c] sm:$0xf0]  ;;  %v7222_v3 = vor.u32 %v8256_v30, %v7221_v29  ;;  %v8282_v36 = vld [vmem:[%s12388_s14 + $0x1e4] sm:$0xf] }
 0x60a   : > { %v11099_v46 = vadd.f32 %v3740_v57, %v3735_v39  ;;  %v11101_v52 = vadd.f32 %v3741_v35, %v3736_v45  ;;  %v8268_v57 = vld [vmem:[%s12388_s14 + $0x16c] sm:$0xf0]  ;;  %v8234_v45 = vld [vmem:[%s12388_s14 + $0x64] sm:$0xf]  ;;  %v7143_v35 = vld [vmem:[%s12388_s14 + $0x70] sm:$0xf0]  ;;  %4560 = vmatpush.bf16.msrb.mxu2 %v7162_v49 }
 0x60b   : > { %v3693_v47 = vpop.f32.mrf.mxu3  ;;  %v3719_v50 = vpop.f32.mrf.mxu2  ;;  %4518 = vmatpush.bf16.msrb.mxu1 %v7206_v55  ;;  %v8300_v39 = vld [vmem:[%s12388_s14 + $0x26c] sm:$0xf0]  ;;  %v7253_v8 = vld [vmem:[%s12388_s14 + $0x140] sm:$0xf]  ;;  %v7146_v54 = vor.u32 %v8234_v45, %v7143_v35  ;;  %v7341_v45 = vld [vmem:[%s12388_s14 + $0x1e8] sm:$0xf] }
 0x60c   : > { %v3976_v53 = vadd.f32 %v11099_v46, %v11097_v41  ;;  %v7142_v47 = vor.u32 %v8236_v40, %v7141_v38  ;;  %4547 = vmatpush.bf16.msrb.mxu0 %v7414_v37  ;;  %v7270_v50 = vor.u32 %v8268_v57, %v7269_v26  ;;  %v8264_v55 = vld [vmem:[%s12388_s14 + $0x14c] sm:$0xf0]  ;;  %v7093_v27 = vld [vmem:[%s12388_s14] sm:$0xf]  ;;  %v7335_v38 = vld [vmem:[%s12388_s14 + $0x1f0] sm:$0xf0] }
 0x60d   : > { %v7254_v10 = vor.u32 %v8264_v55, %v7253_v8  ;;  %v7094_v2 = vor.u32 %v8224_v28, %v7093_v27  ;;  %v7349_v31 = vld [vmem:[%s12388_s14 + $0x200] sm:$0xf]  ;;  %v8314_v40 = vld [vmem:[%s12388_s14 + $0x2e4] sm:$0xf]  ;;  %v7463_v26 = vld [vmem:[%s12388_s14 + $0x2f0] sm:$0xf0]  ;;  %v7338_v49 = vor.u32 %v8282_v36, %v7335_v38 }
 0x60e   : > { %v3977_v6 = vadd.f32 %v3976_v53, %v11101_v52  ;;  %v7398_v53 = vor.u32 %v8300_v39, %v7397_v58  ;;  %4535 = vmatpush.bf16.msrb.mxu3 %v7270_v50  ;;  %4561 = vmatpush.bf16.msrb.mxu2 %v7146_v54  ;;  %v7350_v32 = vor.u32 %v8288_v12, %v7349_v31  ;;  %v7213_v58 = vld [vmem:[%s12388_s14 + $0xe8] sm:$0xf]  ;;  %v8253_v39 = vld [vmem:[%s12388_s14 + $0xf4] sm:$0xf0]  ;;  %v8278_v50 = vld [vmem:[%s12388_s14 + $0x1c4] sm:$0xf] }
 0x60f   : > { %4519 = vmatpush.bf16.msrb.mxu1 %v7190_v5  ;;  %v8292_v5 = vld [vmem:[%s12388_s14 + $0x22c] sm:$0xf0]  ;;  %v7466_v57 = vor.u32 %v8314_v40, %v7463_v26  ;;  %v7214_v35 = vor.u32 %v8253_v39, %v7213_v58  ;;  %v8310_v8 = vld [vmem:[%s12388_s14 + $0x2c4] sm:$0xf]  ;;  %v7447_v54 = vld [vmem:[%s12388_s14 + $0x2d0] sm:$0xf0] }
 0x610   : > { %3978 = vadd.xlane.f32.xlu0 %v3977_v6  ;;  %v7125_v6 = vld [vmem:[%s12388_s14 + $0x40] sm:$0xf]  ;;  %4548 = vmatpush.bf16.msrb.mxu0 %v7398_v53  ;;  %v7366_v43 = vor.u32 %v8292_v5, %v7365_v34  ;;  %v7319_v53 = vld [vmem:[%s12388_s14 + $0x1d0] sm:$0xf0]  ;;  %v7197_v55 = vld [vmem:[%s12388_s14 + $0xc8] sm:$0xf]  ;;  %v7450_v56 = vor.u32 %v8310_v8, %v7447_v54 }
 0x611   : > { %v7126_v51 = vor.u32 %v8232_v7, %v7125_v6  ;;  %v7322_v7 = vor.u32 %v8278_v50, %v7319_v53  ;;  %v7181_v34 = vld [vmem:[%s12388_s14 + $0xa8] sm:$0xf]  ;;  %v8245_v5 = vld [vmem:[%s12388_s14 + $0xb4] sm:$0xf0]  ;;  %v7271_v30 = vld [vmem:[%s12388_s14 + $0x170] sm:$0xf0] }
 0x612   : > { %4536 = vmatpush.bf16.msrb.mxu3 %v7254_v10  ;;  %4562 = vmatpush.bf16.msrb.mxu2 %v7130_v19  ;;  %v8306_v10 = vld [vmem:[%s12388_s14 + $0x2a4] sm:$0xf]  ;;  %v7182_v19 = vor.u32 %v8245_v5, %v7181_v34  ;;  %v7293_v27 = vld [vmem:[%s12388_s14 + $0x188] sm:$0xf]  ;;  %v8273_v28 = vld [vmem:[%s12388_s14 + $0x194] sm:$0xf0] }
 0x613   : > { %4520 = vmatpush.bf16.msrb.mxu1 %v7174_v63  ;;  %v7294_v29 = vor.u32 %v8273_v28, %v7293_v27  ;;  %v8298_v31 = vld [vmem:[%s12388_s14 + $0x264] sm:$0xf]  ;;  %v8269_v38 = vld [vmem:[%s12388_s14 + $0x174] sm:$0xf0]  ;;  %v7383_v39 = vld [vmem:[%s12388_s14 + $0x250] sm:$0xf0] }
 0x614   : > { %4549 = vmatpush.bf16.msrb.mxu0 %v7382_v0  ;;  %v7306_v0 = vor.u32 %v8274_v18, %v7303_v62  ;;  %v8262_v26 = vld [vmem:[%s12388_s14 + $0x144] sm:$0xf]  ;;  %v7261_v53 = vld [vmem:[%s12388_s14 + $0x148] sm:$0xf]  ;;  %v7239_v54 = vld [vmem:[%s12388_s14 + $0x130] sm:$0xf0] }
 0x615   : > { %v8258_v8 = vld [vmem:[%s12388_s14 + $0x124] sm:$0xf]  ;;  %v7245_v18 = vld [vmem:[%s12388_s14 + $0x128] sm:$0xf]  ;;  %v8261_v62 = vld [vmem:[%s12388_s14 + $0x134] sm:$0xf0] }
 0x616   : > { %4537 = vmatpush.bf16.msrb.mxu3 %v7238_v16  ;;  %4563 = vmatpush.bf16.msrb.mxu2 %v7114_v24  ;;  %v7287_v16 = vld [vmem:[%s12388_s14 + $0x190] sm:$0xf0]  ;;  %v8286_v34 = vld [vmem:[%s12388_s14 + $0x204] sm:$0xf]  ;;  %v3748_v28 = vld [vmem:[%s12386_s12] sm:$0x7] }
 0x617   : > { %4521 = vmatpush.bf16.msrb.mxu1 %v7158_v22  ;;  %v7095_v22 = vld [vmem:[%s12388_s14 + $0x10] sm:$0xf0] }
 0x618   : > { %4550 = vmatpush.bf16.msrb.mxu0 %v7366_v43  ;;  %v7098_v37 = vor.u32 %v8222_v33, %v7095_v22  ;;  %v8302_v43 = vld [vmem:[%s12388_s14 + $0x284] sm:$0xf]  ;;  %v8237_v33 = vld [vmem:[%s12388_s14 + $0x74] sm:$0xf0] }
 0x61a   : > { %4538 = vmatpush.bf16.msrb.mxu3 %v7222_v3  ;;  %4564 = vmatpush.bf16.msrb.mxu2 %v7098_v37  ;;  %v7399_v3 = vld [vmem:[%s12388_s14 + $0x270] sm:$0xf0]  ;;  %v7277_v37 = vld [vmem:[%s12388_s14 + $0x168] sm:$0xf] }
 0x61b   : > { %4522 = vmatpush.bf16.msrb.mxu1 %v7142_v47  ;;  %v8285_v47 = vld [vmem:[%s12388_s14 + $0x1f4] sm:$0xf0]  ;;  %v7402_v22 = vor.u32 %v8298_v31, %v7399_v3  ;;  %v7278_v40 = vor.u32 %v8269_v38, %v7277_v37  ;;  %v4008_v31 = vperm.slane %v3748_v28, 1 }
 0x61c   : > { %4551 = vmatpush.bf16.msrb.mxu0 %v7350_v32  ;;  %v7342_v6 = vor.u32 %v8285_v47, %v7341_v45  ;;  %v7149_v32 = vld [vmem:[%s12388_s14 + $0x68] sm:$0xf] }
 0x61d   : > { %v7150_v36 = vor.u32 %v8237_v33, %v7149_v32  ;;  %v7133_v45 = vld [vmem:[%s12388_s14 + $0x48] sm:$0xf] }
 0x61e   : > { %4583 = vmatpush.bf16.msra.mxu3 %v7466_v57  ;;  %4609 = vmatpush.bf16.msra.mxu2 %v7342_v6  ;;  %v8294_v57 = vld [vmem:[%s12388_s14 + $0x244] sm:$0xf]  ;;  %v8265_v6 = vld [vmem:[%s12388_s14 + $0x154] sm:$0xf0] }
 0x61f   : > { %4523 = vmatpush.bf16.msrb.mxu1 %v7126_v51  ;;  %v7198_v51 = vor.u32 %v8249_v60, %v7197_v55  ;;  %v7386_v47 = vor.u32 %v8294_v57, %v7383_v39  ;;  %v8290_v55 = vld [vmem:[%s12388_s14 + $0x224] sm:$0xf]  ;;  %v7367_v60 = vld [vmem:[%s12388_s14 + $0x230] sm:$0xf0]  ;;  %v7469_v57 = vld [vmem:[%s12388_s14 + $0x2e8] sm:$0xf] }
 0x620   : > { %4596 = vmatpush.bf16.msra.mxu0 %v7214_v35  ;;  %v8233_v35 = vld [vmem:[%s12388_s14 + $0x54] sm:$0xf0] }
 0x621   : > { %v7134_v50 = vor.u32 %v8233_v35, %v7133_v45 }
 0x622   : > { %4584 = vmatpush.bf16.msra.mxu3 %v7450_v56  ;;  %4610 = vmatpush.bf16.msra.mxu2 %v7326_v9  ;;  %v7242_v56 = vor.u32 %v8258_v8, %v7239_v54  ;;  %v7118_v9 = vor.u32 %v8229_v61, %v7117_v20 }
 0x623   : > { %4524 = vmatpush.bf16.msrb.mxu1 %v7110_v15  ;;  %v8270_v15 = vld [vmem:[%s12388_s14 + $0x184] sm:$0xf] }
 0x624   : > { %4597 = vmatpush.bf16.msra.mxu0 %v7198_v51  ;;  %v7290_v24 = vor.u32 %v8270_v15, %v7287_v16  ;;  %v7370_v51 = vor.u32 %v8290_v55, %v7367_v60  ;;  %v7229_v15 = vld [vmem:[%s12388_s14 + $0x108] sm:$0xf]  ;;  %v8257_v16 = vld [vmem:[%s12388_s14 + $0x114] sm:$0xf0] }
 0x625   : > { %v8313_v60 = vld [vmem:[%s12388_s14 + $0x2d4] sm:$0xf0] }
 0x627   : > { %4525 = vmatpush.bf16.msrb.mxu1 %v7094_v2  ;;  %v8266_v2 = vld [vmem:[%s12388_s14 + $0x164] sm:$0xf] }
 0x628   : > { %4598 = vmatpush.bf16.msra.mxu0 %v7182_v19  ;;  %v7274_v12 = vor.u32 %v8266_v2, %v7271_v30  ;;  %v7101_v19 = vld [vmem:[%s12388_s14 + $0x8] sm:$0xf]  ;;  %v4007_v30 = vperm.slane %v3748_v28, 0 }
 0x62b   : > { %4570 = vmatpush.bf16.msra.mxu1 %v7338_v49  ;;  %v7255_v49 = vld [vmem:[%s12388_s14 + $0x150] sm:$0xf0] }
 0x62c   : > { %v7258_v58 = vor.u32 %v8262_v26, %v7255_v49 }
 0x62f   : > { %4571 = vmatpush.bf16.msra.mxu1 %v7322_v7  ;;  %v7262_v7 = vor.u32 %v8265_v6, %v7261_v53  ;;  %v7471_v53 = vld [vmem:[%s12388_s14 + $0x2f8] sm:$0xf0] }
 0x633   : > { %4572 = vmatpush.bf16.msra.mxu1 %v7306_v0  ;;  %v8254_v0 = vld [vmem:[%s12388_s14 + $0x104] sm:$0xf] }
 0x637   : > { %4573 = vmatpush.bf16.msra.mxu1 %v7290_v24  ;;  %v7230_v24 = vor.u32 %v8257_v16, %v7229_v15  ;;  %v8275_v15 = vld [vmem:[%s12388_s14 + $0x1ac] sm:$0xf]  ;;  %v7311_v16 = vld [vmem:[%s12388_s14 + $0x1b8] sm:$0xf0] }
 0x63b   : > { %4574 = vmatpush.bf16.msra.mxu1 %v7274_v12  ;;  %v4009_v12 = vperm.slane %v3748_v28, 2  ;;  %v8239_v28 = vld [vmem:[%s12388_s14 + $0x8c] sm:$0xf] }
 0x63f   : > { %4575 = vmatpush.bf16.msra.mxu1 %v7258_v58  ;;  %v8317_v58 = vld [vmem:[%s12388_s14 + $0x2f4] sm:$0xf0] }
 0x640   : > { %v7470_v6 = vor.u32 %v8317_v58, %v7469_v57  ;;  %v7407_v57 = vld [vmem:[%s12388_s14 + $0x278] sm:$0xf0] }
 0x643   : > { %4576 = vmatpush.bf16.msra.mxu1 %v7242_v56  ;;  %v7453_v56 = vld [vmem:[%s12388_s14 + $0x2c8] sm:$0xf] }
 0x683   : > { %v3979_v42 = vpop.xlane.xlu0 %3978 }
 0x684   : > { %v3980_v11 = vmul.f32 %v3979_v42, %v8853_v25  ;;  %v7434_v42 = vor.u32 %v8306_v10, %v7431_v1  ;;  %v7246_v10 = vor.u32 %v8261_v62, %v7245_v18  ;;  %v7223_v1 = vld [vmem:[%s12388_s14 + $0x110] sm:$0xf0]  ;;  %v8279_v18 = vld [vmem:[%s12388_s14 + $0x1cc] sm:$0xf]  ;;  %v7327_v62 = vld [vmem:[%s12388_s14 + $0x1d8] sm:$0xf0] }
 0x685   : > { %v7226_v5 = vor.u32 %v8254_v0, %v7223_v1  ;;  %v7455_v0 = vld [vmem:[%s12388_s14 + $0x2d8] sm:$0xf0]  ;;  %v7454_v1 = vor.u32 %v8313_v60, %v7453_v56 }
 0x686   : > { %v11276_v17 = vsub.f32 %v11097_v41, %v3980_v11  ;;  %v11279_v21 = vsub.f32 %v11099_v46, %v3980_v11  ;;  %v11282_v23 = vsub.f32 %v11101_v52, %v3980_v11  ;;  %v7309_v11 = vld [vmem:[%s12388_s14 + $0x1a8] sm:$0xf]  ;;  %4585 = vmatpush.bf16.msra.mxu3 %v7434_v42  ;;  %v7351_v42 = vld [vmem:[%s12388_s14 + $0x210] sm:$0xf0] }
 0x687   : > { %v7310_v14 = vor.u32 %v8277_v13, %v7309_v11  ;;  %v8225_v11 = vld [vmem:[%s12388_s14 + $0x14] sm:$0xf0]  ;;  %v7354_v13 = vor.u32 %v8286_v34, %v7351_v42  ;;  %4577 = vmatpush.bf16.msra.mxu1 %v7226_v5  ;;  %v7437_v5 = vld [vmem:[%s12388_s14 + $0x2a8] sm:$0xf] }
 0x688   : > { %v3984_v63 = vmul.f32 %v11276_v17, %v11276_v17  ;;  %v3985_v48 = vmul.f32 %v11279_v21, %v11279_v21  ;;  %v3986_v59 = vmul.f32 %v11282_v23, %v11282_v23  ;;  %v8309_v42 = vld [vmem:[%s12388_s14 + $0x2b4] sm:$0xf0] }
 0x689   : > { %4611 = vmatpush.bf16.msra.mxu2 %v7310_v14  ;;  %v7102_v14 = vor.u32 %v8225_v11, %v7101_v19  ;;  %v7330_v19 = vor.u32 %v8279_v18, %v7327_v62  ;;  %v8227_v18 = vld [vmem:[%s12388_s14 + $0x2c] sm:$0xf]  ;;  %v7119_v62 = vld [vmem:[%s12388_s14 + $0x38] sm:$0xf0] }
 0x68a   : > { %v3987_v44 = vadd.f32 %v3985_v48, %v3984_v63  ;;  %v7415_v63 = vld [vmem:[%s12388_s14 + $0x290] sm:$0xf0]  ;;  %v7165_v48 = vld [vmem:[%s12388_s14 + $0x88] sm:$0xf] }
 0x68c   : > { %v3988_v4 = vadd.f32 %v3987_v44, %v3986_v59  ;;  %v8241_v59 = vld [vmem:[%s12388_s14 + $0x94] sm:$0xf0]  ;;  %v7418_v44 = vor.u32 %v8302_v43, %v7415_v63 }
 0x68d   : > { %4612 = vmatpush.bf16.msra.mxu2 %v7294_v29 }
 0x68e   : > { %3989 = vadd.xlane.f32.xlu1 %v3988_v4  ;;  %v7166_v4 = vor.u32 %v8241_v59, %v7165_v48  ;;  %4586 = vmatpush.bf16.msra.mxu3 %v7418_v44 }
 0x690   : > { %4599 = vmatpush.bf16.msra.mxu0 %v7166_v4 }
 0x691   : > { %4613 = vmatpush.bf16.msra.mxu2 %v7278_v40 }
 0x692   : > { %4587 = vmatpush.bf16.msra.mxu3 %v7402_v22 }
 0x694   : > { %4600 = vmatpush.bf16.msra.mxu0 %v7150_v36 }
 0x695   : > { %4614 = vmatpush.bf16.msra.mxu2 %v7262_v7 }
 0x696   : > { %4588 = vmatpush.bf16.msra.mxu3 %v7386_v47  ;;  %v7343_v47 = vld [vmem:[%s12388_s14 + $0x1f8] sm:$0xf0] }
 0x698   : > { %4601 = vmatpush.bf16.msra.mxu0 %v7134_v50  ;;  %v8315_v50 = vld [vmem:[%s12388_s14 + $0x2ec] sm:$0xf] }
 0x699   : > { %4615 = vmatpush.bf16.msra.mxu2 %v7246_v10  ;;  %v7474_v61 = vor.u32 %v8315_v50, %v7471_v53  ;;  %v8311_v10 = vld [vmem:[%s12388_s14 + $0x2cc] sm:$0xf]  ;;  %v7263_v53 = vld [vmem:[%s12388_s14 + $0x158] sm:$0xf0] }
 0x69a   : > { %4589 = vmatpush.bf16.msra.mxu3 %v7370_v51  ;;  %v8247_v51 = vld [vmem:[%s12388_s14 + $0xcc] sm:$0xf]  ;;  %v7458_v11 = vor.u32 %v8311_v10, %v7455_v0  ;;  %v7247_v0 = vld [vmem:[%s12388_s14 + $0x138] sm:$0xf0] }
 0x69b   : > { %v8263_v50 = vld [vmem:[%s12388_s14 + $0x14c] sm:$0xf] }
 0x69c   : > { %4602 = vmatpush.bf16.msra.mxu0 %v7118_v9  ;;  %v7199_v9 = vld [vmem:[%s12388_s14 + $0xd8] sm:$0xf0]  ;;  %v8259_v10 = vld [vmem:[%s12388_s14 + $0x12c] sm:$0xf] }
 0x69d   : > { %4616 = vmatpush.bf16.msra.mxu2 %v7230_v24  ;;  %v7202_v34 = vor.u32 %v8247_v51, %v7199_v9  ;;  %v7439_v24 = vld [vmem:[%s12388_s14 + $0x2b8] sm:$0xf0]  ;;  %v7266_v51 = vor.u32 %v8263_v50, %v7263_v53  ;;  %v8331_v50 = vld [vmem:[%s12390_s16 + $0x68] sm:$0xf0]  ;;  %v8382_v53 = vld [vmem:[%s12390_s16 + $0x200] sm:$0xf0] }
 0x69e   : > { %4590 = vmatpush.bf16.msra.mxu3 %v7354_v13  ;;  %v8243_v13 = vld [vmem:[%s12388_s14 + $0xac] sm:$0xf] }
 0x6a0   : > { %4603 = vmatpush.bf16.msra.mxu0 %v7102_v14  ;;  %v7183_v14 = vld [vmem:[%s12388_s14 + $0xb8] sm:$0xf0] }
 0x701   : > { %v3990_v43 = vpop.xlane.xlu1 %3989 }
 0x702   : > { %v3991_v63 = vmul.f32 %v3990_v43, %v8853_v25  ;;  %v3749_v25 = vld [vmem:[%s12387_s13] sm:$0x7]  ;;  %v8307_v43 = vld [vmem:[%s12388_s14 + $0x2ac] sm:$0xf] }
 0x703   : > { %v4017_v32 = vperm.slane %v3749_v25, 0  ;;  %v4018_v33 = vperm.slane %v3749_v25, 1  ;;  %v4019_v38 = vperm.slane %v3749_v25, 2  ;;  %v8271_v25 = vld [vmem:[%s12388_s14 + $0x18c] sm:$0xf] }
 0x704   : > { %v3992_v48 = vadd.f32 1e-05, %v3991_v63  ;;  %v7438_v63 = vor.u32 %v8309_v42, %v7437_v5  ;;  %v7122_v42 = vor.u32 %v8227_v18, %v7119_v62  ;;  %v7717_v62 = vld [vmem:[%s12390_s16 + $0x1e0] sm:$0xf] }
 0x706   : > { %8469 = vrsqrt.f32 %v3992_v48  ;;  %vm3999_vm0 = vweird.f32 %v3992_v48 }
 0x70c   : > { %v8470_v59 = vpop.eup %8469 }
 0x70d   : > { %v3994_v44 = vmul.f32 %v8470_v59, %v3992_v48  ;;  %vm4000_vm15 = vweird.f32 %v8470_v59  ;;  %v7186_v48 = vor.u32 %v8243_v13, %v7183_v14  ;;  %v8223_v13 = vld [vmem:[%s12388_s14 + $0xc] sm:$0xf]  ;;  %v7250_v14 = vor.u32 %v8259_v10, %v7247_v0  ;;  %v8328_v0 = vld [vmem:[%s12390_s16 + $0x50] sm:$0xf0] }
 0x70e   : > { %vm4001_vm1 = vmor %vm3999_vm0, %vm4000_vm15  ;;  %v8379_v10 = vld [vmem:[%s12390_s16 + $0x1e8] sm:$0xf0] }
 0x70f   : > { %v3995_v4 = vmul.f32 %v8470_v59, %v3994_v44  ;;  %v8305_v44 = vld [vmem:[%s12388_s14 + $0x294] sm:$0xf0] }
 0x711   : > { %v3996_v27 = vmul.f32 0.5, %v3995_v4  ;;  %v7314_v4 = vor.u32 %v8275_v15, %v7311_v16  ;;  %v7103_v16 = vld [vmem:[%s12388_s14 + $0x18] sm:$0xf0] }
 0x713   : > { %v3997_v29 = vsub.f32 1.5, %v3996_v27  ;;  %v7442_v27 = vor.u32 %v8307_v43, %v7439_v24  ;;  %v8255_v43 = vld [vmem:[%s12388_s14 + $0x10c] sm:$0xf]  ;;  %v7231_v24 = vld [vmem:[%s12388_s14 + $0x118] sm:$0xf0] }
 0x715   : > { %v3998_v2 = vmul.f32 %v8470_v59, %v3997_v29  ;;  %v7167_v29 = vld [vmem:[%s12388_s14 + $0x98] sm:$0xf0] }
 0x717   : > { %v4002_v3 = vsel %vm4001_vm1, %v8470_v59, %v3998_v2  ;;  %v7421_v59 = vld [vmem:[%s12388_s14 + $0x288] sm:$0xf]  ;;  %v7295_v2 = vld [vmem:[%s12388_s14 + $0x198] sm:$0xf0] }
 0x718   : > { %v4003_v22 = vmul.f32 %v4002_v3, %v11276_v17  ;;  %v4004_v36 = vmul.f32 %v4002_v3, %v11279_v21  ;;  %v4005_v37 = vmul.f32 %v4002_v3, %v11282_v23  ;;  %v8251_v17 = vld [vmem:[%s12388_s14 + $0xec] sm:$0xf]  ;;  %v7215_v21 = vld [vmem:[%s12388_s14 + $0xf8] sm:$0xf0]  ;;  %v7170_v3 = vor.u32 %v8239_v28, %v7167_v29 }
 0x719   : > { %v8283_v23 = vld [vmem:[%s12388_s14 + $0x1ec] sm:$0xf]  ;;  %v7218_v55 = vor.u32 %v8251_v17, %v7215_v21  ;;  %v7389_v21 = vld [vmem:[%s12388_s14 + $0x248] sm:$0xf]  ;;  %v7106_v29 = vor.u32 %v8223_v13, %v7103_v16  ;;  %v7597_v16 = vld [vmem:[%s12390_s16 + $0xf0] sm:$0xf] }
 0x71a   : > { %v4013_v40 = vmul.f32 %v4007_v30, %v4003_v22  ;;  %v4014_v26 = vmul.f32 %v4008_v31, %v4004_v36  ;;  %v4015_v49 = vmul.f32 %v4009_v12, %v4005_v37  ;;  %v7346_v20 = vor.u32 %v8283_v23, %v7343_v47  ;;  %v8303_v30 = vld [vmem:[%s12388_s14 + $0x28c] sm:$0xf]  ;;  %v7423_v31 = vld [vmem:[%s12388_s14 + $0x298] sm:$0xf0]  ;;  %v8297_v23 = vld [vmem:[%s12388_s14 + $0x254] sm:$0xf0] }
 0x71b   : > { %v7422_v12 = vor.u32 %v8305_v44, %v7421_v59  ;;  %v7298_v22 = vor.u32 %v8271_v25, %v7295_v2  ;;  %v7426_v36 = vor.u32 %v8303_v30, %v7423_v31  ;;  %v8235_v37 = vld [vmem:[%s12388_s14 + $0x6c] sm:$0xf]  ;;  %v7135_v47 = vld [vmem:[%s12388_s14 + $0x58] sm:$0xf0]  ;;  %v7390_v56 = vor.u32 %v8297_v23, %v7389_v21  ;;  %v7561_v59 = vld [vmem:[%s12390_s16 + $0xa8] sm:$0xf] }
 0x71c   : > { %v4023_v39 = vadd.f32 %v4017_v32, %v4013_v40  ;;  %v4024_v45 = vadd.f32 %v4018_v33, %v4014_v26  ;;  %v4025_v35 = vadd.f32 %v4019_v38, %v4015_v49  ;;  %v7405_v32 = vld [vmem:[%s12388_s14 + $0x268] sm:$0xf]  ;;  %v8301_v33 = vld [vmem:[%s12388_s14 + $0x274] sm:$0xf0]  ;;  %v7151_v38 = vld [vmem:[%s12388_s14 + $0x78] sm:$0xf0]  ;;  %v7234_v25 = vor.u32 %v8255_v43, %v7231_v24 }
 0x71d   : > { %v8267_v40 = vld [vmem:[%s12388_s14 + $0x16c] sm:$0xf]  ;;  %v7279_v26 = vld [vmem:[%s12388_s14 + $0x178] sm:$0xf0]  ;;  %v7406_v58 = vor.u32 %v8301_v33, %v7405_v32  ;;  %v7154_v17 = vor.u32 %v8235_v37, %v7151_v38  ;;  %v8340_v44 = vld [vmem:[%s12390_s16 + $0xb0] sm:$0xf0] }
 0x71e   : > { %v11540_v7 = vpack.c.bf16 %v4023_v39, %v4023_v39  ;;  %v11542_v8 = vpack.c.bf16 %v4024_v45, %v4024_v45  ;;  %v11544_v54 = vpack.c.bf16 %v4025_v35, %v4025_v35  ;;  %v8299_v49 = vld [vmem:[%s12388_s14 + $0x26c] sm:$0xf]  ;;  %v7282_v39 = vor.u32 %v8267_v40, %v7279_v26  ;;  %v7549_v31 = vld [vmem:[%s12390_s16 + $0x90] sm:$0xf]  ;;  %v8388_v32 = vld [vmem:[%s12390_s16 + $0x230] sm:$0xf0] }
 0x71f   : > { %v7410_v45 = vor.u32 %v8299_v49, %v7407_v57  ;;  %v8231_v35 = vld [vmem:[%s12388_s14 + $0x4c] sm:$0xf]  ;;  %v7562_v30 = vor.u32 %v8340_v44, %v7561_v59  ;;  %v8337_v33 = vld [vmem:[%s12390_s16 + $0x98] sm:$0xf0]  ;;  %v7537_v37 = vld [vmem:[%s12390_s16 + $0x78] sm:$0xf] }
 0x720   : > { %4526 = vmatmul.bf16.vlgmr.msrb.gmra.mxu1 %v11540_v7  ;;  %4539 = vmatmul.bf16.vlgmr.msrb.gmra.mxu3 %v11542_v8  ;;  %v7138_v60 = vor.u32 %v8231_v35, %v7135_v47  ;;  %v7550_v40 = vor.u32 %v8337_v33, %v7549_v31  ;;  %v8334_v26 = vld [vmem:[%s12390_s16 + $0x80] sm:$0xf0]  ;;  %v7741_v57 = vld [vmem:[%s12390_s16 + $0x210] sm:$0xf]  ;;  %v7849_v23 = vld [vmem:[%s12390_s16 + $0x2e8] sm:$0xf] }
 0x721   : > { %4552 = vmatmul.bf16.vlgmr.msrb.gmra.mxu0 %v11544_v54  ;;  %4565 = vmatmul.bf16.vlgmr.msrb.gmra.mxu2 %v11540_v7  ;;  %v8358_v21 = vld [vmem:[%s12390_s16 + $0x140] sm:$0xf0]  ;;  %v7538_v47 = vor.u32 %v8334_v26, %v7537_v37  ;;  %v7705_v13 = vld [vmem:[%s12390_s16 + $0x1c8] sm:$0xf]  ;;  %v8349_v43 = vld [vmem:[%s12390_s16 + $0xf8] sm:$0xf0] }
 0x722   : > { %4622 = vmatpush.bf16.msrb.mxu1 %v7470_v6  ;;  %4635 = vmatpush.bf16.msrb.mxu3 %v7218_v55  ;;  %v8295_v6 = vld [vmem:[%s12388_s14 + $0x24c] sm:$0xf]  ;;  %v7391_v55 = vld [vmem:[%s12388_s14 + $0x258] sm:$0xf0]  ;;  %v7598_v59 = vor.u32 %v8349_v43, %v7597_v16  ;;  %v8322_v44 = vld [vmem:[%s12390_s16 + $0x20] sm:$0xf0] }
 0x723   : > { %4648 = vmatpush.bf16.msrb.mxu0 %v7346_v20  ;;  %4661 = vmatpush.bf16.msrb.mxu2 %v7474_v61  ;;  %v7373_v20 = vld [vmem:[%s12388_s14 + $0x228] sm:$0xf]  ;;  %v8293_v61 = vld [vmem:[%s12388_s14 + $0x234] sm:$0xf0]  ;;  %v7394_v9 = vor.u32 %v8295_v6, %v7391_v55  ;;  %v7621_v6 = vld [vmem:[%s12390_s16 + $0x120] sm:$0xf] }
 0x724   : > { %v7374_v5 = vor.u32 %v8293_v61, %v7373_v20  ;;  %v8355_v55 = vld [vmem:[%s12390_s16 + $0x128] sm:$0xf0]  ;;  %v7563_v31 = vld [vmem:[%s12390_s16 + $0xb4] sm:$0xf0]  ;;  %v7551_v33 = vld [vmem:[%s12390_s16 + $0x9c] sm:$0xf0] }
 0x725   : > { %v7622_v18 = vor.u32 %v8355_v55, %v7621_v6  ;;  %v7539_v37 = vld [vmem:[%s12390_s16 + $0x84] sm:$0xf0]  ;;  %v7527_v26 = vld [vmem:[%s12390_s16 + $0x6c] sm:$0xf0]  ;;  %v7813_v6 = vld [vmem:[%s12390_s16 + $0x2a0] sm:$0xf] }
 0x726   : > { %4623 = vmatpush.bf16.msrb.mxu1 %v7454_v1  ;;  %4636 = vmatpush.bf16.msrb.mxu3 %v7202_v34  ;;  %v8291_v1 = vld [vmem:[%s12388_s14 + $0x22c] sm:$0xf]  ;;  %v7375_v34 = vld [vmem:[%s12388_s14 + $0x238] sm:$0xf0] }
 0x727   : > { %4649 = vmatpush.bf16.msrb.mxu0 %v7330_v19  ;;  %4662 = vmatpush.bf16.msrb.mxu2 %v7458_v11  ;;  %v7357_v19 = vld [vmem:[%s12388_s14 + $0x208] sm:$0xf]  ;;  %v8289_v11 = vld [vmem:[%s12388_s14 + $0x214] sm:$0xf0]  ;;  %v7378_v15 = vor.u32 %v8291_v1, %v7375_v34  ;;  %v8352_v34 = vld [vmem:[%s12390_s16 + $0x110] sm:$0xf0] }
 0x728   : > { %v7358_v28 = vor.u32 %v8289_v11, %v7357_v19  ;;  %v7609_v1 = vld [vmem:[%s12390_s16 + $0x108] sm:$0xf]  ;;  %v7501_v19 = vld [vmem:[%s12390_s16 + $0x30] sm:$0xf]  ;;  %v8403_v55 = vld [vmem:[%s12390_s16 + $0x2a8] sm:$0xf0] }
 0x729   : > { %v7610_v11 = vor.u32 %v8352_v34, %v7609_v1  ;;  %v7801_v34 = vld [vmem:[%s12390_s16 + $0x288] sm:$0xf]  ;;  %v8321_v43 = vld [vmem:[%s12390_s16 + $0x1c] sm:$0xf] }
 0x72a   : > { %4624 = vmatpush.bf16.msrb.mxu1 %v7438_v63  ;;  %4637 = vmatpush.bf16.msrb.mxu3 %v7186_v48  ;;  %v8287_v63 = vld [vmem:[%s12388_s14 + $0x20c] sm:$0xf]  ;;  %v7359_v48 = vld [vmem:[%s12388_s14 + $0x218] sm:$0xf0] }
 0x72b   : > { %4650 = vmatpush.bf16.msrb.mxu0 %v7314_v4  ;;  %4663 = vmatpush.bf16.msrb.mxu2 %v7442_v27  ;;  %v7657_v4 = vld [vmem:[%s12390_s16 + $0x168] sm:$0xf]  ;;  %v8364_v27 = vld [vmem:[%s12390_s16 + $0x170] sm:$0xf0]  ;;  %v7362_v2 = vor.u32 %v8287_v63, %v7359_v48  ;;  %v7489_v48 = vld [vmem:[%s12390_s16 + $0x18] sm:$0xf] }
 0x72e   : > { %4625 = vmatpush.bf16.msrb.mxu1 %v7422_v12  ;;  %4638 = vmatpush.bf16.msrb.mxu3 %v7170_v3  ;;  %v7658_v12 = vor.u32 %v8364_v27, %v7657_v4  ;;  %v7753_v3 = vld [vmem:[%s12390_s16 + $0x228] sm:$0xf]  ;;  %v7585_v4 = vld [vmem:[%s12390_s16 + $0xd8] sm:$0xf]  ;;  %v8346_v27 = vld [vmem:[%s12390_s16 + $0xe0] sm:$0xf0] }
 0x72f   : > { %4651 = vmatpush.bf16.msrb.mxu0 %v7298_v22  ;;  %4664 = vmatpush.bf16.msrb.mxu2 %v7426_v36  ;;  %v7645_v22 = vld [vmem:[%s12390_s16 + $0x150] sm:$0xf]  ;;  %v8361_v36 = vld [vmem:[%s12390_s16 + $0x158] sm:$0xf0]  ;;  %v7754_v38 = vor.u32 %v8388_v32, %v7753_v3  ;;  %v8336_v32 = vld [vmem:[%s12390_s16 + $0x94] sm:$0xf] }
 0x730   : > { %4578 = vmatmul.bf16.vlgmr.msra.gmra.mxu1 %v11542_v8  ;;  %4591 = vmatmul.bf16.vlgmr.msra.gmra.mxu3 %v11544_v54  ;;  %v7646_v49 = vor.u32 %v8361_v36, %v7645_v22  ;;  %v7554_v22 = vor.u32 %v8336_v32, %v7551_v33  ;;  %v8333_v36 = vld [vmem:[%s12390_s16 + $0x7c] sm:$0xf]  ;;  %v7743_v32 = vld [vmem:[%s12390_s16 + $0x21c] sm:$0xf0]  ;;  %v7777_v33 = vld [vmem:[%s12390_s16 + $0x258] sm:$0xf] }
 0x731   : > { %4604 = vmatmul.bf16.vlgmr.msra.gmra.mxu0 %v11540_v7  ;;  %4617 = vmatmul.bf16.vlgmr.msra.gmra.mxu2 %v11542_v8 }
 0x732   : > { %4626 = vmatpush.bf16.msrb.mxu1 %v7406_v58  ;;  %4639 = vmatpush.bf16.msrb.mxu3 %v7154_v17  ;;  %v8385_v58 = vld [vmem:[%s12390_s16 + $0x218] sm:$0xf0]  ;;  %v7633_v17 = vld [vmem:[%s12390_s16 + $0x138] sm:$0xf] }
 0x733   : > { %4652 = vmatpush.bf16.msrb.mxu0 %v7282_v39  ;;  %4665 = vmatpush.bf16.msrb.mxu2 %v7410_v45  ;;  %v7525_v39 = vld [vmem:[%s12390_s16 + $0x60] sm:$0xf]  ;;  %v7742_v45 = vor.u32 %v8385_v58, %v7741_v57  ;;  %v8343_v58 = vld [vmem:[%s12390_s16 + $0xc8] sm:$0xf0] }
 0x734   : > { %v7573_v57 = vld [vmem:[%s12390_s16 + $0xc0] sm:$0xf] }
 0x736   : > { %4627 = vmatpush.bf16.msrb.mxu1 %v7390_v56  ;;  %4640 = vmatpush.bf16.msrb.mxu3 %v7138_v60  ;;  %v7837_v56 = vld [vmem:[%s12390_s16 + $0x2d0] sm:$0xf]  ;;  %v8409_v60 = vld [vmem:[%s12390_s16 + $0x2d8] sm:$0xf0] }
 0x737   : > { %4653 = vmatpush.bf16.msrb.mxu0 %v7266_v51  ;;  %4666 = vmatpush.bf16.msrb.mxu2 %v7394_v9  ;;  %v7838_v61 = vor.u32 %v8409_v60, %v7837_v56  ;;  %v7526_v51 = vor.u32 %v8331_v50, %v7525_v39  ;;  %v7513_v9 = vld [vmem:[%s12390_s16 + $0x48] sm:$0xf]  ;;  %v7659_v39 = vld [vmem:[%s12390_s16 + $0x174] sm:$0xf0]  ;;  %v8373_v50 = vld [vmem:[%s12390_s16 + $0x1b8] sm:$0xf0]  ;;  %v7814_v60 = vor.u32 %v8403_v55, %v7813_v6 }
 0x738   : > { %v8345_v6 = vld [vmem:[%s12390_s16 + $0xdc] sm:$0xf]  ;;  %v7587_v55 = vld [vmem:[%s12390_s16 + $0xe4] sm:$0xf0] }
 0x73a   : > { %4628 = vmatpush.bf16.msrb.mxu1 %v7374_v5  ;;  %4641 = vmatpush.bf16.msrb.mxu3 %v7122_v42  ;;  %v7718_v5 = vor.u32 %v8379_v10, %v7717_v62  ;;  %v7514_v42 = vor.u32 %v8328_v0, %v7513_v9  ;;  %v7681_v9 = vld [vmem:[%s12390_s16 + $0x198] sm:$0xf]  ;;  %v8324_v10 = vld [vmem:[%s12390_s16 + $0x34] sm:$0xf]  ;;  %v7503_v0 = vld [vmem:[%s12390_s16 + $0x3c] sm:$0xf0] }
 0x73b   : > { %4654 = vmatpush.bf16.msrb.mxu0 %v7250_v14  ;;  %4667 = vmatpush.bf16.msrb.mxu2 %v7378_v15  ;;  %v8376_v14 = vld [vmem:[%s12390_s16 + $0x1d0] sm:$0xf0]  ;;  %v8325_v15 = vld [vmem:[%s12390_s16 + $0x38] sm:$0xf0]  ;;  %v7506_v1 = vor.u32 %v8324_v10, %v7503_v0  ;;  %v7575_v10 = vld [vmem:[%s12390_s16 + $0xcc] sm:$0xf0] }
 0x73c   : > { %v7706_v24 = vor.u32 %v8376_v14, %v7705_v13  ;;  %v7502_v63 = vor.u32 %v8325_v15, %v7501_v19  ;;  %v8357_v19 = vld [vmem:[%s12390_s16 + $0x13c] sm:$0xf]  ;;  %v7669_v14 = vld [vmem:[%s12390_s16 + $0x180] sm:$0xf]  ;;  %v8367_v15 = vld [vmem:[%s12390_s16 + $0x188] sm:$0xf0] }
 0x73d   : > { %v7670_v16 = vor.u32 %v8367_v15, %v7669_v14  ;;  %v8405_v0 = vld [vmem:[%s12390_s16 + $0x2bc] sm:$0xf]  ;;  %v8402_v15 = vld [vmem:[%s12390_s16 + $0x2a4] sm:$0xf] }
 0x73e   : > { %4629 = vmatpush.bf16.msrb.mxu1 %v7358_v28  ;;  %4642 = vmatpush.bf16.msrb.mxu3 %v7106_v29  ;;  %v7490_v28 = vor.u32 %v8322_v44, %v7489_v48  ;;  %v7586_v29 = vor.u32 %v8346_v27, %v7585_v4  ;;  %v7789_v44 = vld [vmem:[%s12390_s16 + $0x270] sm:$0xf]  ;;  %v8397_v4 = vld [vmem:[%s12390_s16 + $0x278] sm:$0xf0] }
 0x73f   : > { %4655 = vmatpush.bf16.msrb.mxu0 %v7234_v25  ;;  %4668 = vmatpush.bf16.msrb.mxu2 %v7362_v2  ;;  %v7477_v25 = vld [vmem:[%s12390_s16] sm:$0xf]  ;;  %v8319_v2 = vld [vmem:[%s12390_s16 + $0x8] sm:$0xf0] }
 0x741   : > { %4630 = vmatmul.bf16.vlgmr.msrb.gmra.mxu1 %v11544_v54  ;;  %4643 = vmatmul.bf16.vlgmr.msrb.gmra.mxu3 %v11540_v7  ;;  %v8412_v7 = vld [vmem:[%s12390_s16 + $0x2f0] sm:$0xf0] }
 0x742   : > { %5201 = vmatpush.bf16.msra.mxu1 %v7562_v30  ;;  %5214 = vmatpush.bf16.msra.mxu3 %v7658_v12  ;;  %v7850_v35 = vor.u32 %v8412_v7, %v7849_v23  ;;  %v8339_v30 = vld [vmem:[%s12390_s16 + $0xac] sm:$0xf]  ;;  %v7478_v12 = vor.u32 %v8319_v2, %v7477_v25  ;;  %v8406_v23 = vld [vmem:[%s12390_s16 + $0x2c0] sm:$0xf0]  ;;  %v7623_v25 = vld [vmem:[%s12390_s16 + $0x12c] sm:$0xf0] }
 0x743   : > { %4656 = vmatmul.bf16.vlgmr.msrb.gmra.mxu0 %v11542_v8  ;;  %4669 = vmatmul.bf16.vlgmr.msrb.gmra.mxu2 %v11544_v54  ;;  %v7634_v8 = vor.u32 %v8358_v21, %v7633_v17  ;;  %v7729_v54 = vld [vmem:[%s12390_s16 + $0x1f8] sm:$0xf]  ;;  %v7566_v3 = vor.u32 %v8339_v30, %v7563_v31  ;;  %v7574_v21 = vor.u32 %v8343_v58, %v7573_v57  ;;  %v8363_v7 = vld [vmem:[%s12390_s16 + $0x16c] sm:$0xf]  ;;  %v8318_v30 = vld [vmem:[%s12390_s16 + $0x4] sm:$0xf] }
 0x744   : > { %5227 = vmatpush.bf16.msra.mxu0 %v7754_v38  ;;  %5240 = vmatpush.bf16.msra.mxu2 %v7850_v35  ;;  %v7730_v20 = vor.u32 %v8382_v53, %v7729_v54  ;;  %v7542_v38 = vor.u32 %v8333_v36, %v7539_v37  ;;  %v7825_v17 = vld [vmem:[%s12390_s16 + $0x2b8] sm:$0xf]  ;;  %v7662_v35 = vor.u32 %v8363_v7, %v7659_v39  ;;  %v7479_v31 = vld [vmem:[%s12390_s16 + $0xc] sm:$0xf0]  ;;  %v7731_v57 = vld [vmem:[%s12390_s16 + $0x204] sm:$0xf0] }
 0x745   : > { %v7515_v53 = vld [vmem:[%s12390_s16 + $0x54] sm:$0xf0]  ;;  %v7765_v58 = vld [vmem:[%s12390_s16 + $0x240] sm:$0xf]  ;;  %v8348_v7 = vld [vmem:[%s12390_s16 + $0xf4] sm:$0xf] }
 0x746   : > { %5202 = vmatpush.bf16.msra.mxu1 %v7550_v40  ;;  %5215 = vmatpush.bf16.msra.mxu3 %v7646_v49  ;;  %v8330_v40 = vld [vmem:[%s12390_s16 + $0x64] sm:$0xf]  ;;  %v7599_v39 = vld [vmem:[%s12390_s16 + $0xfc] sm:$0xf0] }
 0x747   : > { %v7530_v49 = vor.u32 %v8330_v40, %v7527_v26  ;;  %v7611_v40 = vld [vmem:[%s12390_s16 + $0x114] sm:$0xf0] }
 0x748   : > { %5228 = vmatpush.bf16.msra.mxu0 %v7742_v45  ;;  %5241 = vmatpush.bf16.msra.mxu2 %v7838_v61  ;;  %v7826_v45 = vor.u32 %v8406_v23, %v7825_v17  ;;  %v7647_v61 = vld [vmem:[%s12390_s16 + $0x15c] sm:$0xf0] }
 0x74a   : > { %5203 = vmatpush.bf16.msra.mxu1 %v7538_v47  ;;  %5216 = vmatpush.bf16.msra.mxu3 %v7634_v8  ;;  %v7693_v47 = vld [vmem:[%s12390_s16 + $0x1b0] sm:$0xf]  ;;  %v8327_v8 = vld [vmem:[%s12390_s16 + $0x4c] sm:$0xf] }
 0x74b   : > { %v7694_v54 = vor.u32 %v8373_v50, %v7693_v47  ;;  %v7518_v56 = vor.u32 %v8327_v8, %v7515_v53  ;;  %v7851_v47 = vld [vmem:[%s12390_s16 + $0x2f4] sm:$0xf0]  ;;  %v8378_v8 = vld [vmem:[%s12390_s16 + $0x1e4] sm:$0xf] }
 0x74c   : > { %5229 = vmatpush.bf16.msra.mxu0 %v7730_v20  ;;  %5242 = vmatpush.bf16.msra.mxu2 %v7826_v45  ;;  %v8360_v20 = vld [vmem:[%s12390_s16 + $0x154] sm:$0xf]  ;;  %v8411_v45 = vld [vmem:[%s12390_s16 + $0x2ec] sm:$0xf] }
 0x74d   : > { %v7854_v50 = vor.u32 %v8411_v45, %v7851_v47 }
 0x74e   : > { %5204 = vmatpush.bf16.msra.mxu1 %v7526_v51  ;;  %5217 = vmatpush.bf16.msra.mxu3 %v7622_v18  ;;  %v7650_v51 = vor.u32 %v8360_v20, %v7647_v61  ;;  %v8370_v18 = vld [vmem:[%s12390_s16 + $0x1a0] sm:$0xf0]  ;;  %v7839_v20 = vld [vmem:[%s12390_s16 + $0x2dc] sm:$0xf0] }
 0x74f   : > { %v7682_v62 = vor.u32 %v8370_v18, %v7681_v9  ;;  %v7707_v9 = vld [vmem:[%s12390_s16 + $0x1d4] sm:$0xf0] }
 0x750   : > { %5230 = vmatpush.bf16.msra.mxu0 %v7718_v5  ;;  %5243 = vmatpush.bf16.msra.mxu2 %v7814_v60  ;;  %v8400_v5 = vld [vmem:[%s12390_s16 + $0x290] sm:$0xf0]  ;;  %v7590_v60 = vor.u32 %v8345_v6, %v7587_v55  ;;  %v7545_v55 = vld [vmem:[%s12390_s16 + $0x80] sm:$0xf] }
 0x752   : > { %5205 = vmatpush.bf16.msra.mxu1 %v7514_v42  ;;  %5218 = vmatpush.bf16.msra.mxu3 %v7610_v11  ;;  %v7802_v42 = vor.u32 %v8400_v5, %v7801_v34  ;;  %v7635_v11 = vld [vmem:[%s12390_s16 + $0x144] sm:$0xf0]  ;;  %v12065_v5 = vld [vmem:[%s12389_s15] sm:$0xf] }
 0x753   : > { %v7638_v13 = vor.u32 %v8357_v19, %v7635_v11  ;;  %v7827_v34 = vld [vmem:[%s12390_s16 + $0x2c4] sm:$0xf0]  ;;  %v8372_v19 = vld [vmem:[%s12390_s16 + $0x1b4] sm:$0xf]  ;;  %v7695_v11 = vld [vmem:[%s12390_s16 + $0x1bc] sm:$0xf0] }
 0x754   : > { %5231 = vmatpush.bf16.msra.mxu0 %v7706_v24  ;;  %v7491_v24 = vld [vmem:[%s12390_s16 + $0x24] sm:$0xf0]  ;;  %5244 = vmatpush.bf16.msra.mxu2 %v7802_v42  ;;  %v7830_v42 = vor.u32 %v8405_v0, %v7827_v34  ;;  %v8365_v34 = vld [vmem:[%s12390_s16 + $0x178] sm:$0xf0] }
 0x755   : > { %v7494_v48 = vor.u32 %v8321_v43, %v7491_v24  ;;  %v4030_v43 = vperm.slane %v12065_v5, 0 }
 0x756   : > { %5206 = vmatpush.bf16.msra.mxu1 %v7502_v63  ;;  %5219 = vmatpush.bf16.msra.mxu3 %v7598_v59  ;;  %v8387_v63 = vld [vmem:[%s12390_s16 + $0x22c] sm:$0xf]  ;;  %v7755_v59 = vld [vmem:[%s12390_s16 + $0x234] sm:$0xf0] }
 0x757   : > { %v7758_v27 = vor.u32 %v8387_v63, %v7755_v59  ;;  %v7683_v59 = vld [vmem:[%s12390_s16 + $0x1a4] sm:$0xf0] }
 0x758   : > { %5232 = vmatpush.bf16.msra.mxu0 %v7694_v54  ;;  %v7719_v54 = vld [vmem:[%s12390_s16 + $0x1ec] sm:$0xf0] }
 0x759   : > { %v7722_v53 = vor.u32 %v8378_v8, %v7719_v54  ;;  %v8390_v54 = vld [vmem:[%s12390_s16 + $0x244] sm:$0xf] }
 0x75a   : > { %5207 = vmatpush.bf16.msra.mxu1 %v7490_v28  ;;  %5220 = vmatpush.bf16.msra.mxu3 %v7586_v29  ;;  %v7790_v28 = vor.u32 %v8397_v4, %v7789_v44  ;;  %v8354_v29 = vld [vmem:[%s12390_s16 + $0x124] sm:$0xf]  ;;  %v8399_v4 = vld [vmem:[%s12390_s16 + $0x28c] sm:$0xf] }
 0x75b   : > { %v7626_v2 = vor.u32 %v8354_v29, %v7623_v25 }
 0x75c   : > { %5233 = vmatpush.bf16.msra.mxu0 %v7682_v62  ;;  %5245 = vmatpush.bf16.msra.mxu2 %v7790_v28  ;;  %v8342_v62 = vld [vmem:[%s12390_s16 + $0xc4] sm:$0xf] }
 0x75e   : > { %5208 = vmatpush.bf16.msra.mxu1 %v7478_v12  ;;  %5221 = vmatpush.bf16.msra.mxu3 %v7574_v21  ;;  %v8384_v12 = vld [vmem:[%s12390_s16 + $0x214] sm:$0xf]  ;;  %v8391_v21 = vld [vmem:[%s12390_s16 + $0x248] sm:$0xf0] }
 0x75f   : > { %v7746_v36 = vor.u32 %v8384_v12, %v7743_v32  ;;  %v7766_v23 = vor.u32 %v8391_v21, %v7765_v58  ;;  %v8393_v58 = vld [vmem:[%s12390_s16 + $0x25c] sm:$0xf]  ;;  %v7557_v21 = vld [vmem:[%s12390_s16 + $0x98] sm:$0xf] }
 0x760   : > { %5234 = vmatpush.bf16.msra.mxu0 %v7670_v16  ;;  %v7815_v16 = vld [vmem:[%s12390_s16 + $0x2ac] sm:$0xf0] }
 0x761   : > { %v7818_v63 = vor.u32 %v8402_v15, %v7815_v16  ;;  %v8329_v15 = vld [vmem:[%s12390_s16 + $0x58] sm:$0xf0]  ;;  %v4032_v16 = vperm.slane %v12065_v5, 2 }
 0x762   : > { %5253 = vmatpush.bf16.msrb.mxu1 %v7566_v3  ;;  %5266 = vmatpush.bf16.msrb.mxu3 %v7662_v35  ;;  %v7482_v3 = vor.u32 %v8318_v30, %v7479_v31  ;;  %v7602_v35 = vor.u32 %v8348_v7, %v7599_v39  ;;  %v7671_v30 = vld [vmem:[%s12390_s16 + $0x18c] sm:$0xf0]  ;;  %v7779_v7 = vld [vmem:[%s12390_s16 + $0x264] sm:$0xf0] }
 0x763   : > { %v7782_v45 = vor.u32 %v8393_v58, %v7779_v7  ;;  %v4033_v58 = vperm.slane %v12065_v5, 3  ;;  %v7485_v7 = vld [vmem:[%s12390_s16 + $0x8] sm:$0xf] }
 0x764   : > { %5279 = vmatpush.bf16.msrb.mxu0 %v7758_v27  ;;  %v7803_v27 = vld [vmem:[%s12390_s16 + $0x294] sm:$0xf0] }
 0x765   : > { %v7806_v29 = vor.u32 %v8399_v4, %v7803_v27  ;;  %v8326_v4 = vld [vmem:[%s12390_s16 + $0x40] sm:$0xf0] }
 0x766   : > { %5254 = vmatpush.bf16.msrb.mxu1 %v7554_v22  ;;  %5267 = vmatpush.bf16.msrb.mxu3 %v7650_v51  ;;  %v8394_v22 = vld [vmem:[%s12390_s16 + $0x260] sm:$0xf0]  ;;  %v8375_v51 = vld [vmem:[%s12390_s16 + $0x1cc] sm:$0xf] }
 0x767   : > { %v7778_v37 = vor.u32 %v8394_v22, %v7777_v33  ;;  %v7710_v18 = vor.u32 %v8375_v51, %v7707_v9  ;;  %v8396_v33 = vld [vmem:[%s12390_s16 + $0x274] sm:$0xf]  ;;  %v7791_v22 = vld [vmem:[%s12390_s16 + $0x27c] sm:$0xf0]  ;;  %v7533_v9 = vld [vmem:[%s12390_s16 + $0x68] sm:$0xf] }
 0x768   : > { %5280 = vmatpush.bf16.msrb.mxu0 %v7746_v36 }
 0x769   : > { %5246 = vmatpush.bf16.msra.mxu2 %v7778_v37 }
 0x76a   : > { %5255 = vmatpush.bf16.msrb.mxu1 %v7542_v38  ;;  %5268 = vmatpush.bf16.msrb.mxu3 %v7638_v13  ;;  %v8351_v38 = vld [vmem:[%s12390_s16 + $0x10c] sm:$0xf]  ;;  %v7698_v13 = vor.u32 %v8372_v19, %v7695_v11 }
 0x76b   : > { %v7614_v26 = vor.u32 %v8351_v38, %v7611_v40  ;;  %v7569_v38 = vld [vmem:[%s12390_s16 + $0xb0] sm:$0xf]  ;;  %v8341_v40 = vld [vmem:[%s12390_s16 + $0xb8] sm:$0xf0] }
 0x76d   : > { %5247 = vmatpush.bf16.msra.mxu2 %v7766_v23  ;;  %v8338_v23 = vld [vmem:[%s12390_s16 + $0xa0] sm:$0xf0] }
 0x76e   : > { %5256 = vmatpush.bf16.msrb.mxu1 %v7530_v49  ;;  %5269 = vmatpush.bf16.msrb.mxu3 %v7626_v2  ;;  %v8381_v49 = vld [vmem:[%s12390_s16 + $0x1fc] sm:$0xf]  ;;  %v8366_v2 = vld [vmem:[%s12390_s16 + $0x184] sm:$0xf]  ;;  %v7558_v8 = vor.u32 %v8338_v23, %v7557_v21 }
 0x76f   : > { %v7734_v17 = vor.u32 %v8381_v49, %v7731_v57  ;;  %v7570_v57 = vor.u32 %v8341_v40, %v7569_v38  ;;  %v7761_v38 = vld [vmem:[%s12390_s16 + $0x230] sm:$0xf]  ;;  %v8389_v40 = vld [vmem:[%s12390_s16 + $0x238] sm:$0xf0] }
 0x770   : > { %v7762_v23 = vor.u32 %v8389_v40, %v7761_v38  ;;  %v8404_v38 = vld [vmem:[%s12390_s16 + $0x2b0] sm:$0xf0] }
 0x771   : > { %5281 = vmatpush.bf16.msrb.mxu0 %v7734_v17  ;;  %5292 = vmatpush.bf16.msrb.mxu2 %v7854_v50 }
 0x772   : > { %5257 = vmatpush.bf16.msrb.mxu1 %v7518_v56  ;;  %5270 = vmatpush.bf16.msrb.mxu3 %v7614_v26  ;;  %v8408_v56 = vld [vmem:[%s12390_s16 + $0x2d4] sm:$0xf]  ;;  %v7794_v26 = vor.u32 %v8396_v33, %v7791_v22  ;;  %v8323_v33 = vld [vmem:[%s12390_s16 + $0x28] sm:$0xf0] }
 0x773   : > { %v7842_v61 = vor.u32 %v8408_v56, %v7839_v20  ;;  %v8335_v56 = vld [vmem:[%s12390_s16 + $0x88] sm:$0xf0] }
 0x775   : > { %5282 = vmatpush.bf16.msrb.mxu0 %v7722_v53  ;;  %5293 = vmatpush.bf16.msrb.mxu2 %v7842_v61  ;;  %v7767_v53 = vld [vmem:[%s12390_s16 + $0x24c] sm:$0xf0]  ;;  %v7546_v61 = vor.u32 %v8335_v56, %v7545_v55 }
 0x776   : > { %5258 = vmatpush.bf16.msrb.mxu1 %v7506_v1  ;;  %5271 = vmatpush.bf16.msrb.mxu3 %v7602_v35  ;;  %v7578_v1 = vor.u32 %v8342_v62, %v7575_v10  ;;  %v4031_v35 = vperm.slane %v12065_v5, 1  ;;  %v8386_v5 = vld [vmem:[%s12390_s16 + $0x220] sm:$0xf0] }
 0x779   : > { %5283 = vmatpush.bf16.msrb.mxu0 %v7710_v18  ;;  %5294 = vmatpush.bf16.msrb.mxu2 %v7830_v42  ;;  %v8332_v18 = vld [vmem:[%s12390_s16 + $0x70] sm:$0xf0] }
 0x77a   : > { %5259 = vmatpush.bf16.msrb.mxu1 %v7494_v48  ;;  %5272 = vmatpush.bf16.msrb.mxu3 %v7590_v60  ;;  %v8369_v48 = vld [vmem:[%s12390_s16 + $0x19c] sm:$0xf]  ;;  %v7770_v60 = vor.u32 %v8390_v54, %v7767_v53  ;;  %v7534_v19 = vor.u32 %v8332_v18, %v7533_v9  ;;  %v7737_v9 = vld [vmem:[%s12390_s16 + $0x200] sm:$0xf]  ;;  %v8383_v18 = vld [vmem:[%s12390_s16 + $0x208] sm:$0xf0] }
 0x77b   : > { %v7686_v44 = vor.u32 %v8369_v48, %v7683_v59  ;;  %v8362_v48 = vld [vmem:[%s12390_s16 + $0x160] sm:$0xf0]  ;;  %v8353_v54 = vld [vmem:[%s12390_s16 + $0x118] sm:$0xf0] }
 0x77d   : > { %5284 = vmatpush.bf16.msrb.mxu0 %v7698_v13  ;;  %5295 = vmatpush.bf16.msrb.mxu2 %v7818_v63  ;;  %v7653_v63 = vld [vmem:[%s12390_s16 + $0x158] sm:$0xf] }
 0x77e   : > { %5260 = vmatpush.bf16.msrb.mxu1 %v7482_v3  ;;  %5273 = vmatpush.bf16.msrb.mxu3 %v7578_v1  ;;  %v7674_v3 = vor.u32 %v8366_v2, %v7671_v30  ;;  %v7665_v1 = vld [vmem:[%s12390_s16 + $0x170] sm:$0xf]  ;;  %v7641_v2 = vld [vmem:[%s12390_s16 + $0x140] sm:$0xf]  ;;  %v8359_v30 = vld [vmem:[%s12390_s16 + $0x148] sm:$0xf0] }
 0x781   : > { %5285 = vmatpush.bf16.msrb.mxu0 %v7686_v44  ;;  %5296 = vmatpush.bf16.msrb.mxu2 %v7806_v29  ;;  %v7509_v44 = vld [vmem:[%s12390_s16 + $0x38] sm:$0xf]  ;;  %v7654_v29 = vor.u32 %v8362_v48, %v7653_v63  ;;  %v8347_v63 = vld [vmem:[%s12390_s16 + $0xe8] sm:$0xf0] }
 0x785   : > { %5286 = vmatpush.bf16.msrb.mxu0 %v7674_v3  ;;  %5297 = vmatpush.bf16.msrb.mxu2 %v7794_v26  ;;  %v7629_v26 = vld [vmem:[%s12390_s16 + $0x128] sm:$0xf] }
 0x789   : > { %5298 = vmatpush.bf16.msrb.mxu2 %v7782_v45 }
 0x78d   : > { %5299 = vmatpush.bf16.msrb.mxu2 %v7770_v60 }
 0x79d   : > { %v4527_v14 = vpop.f32.mrf.mxu1 }
 0x79e   : > { %v4553_v24 = vpop.f32.mrf.mxu0  ;;  %v4528_v28 = vadd.f32 %v4527_v14, %v4030_v43  ;;  %v7521_v14 = vld [vmem:[%s12390_s16 + $0x50] sm:$0xf]  ;;  %v7666_v43 = vor.u32 %v8365_v34, %v7665_v1  ;;  %v8413_v34 = vld [vmem:[%s12390_s16 + $0x2f8] sm:$0xf0] }
 0x79f   : > { %v7522_v59 = vor.u32 %v8329_v15, %v7521_v14  ;;  %v7857_v1 = vld [vmem:[%s12390_s16 + $0x2f0] sm:$0xf]  ;;  %v8380_v14 = vld [vmem:[%s12390_s16 + $0x1f0] sm:$0xf0] }
 0x7a3   : > { %v4540_v25 = vpop.f32.mrf.mxu3 }
 0x7a4   : > { %v4541_v31 = vadd.f32 %v4540_v25, %v4528_v28  ;;  %v4566_v12 = vpop.f32.mrf.mxu2 }
 0x7a5   : > { %v4529_v32 = vpop.f32.mrf.mxu1  ;;  %v4567_v20 = vadd.f32 %v4566_v12, %v4031_v35  ;;  %v7510_v12 = vor.u32 %v8326_v4, %v7509_v44  ;;  %v7845_v44 = vld [vmem:[%s12390_s16 + $0x2d8] sm:$0xf]  ;;  %v8410_v4 = vld [vmem:[%s12390_s16 + $0x2e0] sm:$0xf0] }
 0x7a6   : > { %v4554_v36 = vadd.f32 %v4553_v24, %v4541_v31  ;;  %v4555_v37 = vpop.f32.mrf.mxu0  ;;  %v7497_v32 = vld [vmem:[%s12390_s16 + $0x20] sm:$0xf] }
 0x7a7   : > { %v7642_v37 = vor.u32 %v8359_v30, %v7641_v2  ;;  %v7498_v21 = vor.u32 %v8323_v33, %v7497_v32  ;;  %v7581_v2 = vld [vmem:[%s12390_s16 + $0xc8] sm:$0xf]  ;;  %v8344_v30 = vld [vmem:[%s12390_s16 + $0xd0] sm:$0xf0]  ;;  %v7701_v33 = vld [vmem:[%s12390_s16 + $0x1b8] sm:$0xf] }
 0x7a8   : > { %v4674_v49 = vmax.f32 %v4554_v36, 0.0  ;;  %v7582_v32 = vor.u32 %v8344_v30, %v7581_v2 }
 0x7aa   : > { %v12113_v17 = vpack.c.bf16 %v4674_v49, %v4674_v49  ;;  %v8356_v49 = vld [vmem:[%s12390_s16 + $0x130] sm:$0xf0] }
 0x7ab   : > { %v4542_v39 = vpop.f32.mrf.mxu3  ;;  %v7630_v35 = vor.u32 %v8356_v49, %v7629_v26  ;;  %v7689_v26 = vld [vmem:[%s12390_s16 + $0x1a0] sm:$0xf]  ;;  %v8371_v49 = vld [vmem:[%s12390_s16 + $0x1a8] sm:$0xf0] }
 0x7ac   : > { %v4568_v47 = vpop.f32.mrf.mxu2  ;;  %5209 = vmatmul.bf16.vlgmr.msra.gmra.mxu1 %v12113_v17  ;;  %v8320_v39 = vld [vmem:[%s12390_s16 + $0x10] sm:$0xf0] }
 0x7ad   : > { %v4579_v50 = vpop.f32.mrf.mxu1  ;;  %5305 = vmatpush.bf16.msra.mxu1 %v7570_v57  ;;  %v7749_v47 = vld [vmem:[%s12390_s16 + $0x218] sm:$0xf]  ;;  %v7486_v55 = vor.u32 %v8320_v39, %v7485_v7  ;;  %v7677_v7 = vld [vmem:[%s12390_s16 + $0x188] sm:$0xf]  ;;  %v8368_v39 = vld [vmem:[%s12390_s16 + $0x190] sm:$0xf0] }
 0x7ae   : > { %v4605_v6 = vpop.f32.mrf.mxu0  ;;  %v4580_v51 = vadd.f32 %v4579_v50, %v4567_v20  ;;  %v7750_v60 = vor.u32 %v8386_v5, %v7749_v47  ;;  %v7797_v47 = vld [vmem:[%s12390_s16 + $0x278] sm:$0xf]  ;;  %v8398_v5 = vld [vmem:[%s12390_s16 + $0x280] sm:$0xf0] }
 0x7af   : > { %v4606_v27 = vadd.f32 %v4605_v6, %v4032_v16  ;;  %v7858_v16 = vor.u32 %v8413_v34, %v7857_v1 }
 0x7b1   : > { %5306 = vmatpush.bf16.msra.mxu1 %v7558_v8  ;;  %v7617_v8 = vld [vmem:[%s12390_s16 + $0x110] sm:$0xf] }
 0x7b3   : > { %v4592_v62 = vpop.f32.mrf.mxu3 }
 0x7b4   : > { %v4593_v10 = vadd.f32 %v4592_v62, %v4580_v51  ;;  %v4618_v0 = vpop.f32.mrf.mxu2  ;;  %v7618_v51 = vor.u32 %v8353_v54, %v7617_v8  ;;  %v7605_v62 = vld [vmem:[%s12390_s16 + $0xf8] sm:$0xf]  ;;  %v7785_v8 = vld [vmem:[%s12390_s16 + $0x260] sm:$0xf]  ;;  %v8395_v54 = vld [vmem:[%s12390_s16 + $0x268] sm:$0xf0] }
 0x7b5   : > { %v4581_v42 = vpop.f32.mrf.mxu1  ;;  %5307 = vmatpush.bf16.msra.mxu1 %v7546_v61  ;;  %v4619_v31 = vadd.f32 %v4618_v0, %v4606_v27 }
 0x7b6   : > { %v4675_v11 = vmax.f32 %v4593_v10, 0.0  ;;  %v4607_v13 = vpop.f32.mrf.mxu0  ;;  %v8350_v10 = vld [vmem:[%s12390_s16 + $0x100] sm:$0xf0]  ;;  %v7738_v42 = vor.u32 %v8383_v18, %v7737_v9 }
 0x7b7   : > { %v7725_v13 = vld [vmem:[%s12390_s16 + $0x1e8] sm:$0xf] }
 0x7b8   : > { %v12157_v24 = vpack.c.bf16 %v4675_v11, %v4675_v11  ;;  %v7606_v11 = vor.u32 %v8350_v10, %v7605_v62  ;;  %v3975_v62 = vld [vmem:[%s12391_s17] sm:$0x7] }
 0x7b9   : > { %5308 = vmatpush.bf16.msra.mxu1 %v7534_v19  ;;  %v4683_v10 = vperm.slane %v3975_v62, 0 }
 0x7ba   : > { %5222 = vmatmul.bf16.vlgmr.msra.gmra.mxu3 %v12157_v24 }
 0x7bb   : > { %v4594_v28 = vpop.f32.mrf.mxu3  ;;  %5318 = vmatpush.bf16.msra.mxu3 %v7666_v43  ;;  %v7593_v43 = vld [vmem:[%s12390_s16 + $0xe0] sm:$0xf] }
 0x7bc   : > { %v4620_v25 = vpop.f32.mrf.mxu2  ;;  %5261 = vmatmul.bf16.vlgmr.msrb.gmra.mxu1 %v12113_v17  ;;  %v7594_v27 = vor.u32 %v8347_v63, %v7593_v43  ;;  %v7713_v28 = vld [vmem:[%s12390_s16 + $0x1d0] sm:$0xf] }
 0x7bd   : > { %5309 = vmatpush.bf16.msra.mxu1 %v7522_v59  ;;  %v7846_v25 = vor.u32 %v8410_v4, %v7845_v44 }
 0x7be   : > { %v4631_v3 = vpop.f32.mrf.mxu1 }
 0x7bf   : > { %v4632_v22 = vadd.f32 %v4631_v3, %v4619_v31  ;;  %5319 = vmatpush.bf16.msra.mxu3 %v7654_v29  ;;  %v8377_v29 = vld [vmem:[%s12390_s16 + $0x1d8] sm:$0xf0]  ;;  %v7833_v31 = vld [vmem:[%s12390_s16 + $0x2c0] sm:$0xf] }
 0x7c0   : > { %v4657_v36 = vpop.f32.mrf.mxu0  ;;  %v7714_v3 = vor.u32 %v8377_v29, %v7713_v28 }
 0x7c1   : > { %v4676_v57 = vmax.f32 %v4632_v22, 0.0  ;;  %5310 = vmatpush.bf16.msra.mxu1 %v7510_v12  ;;  %v8407_v12 = vld [vmem:[%s12390_s16 + $0x2c8] sm:$0xf0]  ;;  %v8374_v22 = vld [vmem:[%s12390_s16 + $0x1c0] sm:$0xf0] }
 0x7c2   : > { %v7702_v40 = vor.u32 %v8374_v22, %v7701_v33 }
 0x7c3   : > { %v12204_v45 = vpack.c.bf16 %v4676_v57, %v4676_v57  ;;  %5320 = vmatpush.bf16.msra.mxu3 %v7642_v37  ;;  %v7821_v37 = vld [vmem:[%s12390_s16 + $0x2a8] sm:$0xf] }
 0x7c4   : > { %v4644_v50 = vpop.f32.mrf.mxu3  ;;  %v7822_v57 = vor.u32 %v8404_v38, %v7821_v37 }
 0x7c5   : > { %v4645_v53 = vadd.f32 %v4644_v50, %v4033_v58  ;;  %5235 = vmatmul.bf16.vlgmr.msra.gmra.mxu0 %v12204_v45  ;;  %5311 = vmatpush.bf16.msra.mxu1 %v7498_v21  ;;  %v7809_v58 = vld [vmem:[%s12390_s16 + $0x290] sm:$0xf]  ;;  %v8401_v21 = vld [vmem:[%s12390_s16 + $0x298] sm:$0xf0]  ;;  %v7798_v50 = vor.u32 %v8398_v5, %v7797_v47 }
 0x7c6   : > { %v4670_v6 = vpop.f32.mrf.mxu2  ;;  %v4633_v56 = vpop.f32.mrf.mxu1  ;;  %5331 = vmatpush.bf16.msra.mxu0 %v7762_v23  ;;  %v7690_v23 = vor.u32 %v8371_v49, %v7689_v26 }
 0x7c7   : > { %v4658_v20 = vadd.f32 %v4657_v36, %v4645_v53  ;;  %5321 = vmatpush.bf16.msra.mxu3 %v7630_v35  ;;  %v7834_v36 = vor.u32 %v8407_v12, %v7833_v31  ;;  %v7810_v35 = vor.u32 %v8401_v21, %v7809_v58  ;;  %v7786_v53 = vor.u32 %v8395_v54, %v7785_v8 }
 0x7c8   : > { %v4659_v61 = vpop.f32.mrf.mxu0  ;;  %v4685_v31 = vperm.slane %v3975_v62, 2 }
 0x7c9   : > { %v4671_v0 = vadd.f32 %v4670_v6, %v4658_v20  ;;  %5312 = vmatpush.bf16.msra.mxu1 %v7486_v55  ;;  %v7773_v6 = vld [vmem:[%s12390_s16 + $0x248] sm:$0xf]  ;;  %v8392_v55 = vld [vmem:[%s12390_s16 + $0x250] sm:$0xf0] }
 0x7ca   : > { %5332 = vmatpush.bf16.msra.mxu0 %v7750_v60  ;;  %5274 = vmatmul.bf16.vlgmr.msrb.gmra.mxu3 %v12157_v24  ;;  %v7774_v56 = vor.u32 %v8392_v55, %v7773_v6 }
 0x7cb   : > { %v4677_v19 = vmax.f32 %v4671_v0, 0.0  ;;  %5322 = vmatpush.bf16.msra.mxu3 %v7618_v51 }
 0x7cc   : > { %v4646_v15 = vpop.f32.mrf.mxu3  ;;  %5313 = vmatmul.bf16.vlgmr.msra.gmra.mxu1 %v12113_v17  ;;  %v7726_v17 = vor.u32 %v8380_v14, %v7725_v13 }
 0x7cd   : > { %v4681_v48 = vpack.c.bf16 %v4677_v19, %v4677_v19 }
 0x7ce   : > { %v4672_v59 = vpop.f32.mrf.mxu2  ;;  %5333 = vmatpush.bf16.msra.mxu0 %v7738_v42 }
 0x7cf   : > { %5248 = vmatmul.bf16.vlgmr.msra.gmra.mxu2 %v4681_v48  ;;  %5323 = vmatpush.bf16.msra.mxu3 %v7606_v11 }
 0x7d0   : > { %5344 = vmatpush.bf16.msra.mxu2 %v7858_v16 }
 0x7d2   : > { %5334 = vmatpush.bf16.msra.mxu0 %v7726_v17 }
 0x7d3   : > { %5324 = vmatpush.bf16.msra.mxu3 %v7594_v27 }
 0x7d4   : > { %5345 = vmatpush.bf16.msra.mxu2 %v7846_v25 }
 0x7d5   : > { %5287 = vmatmul.bf16.vlgmr.msrb.gmra.mxu0 %v12204_v45 }
 0x7d6   : > { %5335 = vmatpush.bf16.msra.mxu0 %v7714_v3 }
 0x7d7   : > { %5325 = vmatpush.bf16.msra.mxu3 %v7582_v32 }
 0x7d8   : > { %5346 = vmatpush.bf16.msra.mxu2 %v7834_v36 }
 0x7da   : > { %5336 = vmatpush.bf16.msra.mxu0 %v7702_v40  ;;  %5326 = vmatmul.bf16.vlgmr.msra.gmra.mxu3 %v12157_v24  ;;  %v7678_v24 = vor.u32 %v8368_v39, %v7677_v7 }
 0x7dc   : > { %5347 = vmatpush.bf16.msra.mxu2 %v7822_v57 }
 0x7de   : > { %5337 = vmatpush.bf16.msra.mxu0 %v7690_v23 }
 0x7df   : > { %5300 = vmatmul.bf16.vlgmr.msrb.gmra.mxu2 %v4681_v48 }
 0x7e0   : > { %5348 = vmatpush.bf16.msra.mxu2 %v7810_v35 }
 0x7e2   : > { %5338 = vmatpush.bf16.msra.mxu0 %v7678_v24 }
 0x7e4   : > { %5349 = vmatpush.bf16.msra.mxu2 %v7798_v50 }
 0x7e5   : > { %5339 = vmatmul.bf16.vlgmr.msra.gmra.mxu0 %v12204_v45 }
 0x7e8   : > { %5350 = vmatpush.bf16.msra.mxu2 %v7786_v53 }
 0x7ec   : > { %5351 = vmatpush.bf16.msra.mxu2 %v7774_v56 }
 0x7ef   : > { %5352 = vmatmul.bf16.vlgmr.msra.gmra.mxu2 %v4681_v48  ;;  %v4684_v48 = vperm.slane %v3975_v62, 1 }
 0x829   : > { %v5210_v60 = vpop.f32.mrf.mxu1 }
 0x82a   : > { %v5211_v34 = vadd.f32 %v5210_v60, %v4683_v10 }
 0x831   : > { %v5212_v20 = vpop.f32.mrf.mxu1 }
 0x839   : > { %v5262_v61 = vpop.f32.mrf.mxu1 }
 0x83a   : > { %v5263_v4 = vadd.f32 %v5262_v61, %v4684_v48 }
 0x83d   : > { %v5223_v51 = vpop.f32.mrf.mxu3 }
 0x83e   : > { %v5224_v19 = vadd.f32 %v5223_v51, %v5211_v34 }
 0x841   : > { %v5264_v9 = vpop.f32.mrf.mxu1 }
 0x842   : > { %v5236_v45 = vpop.f32.mrf.mxu0 }
 0x843   : > { %v5237_v11 = vadd.f32 %v5236_v45, %v5224_v19 }
 0x845   : > { %v5225_v18 = vpop.f32.mrf.mxu3 }
 0x849   : > { %v5314_v0 = vpop.f32.mrf.mxu1 }
 0x84a   : > { %v5238_v1 = vpop.f32.mrf.mxu0  ;;  %v5315_v32 = vadd.f32 %v5314_v0, %v4685_v31 }
 0x84d   : > { %v5275_v42 = vpop.f32.mrf.mxu3 }
 0x84e   : > { %v5276_v27 = vadd.f32 %v5275_v42, %v5263_v4 }
 0x851   : > { %v5316_v13 = vpop.f32.mrf.mxu1 }
 0x852   : > { %v5249_v14 = vpop.f32.mrf.mxu2  ;;  %v5288_v15 = vpop.f32.mrf.mxu0 }
 0x853   : > { %v5250_v16 = vadd.f32 %v5249_v14, %v5237_v11  ;;  %v5289_v28 = vadd.f32 %v5288_v15, %v5276_v27 }
 0x855   : > { %v5357_v43 = vadd.f32 %v5250_v16, %v11097_v41  ;;  %v5277_v63 = vpop.f32.mrf.mxu3 }
 0x857   : > { %5360 = vst [vmem:[%s12333_s2] sm:$0xff] %v5357_v43 }
 0x85a   : > { %v5251_v59 = vpop.f32.mrf.mxu2  ;;  %v5290_v44 = vpop.f32.mrf.mxu0 }
 0x85d   : > { %v5327_v17 = vpop.f32.mrf.mxu3 }
 0x85e   : > { %v5328_v33 = vadd.f32 %v5327_v17, %v5315_v32 }
 0x862   : > { %v5301_v29 = vpop.f32.mrf.mxu2  ;;  %v5340_v25 = vpop.f32.mrf.mxu0 }
 0x863   : > { %v5302_v2 = vadd.f32 %v5301_v29, %v5289_v28  ;;  %v5341_v22 = vadd.f32 %v5340_v25, %v5328_v33 }
 0x865   : > { %v5358_v41 = vadd.f32 %v5302_v2, %v11099_v46  ;;  %v5329_v30 = vpop.f32.mrf.mxu3 }
 0x867   : > { %5361 = vst [vmem:[%s12333_s2 + $0x8] sm:$0xff] %v5358_v41 }
 0x86a   : > { %v5303_v12 = vpop.f32.mrf.mxu2  ;;  %v5342_v3 = vpop.f32.mrf.mxu0 }
 0x872   : > { %v5353_v36 = vpop.f32.mrf.mxu2 }
 0x873   : > { %v5354_v46 = vadd.f32 %v5353_v36, %v5341_v22 }
 0x875   : > { %v5359_v37 = vadd.f32 %v5354_v46, %v11101_v52 }
 0x877   : > { %5362 = vst [vmem:[%s12333_s2 + $0x10] sm:$0xff] %v5359_v37 }
 0x878   : > { %8498 = shalt.err (!%p8495_p3)
}
 0x879   : > { %8417 = dma.vmem_to_hbm [thread:$0]  (%p8669_p5), %s5378_s21, 384, %s5380_s27, %s5364_s29  }
 0x87a   : > { %v5355_v52 = vpop.f32.mrf.mxu2 }
 0x87b PF: > { %s12424_s1 = sld [smem:[#allocation7_spill]] }
 0x87c   : > { %s12425_s2 = sld [smem:[#allocation5_spill]] }
 0x881   : > { %p8423_p4 = scmp.ge.s32.totalorder %s12424_s1, 2 }
 0x882   : > { %s5391_s4 = sand.u32 1, %s12425_s2  }
 0x883   : > { %p8420_p7 = pnand %p8423_p4, %p8673_p6  ;;  %s5392_s22 = scalar_lea.sflag [#allocation3], %s5391_s4 }
 0x885   : > { %p8421_p8 = pneg %p8420_p7 }
 0x887   : > { %8516 = dma.done.wait (%p8421_p8), %s5392_s22, 384  }
 0x888   : > { %8518 = vsyncadd (%p8421_p8), %s5392_s22, 4294966912  ;;  %s12427_s30 = sld [smem:[#allocation8_spill]]  ;;  %s12430_s27 = smov %s8525_s28 }
 0x889   : > { %s12428_s0 = sld [smem:[#allocation6_spill]] }
 0x88a   : > { %s12429_s29 = sld [smem:[#allocation9_spill]] }
 0x88e   : > { %p28_p9 = scmp.ge.s32.totalorder %s12427_s30, 4  }
 0x88f   : > { %s12431_s28 = smov %s12428_s0 }
 0x890   :  { %30 = sbr.rel (!%p28_p9) target bundleno = 9 (0x9), region = 134 }
 0x895   :  { %5398 = vsyncpa [#allocation3], 1 }
 0x896   :  { %5400 = vsyncpa [#allocation3 + $0x1], 1 }

</bundles_post_ra>
